<compile_context>
chip_gen: v7x
topology: tpu7x:2x2x1
jax: 0.10.0
libtpu: 0.0.40
codegen_flags: <defaults>
</compile_context>

<pallas_src>
import functools

import jax
import jax.numpy as jnp
from jax.experimental import pallas as pl
from jax.experimental.pallas import tpu as pltpu


# ------------------------------ Pallas kernel ------------------------------ #

def _leaky(x, slope):
    return jnp.where(x >= 0, x, slope * x)


def _pool_geo_half(scores, g3d, use_bf16_vpu):
    """Attentive-pool the geometry half: sum_k softmax_k(scores) * g.

    scores, g3d: (TN, K, dh) float32.  Returns (TN, dh) float32.
    The feature half of the pool never needs computing (softmax sums to 1)."""
    m = jnp.max(scores, axis=1, keepdims=True)
    z = scores - m
    if use_bf16_vpu:
        # v6e/v7x: bf16 EUP / VPU paths for exp and the K-weighted product.
        p = jnp.exp(z.astype(jnp.bfloat16))
        num = jnp.sum((p * g3d.astype(jnp.bfloat16)).astype(jnp.float32), axis=1)
        den = jnp.sum(p.astype(jnp.float32), axis=1)
    else:
        # v5e and older: no bf16 VPU/EUP, stay in f32.
        p = jnp.exp(z)
        num = jnp.sum(p * g3d, axis=1)
        den = jnp.sum(p, axis=1)
    return num * pl.reciprocal(den, approx=True)


def _dot(a, b):
    return jnp.dot(a, b, preferred_element_type=jnp.float32)


def lfa_kernel(geo_ref, feat_ref,
               wgT_ref, bg_ref,                    # fused LSE1|LSE2 geometry MLP (BN folded), transposed
               w1_ref, b1_ref,                     # mlp1
               ws1g_ref, ws1x_ref,                 # pool1 score Linear (geo-half columns only)
               wp1g_ref, wp1x_ref, bp1_ref,        # pool1.mlp (BN folded), split by input half
               ws2g_ref, ws2x_ref,                 # pool2 score Linear (geo-half columns only)
               wp2g_ref, wp2x_ref, bp2_ref,        # pool2.mlp (BN folded), split by input half
               wm2_ref, wsc_ref, bout_ref,         # mlp2 + shortcut (BN folded), biases fused
               out_ref,                            # (2*d_out, TILE_N)
               *, dh, K, use_bf16_vpu):
    tn = feat_ref.shape[0]

    feat = feat_ref[...]                                              # (TN, d_in) bf16

    # --- fused LSE1|LSE2 geometry MLP: one depth-10 f32 matmul over lane-dense geo.
    geo = geo_ref[...]                                                # (10, TN*K) f32
    g12t = jnp.maximum(_dot(wgT_ref[...], geo) + bg_ref[...], 0.0)    # (d_out, TN*K) f32
    # Sublane slices at dh (multiple of 8) are free; transpose each half once.
    g1 = jnp.transpose(g12t[:dh, :])                                  # (TN*K, dh) f32
    g2 = jnp.transpose(g12t[dh:, :])
    g1b = g1.astype(jnp.bfloat16)
    g2b = g2.astype(jnp.bfloat16)
    g1_3d = g1.reshape(tn, K, dh)                                     # f32 reshape: free when K % 8 == 0
    g2_3d = g2.reshape(tn, K, dh)

    # --- mlp1 (1x1 conv + LeakyReLU(0.2))
    x1 = _leaky(_dot(feat, w1_ref[...]) + b1_ref[...], 0.2)           # (TN, dh) f32
    x1b = x1.astype(jnp.bfloat16)

    # --- attentive pooling 1.  z1 = [g1 | x1] is never materialized: only the
    #     geo-half score columns are needed, and the pooled feature half == x1.
    s1 = (_dot(g1b, ws1g_ref[...]).reshape(tn, K, dh)
          + _dot(x1b, ws1x_ref[...])[:, None, :])                     # (TN, K, dh) f32
    ag1 = _pool_geo_half(s1, g1_3d, use_bf16_vpu)                     # (TN, dh)
    p1 = jnp.maximum(_dot(ag1.astype(jnp.bfloat16), wp1g_ref[...])
                     + _dot(x1b, wp1x_ref[...])
                     + bp1_ref[...], 0.0)                             # (TN, dh)
    p1b = p1.astype(jnp.bfloat16)

    # --- attentive pooling 2.  z2 = [g2 | p1], pooled feature half == p1.
    s2 = (_dot(g2b, ws2g_ref[...]).reshape(tn, K, dh)
          + _dot(p1b, ws2x_ref[...])[:, None, :])
    ag2 = _pool_geo_half(s2, g2_3d, use_bf16_vpu)                     # (TN, dh)
    p2 = jnp.maximum(_dot(ag2.astype(jnp.bfloat16), wp2g_ref[...])
                     + _dot(p1b, wp2x_ref[...])
                     + bp2_ref[...], 0.0)                             # (TN, d_out)

    # --- mlp2 + shortcut (biases pre-fused), residual LeakyReLU(0.01).
    out = _leaky(_dot(p2.astype(jnp.bfloat16), wm2_ref[...])
                 + _dot(feat, wsc_ref[...])
                 + bout_ref[...], 0.01)                               # (TN, 2*d_out)
    # Channels-first store: lane-dense along N.
    out_ref[...] = out.T.astype(out_ref.dtype)


# ------------------------------- host glue --------------------------------- #

def init_params(key, d_in, d_out):
    """Deterministic synthetic parameters, shapes taken from the PyTorch module."""
    dh = d_out // 2
    ks = jax.random.split(key, 16)

    def w(k, shape):
        return jax.random.normal(k, shape, jnp.float32) * 0.1

    def fold_bn(W, b, eps=1e-6):
        # BatchNorm2d in eval mode with init statistics (gamma=1, beta=0, mean=0, var=1).
        # TODO(synk): train-mode batch statistics are not reproduced (eval-mode BN folded into conv).
        s = 1.0 / jnp.sqrt(1.0 + eps)
        return W * s, b * s

    p = {}
    p['w1'], p['b1'] = w(ks[0], (d_in, dh)), w(ks[1], (1, dh))                       # mlp1
    p['wg1'], p['bg1'] = fold_bn(w(ks[2], (10, dh)), w(ks[3], (1, dh)))              # lse1.mlp
    p['ws1'] = w(ks[4], (d_out, d_out))                                              # pool1.score_fn
    p['wp1'], p['bp1'] = fold_bn(w(ks[5], (d_out, dh)), w(ks[6], (1, dh)))           # pool1.mlp
    p['wg2'], p['bg2'] = fold_bn(w(ks[7], (10, dh)), w(ks[8], (1, dh)))              # lse2.mlp
    p['ws2'] = w(ks[9], (d_out, d_out))                                              # pool2.score_fn
    p['wp2'], p['bp2'] = fold_bn(w(ks[10], (d_out, d_out)), w(ks[11], (1, d_out)))   # pool2.mlp
    p['wm2'], p['bm2'] = w(ks[12], (d_out, 2 * d_out)), w(ks[13], (1, 2 * d_out))    # mlp2
    p['wsc'], p['bsc'] = fold_bn(w(ks[14], (d_in, 2 * d_out)),
                                 w(ks[15], (1, 2 * d_out)))                          # shortcut
    return p


def _prepare_kernel_weights(p, d_out):
    """Split / fuse weights host-side so every kernel matmul contracts over a
    real (dh / d_in / d_out) depth with no zero padding and no lane concats."""
    dh = d_out // 2
    bf = lambda a: a.astype(jnp.bfloat16)

    wgT = jnp.concatenate([p['wg1'], p['wg2']], axis=1).T          # (d_out, 10) f32
    bg = jnp.concatenate([p['bg1'], p['bg2']], axis=1).T           # (d_out, 1)  f32
    ws1, ws2 = p['ws1'], p['ws2']
    wp1, wp2 = p['wp1'], p['wp2']

    # Only the geo-half score columns [:dh) are ever needed (softmax over K of the
    # feature-half columns sums to 1, so the pooled feature half is the feature).
    return [
        wgT, bg,
        bf(p['w1']), p['b1'],
        bf(ws1[:dh, :dh]), bf(ws1[dh:, :dh]),
        bf(wp1[:dh, :]), bf(wp1[dh:, :]), p['bp1'],
        bf(ws2[:dh, :dh]), bf(ws2[dh:, :dh]),
        bf(wp2[:dh, :]), bf(wp2[dh:, :]), p['bp2'],
        bf(p['wm2']), bf(p['wsc']), p['bm2'] + p['bsc'],
    ]


def _knn_geometric_encoding(coords, K):
    """KNN + the 10-channel relative-position encoding shared by LSE1/LSE2.
    TODO(synk): the original `knn()` is an external CPU op; reimplemented as a dense
    O(N^2) pairwise top_k in plain JAX (Euclidean distance for the dist channel).
    TODO(synk): geo could be built in-kernel from coords + a scalar-prefetched KNN
    index table to cut geo HBM traffic ~3x; kept as wrapper glue (gather risk)."""
    B, N, _ = coords.shape
    diff = coords[:, :, None, :] - coords[:, None, :, :]
    d2 = jnp.sum(diff * diff, axis=-1)                         # (B, N, N)
    neg_d2, idx = jax.lax.top_k(-d2, K)                        # K nearest (incl. self)
    dist = jnp.sqrt(jnp.maximum(-neg_d2, 0.0))                 # (B, N, K)
    neigh = jax.vmap(lambda c, i: c[i, :])(coords, idx)        # (B, N, K, 3)
    center = jnp.broadcast_to(coords[:, :, None, :], (B, N, K, 3))
    geo = jnp.concatenate([center, neigh, center - neigh, dist[..., None]], axis=-1)
    return geo.astype(jnp.float32)                             # (B, N, K, 10)


def _tpu_generation_info():
    """Per-generation VMEM capacity and whether bf16 VPU/EUP paths pay off."""
    try:
        kind = jax.devices()[0].device_kind.lower()
    except Exception:
        kind = ""
    vmem_cap = None
    try:
        vmem_cap = int(pltpu.get_tpu_info().vmem_capacity_bytes)
    except Exception:
        vmem_cap = None
    if not vmem_cap:
        vmem_cap = (64 << 20) if ('7' in kind) else (128 << 20)
    use_bf16_vpu = ('v6' in kind) or ('v7' in kind) or ('7x' in kind)
    return vmem_cap, use_bf16_vpu


def _derive_tiling(N, K, d_in, d_out, B, vmem_cap):
    """Pick TILE_N from a VMEM working-set model and a per-generation limit."""
    dh = d_out // 2
    if vmem_cap <= (64 << 20):            # v7x-class: 64 MiB / TensorCore
        vmem_limit = 40 << 20
        budget = 20 << 20
    else:                                  # v5e / v6e: 128 MiB
        vmem_limit = 96 << 20
        budget = 40 << 20

    lanes = lambda c: max(-(-c // 128) * 128, 128)
    subl = lambda r: -(-r // 8) * 8

    def est(tn):
        m = tn * K
        geo = 2 * subl(10) * m * 4                  # double-buffered channels-major geo (f32)
        featb = 2 * tn * lanes(d_in) * 2            # double-buffered bf16 features
        g12t = subl(d_out) * m * 4                  # geometry-MLP output (pre-transpose)
        ghalf = 2 * m * lanes(dh) * 4               # transposed g1/g2 (f32)
        gbf = 2 * m * lanes(dh) * 2                 # bf16 copies for the MXU
        attn = 3 * m * lanes(dh) * 4                # scores / exp / weighted product live set
        outb = 2 * subl(2 * d_out) * tn * 4         # double-buffered output tile
        small = 8 * tn * lanes(2 * d_out) * 4       # x1 / p1 / p2 / pooled & friends
        return geo + featb + g12t + ghalf + gbf + attn + outb + small + (2 << 20)

    cands = [t for t in (1024, 512, 256, 128) if N % t == 0]
    if not cands:
        return N, vmem_limit                        # small / odd N: one tile per batch row
    fitting = [t for t in cands if est(t) <= budget] or [cands[-1]]
    tile_n = fitting[0]
    # Megacore (v7x): prefer >= 8 parallel grid slices as long as tiles stay MXU-friendly.
    for t in fitting:
        if B * (N // t) >= 8 and t >= 128:
            tile_n = t
            break
    return tile_n, vmem_limit


def local_feature_aggregation(coords, features, params, num_neighbors,
                              out_dtype=jnp.float32):
    """
    coords:   (B, N, 3)        float32
    features: (B, d_in, N, 1)  float32  (PyTorch NCHW layout)
    returns:  (B, 2*d_out, N, 1) in out_dtype (bf16 output halves HBM stores on v5e).
    """
    B, d_in, N, _ = features.shape
    K = num_neighbors
    d_out = params['ws1'].shape[0]
    dh = d_out // 2
    two_d_out = 2 * d_out

    vmem_cap, use_bf16_vpu = _tpu_generation_info()
    tile_n, vmem_limit = _derive_tiling(N, K, d_in, d_out, B, vmem_cap)

    feat = jnp.transpose(features[..., 0], (0, 2, 1)).astype(jnp.bfloat16)  # (B, N, d_in)
    geo = _knn_geometric_encoding(coords, K)                                 # (B, N, K, 10) f32
    # Channels-major, lane-dense geo stream; kept f32 (absolute-coordinate precision).
    geo_t = jnp.transpose(geo, (0, 3, 1, 2)).reshape(B, 10, N * K)

    weights = _prepare_kernel_weights(params, d_out)
    # TODO(synk): the 17 small weight inputs could be concatenated into 2-3 same-dtype
    # arrays to cut per-input pipeline buffers / DMA descriptors (few-% win).
    weight_specs = [pl.BlockSpec(w.shape, lambda b, n: (0, 0)) for w in weights]

    kernel = functools.partial(lfa_kernel, dh=dh, K=K, use_bf16_vpu=use_bf16_vpu)

    out_cn = pl.pallas_call(
        kernel,
        out_shape=jax.ShapeDtypeStruct((B, two_d_out, N), out_dtype),
        grid=(B, N // tile_n),
        in_specs=[pl.BlockSpec((None, 10, tile_n * K), lambda b, n: (b, 0, n)),
                  pl.BlockSpec((None, tile_n, d_in), lambda b, n: (b, n, 0))]
                 + weight_specs,
        out_specs=pl.BlockSpec((None, two_d_out, tile_n), lambda b, n: (b, 0, n)),
        compiler_params=pltpu.CompilerParams(
            dimension_semantics=("parallel", "parallel"),
            vmem_limit_bytes=vmem_limit),
    )(geo_t, feat, *weights)

    return out_cn[..., None]                                   # (B, 2*d_out, N, 1)


# ------------------------- plain-JAX f32 reference -------------------------- #

def lfa_reference(coords, features, params, num_neighbors):
    feat = jnp.transpose(features[..., 0], (0, 2, 1))          # (B, N, d_in)
    geo = _knn_geometric_encoding(coords, num_neighbors)       # (B, N, K, 10)

    def leaky(x, s):
        return jnp.where(x >= 0, x, s * x)

    def softk(x):  # softmax over K (axis=2)
        e = jnp.exp(x - jnp.max(x, axis=2, keepdims=True))
        return e / jnp.sum(e, axis=2, keepdims=True)

    p = params
    x1 = leaky(jnp.einsum('bnd,de->bne', feat, p['w1']) + p['b1'], 0.2)
    g1 = jnp.maximum(jnp.einsum('bnkg,gd->bnkd', geo, p['wg1']) + p['bg1'], 0.0)
    z1 = jnp.concatenate([g1, jnp.broadcast_to(x1[:, :, None, :], g1.shape)], axis=-1)
    a1 = softk(jnp.einsum('bnkc,cd->bnkd', z1, p['ws1']))
    p1 = jnp.maximum(jnp.einsum('bnc,cd->bnd', jnp.sum(a1 * z1, axis=2), p['wp1'])
                     + p['bp1'], 0.0)
    g2 = jnp.maximum(jnp.einsum('bnkg,gd->bnkd', geo, p['wg2']) + p['bg2'], 0.0)
    z2 = jnp.concatenate([g2, jnp.broadcast_to(p1[:, :, None, :], g2.shape)], axis=-1)
    a2 = softk(jnp.einsum('bnkc,cd->bnkd', z2, p['ws2']))
    p2 = jnp.maximum(jnp.einsum('bnc,cd->bnd', jnp.sum(a2 * z2, axis=2), p['wp2'])
                     + p['bp2'], 0.0)
    main = jnp.einsum('bnc,cd->bnd', p2, p['wm2']) + p['bm2']
    sc = jnp.einsum('bnc,cd->bnd', feat, p['wsc']) + p['bsc']
    out = leaky(main + sc, 0.01)
    return jnp.transpose(out, (0, 2, 1))[..., None]


# --------------------------------- main ------------------------------------ #

if __name__ == "__main__":
    B, N, K = 2, 16, 8
    d_in, d_out = 8, 16

    key = jax.random.PRNGKey(0)
    k_coords, k_feat, k_params = jax.random.split(key, 3)

    coords = jax.random.normal(k_coords, (B, N, 3), jnp.float32)
    features = jax.random.normal(k_feat, (B, d_in, N, 1), jnp.float32)
    params = init_params(k_params, d_in, d_out)

    out = local_feature_aggregation(coords, features, params, num_neighbors=K)
    out = jax.block_until_ready(out)

    assert out.shape == (B, 2 * d_out, N, 1), out.shape
    assert bool(jnp.all(jnp.isfinite(out)))

    ref = lfa_reference(coords, features, params, num_neighbors=K)
    max_err = float(jnp.max(jnp.abs(out - ref)))
    assert bool(jnp.allclose(out, ref, rtol=5e-2, atol=5e-2)), f"max abs err {max_err}"

    print("KERNEL_OK")
</pallas_src>

<mosaic_0001>
module attributes {stable_mosaic.version = 11 : i64} {
  func.func @lfa_kernel(%arg0: i32, %arg1: i32, %arg2: memref<1x10x128xf32, #tpu.memory_space<vmem>>, %arg3: memref<1x16x8xbf16, #tpu.memory_space<vmem>>, %arg4: memref<16x10xf32, #tpu.memory_space<vmem>>, %arg5: memref<16x1xf32, #tpu.memory_space<vmem>>, %arg6: memref<8x8xbf16, #tpu.memory_space<vmem>>, %arg7: memref<1x8xf32, #tpu.memory_space<vmem>>, %arg8: memref<8x8xbf16, #tpu.memory_space<vmem>>, %arg9: memref<8x8xbf16, #tpu.memory_space<vmem>>, %arg10: memref<8x8xbf16, #tpu.memory_space<vmem>>, %arg11: memref<8x8xbf16, #tpu.memory_space<vmem>>, %arg12: memref<1x8xf32, #tpu.memory_space<vmem>>, %arg13: memref<8x8xbf16, #tpu.memory_space<vmem>>, %arg14: memref<8x8xbf16, #tpu.memory_space<vmem>>, %arg15: memref<8x16xbf16, #tpu.memory_space<vmem>>, %arg16: memref<8x16xbf16, #tpu.memory_space<vmem>>, %arg17: memref<1x16xf32, #tpu.memory_space<vmem>>, %arg18: memref<16x32xbf16, #tpu.memory_space<vmem>>, %arg19: memref<8x32xbf16, #tpu.memory_space<vmem>>, %arg20: memref<1x32xf32, #tpu.memory_space<vmem>>, %arg21: memref<1x32x16xf32, #tpu.memory_space<vmem>>) attributes {dimension_semantics = [#tpu.dimension_semantics<parallel>, #tpu.dimension_semantics<parallel>], iteration_bounds = array<i64: 2, 1>, scalar_prefetch = 0 : i64, scratch_operands = 0 : i64, tpu.core_type = #tpu.core_type<tc>, window_params = [{transform_indices = @transform_0, window_bounds = array<i64: 1, 10, 128>}, {transform_indices = @transform_1, window_bounds = array<i64: 1, 16, 8>}, {pipeline_mode = #tpu.pipeline_mode<synchronous>, transform_indices = @transform_2, window_bounds = array<i64: 16, 10>}, {pipeline_mode = #tpu.pipeline_mode<synchronous>, transform_indices = @transform_3, window_bounds = array<i64: 16, 1>}, {pipeline_mode = #tpu.pipeline_mode<synchronous>, transform_indices = @transform_4, window_bounds = array<i64: 8, 8>}, {pipeline_mode = #tpu.pipeline_mode<synchronous>, transform_indices = @transform_5, window_bounds = array<i64: 1, 8>}, {pipeline_mode = #tpu.pipeline_mode<synchronous>, transform_indices = @transform_6, window_bounds = array<i64: 8, 8>}, {pipeline_mode = #tpu.pipeline_mode<synchronous>, transform_indices = @transform_7, window_bounds = array<i64: 8, 8>}, {pipeline_mode = #tpu.pipeline_mode<synchronous>, transform_indices = @transform_8, window_bounds = array<i64: 8, 8>}, {pipeline_mode = #tpu.pipeline_mode<synchronous>, transform_indices = @transform_9, window_bounds = array<i64: 8, 8>}, {pipeline_mode = #tpu.pipeline_mode<synchronous>, transform_indices = @transform_10, window_bounds = array<i64: 1, 8>}, {pipeline_mode = #tpu.pipeline_mode<synchronous>, transform_indices = @transform_11, window_bounds = array<i64: 8, 8>}, {pipeline_mode = #tpu.pipeline_mode<synchronous>, transform_indices = @transform_12, window_bounds = array<i64: 8, 8>}, {pipeline_mode = #tpu.pipeline_mode<synchronous>, transform_indices = @transform_13, window_bounds = array<i64: 8, 16>}, {pipeline_mode = #tpu.pipeline_mode<synchronous>, transform_indices = @transform_14, window_bounds = array<i64: 8, 16>}, {pipeline_mode = #tpu.pipeline_mode<synchronous>, transform_indices = @transform_15, window_bounds = array<i64: 1, 16>}, {pipeline_mode = #tpu.pipeline_mode<synchronous>, transform_indices = @transform_16, window_bounds = array<i64: 16, 32>}, {pipeline_mode = #tpu.pipeline_mode<synchronous>, transform_indices = @transform_17, window_bounds = array<i64: 8, 32>}, {pipeline_mode = #tpu.pipeline_mode<synchronous>, transform_indices = @transform_18, window_bounds = array<i64: 1, 32>}, {transform_indices = @transform_19, window_bounds = array<i64: 1, 32, 16>}]} {
    %c0 = arith.constant 0 : index
    %c0_0 = arith.constant 0 : index
    %c0_1 = arith.constant 0 : index
    %0 = vector.load %arg3[%c0, %c0_0, %c0_1] : memref<1x16x8xbf16, #tpu.memory_space<vmem>>, vector<1x16x8xbf16>
    %1 = vector.shape_cast %0 : vector<1x16x8xbf16> to vector<16x8xbf16>
    %c0_2 = arith.constant 0 : index
    %c0_3 = arith.constant 0 : index
    %c0_4 = arith.constant 0 : index
    %2 = vector.load %arg2[%c0_2, %c0_3, %c0_4] : memref<1x10x128xf32, #tpu.memory_space<vmem>>, vector<1x10x128xf32>
    %3 = vector.shape_cast %2 : vector<1x10x128xf32> to vector<10x128xf32>
    %c0_5 = arith.constant 0 : index
    %c0_6 = arith.constant 0 : index
    %4 = vector.load %arg4[%c0_5, %c0_6] : memref<16x10xf32, #tpu.memory_space<vmem>>, vector<16x10xf32>
    %cst = arith.constant dense<0.000000e+00> : vector<16x128xf32>
    %5 = tpu.matmul %4, %3, %cst {dimension_numbers = #tpu.dot_dimension_numbers<[1], [0], [0], [1], [0, 0, 1, 1], [], []>} : vector<16x10xf32>, vector<10x128xf32>, vector<16x128xf32> -> vector<16x128xf32>
    %c0_7 = arith.constant 0 : index
    %c0_8 = arith.constant 0 : index
    %6 = vector.load %arg5[%c0_7, %c0_8] : memref<16x1xf32, #tpu.memory_space<vmem>>, vector<16x1xf32>
    %7 = vector.broadcast %6 : vector<16x1xf32> to vector<16x128xf32>
    %8 = arith.addf %5, %7 : vector<16x128xf32>
    %cst_9 = arith.constant 0.000000e+00 : f32
    %9 = vector.broadcast %cst_9 : f32 to vector<16x128xf32>
    %10 = arith.maximumf %8, %9 : vector<16x128xf32>
    %11 = vector.extract_strided_slice %10 {offsets = [0, 0], sizes = [8, 128], strides = [1, 1]} : vector<16x128xf32> to vector<8x128xf32>
    %12 = tpu.transpose %11, [1, 0] : vector<8x128xf32> -> vector<128x8xf32>
    %13 = vector.extract_strided_slice %10 {offsets = [8, 0], sizes = [8, 128], strides = [1, 1]} : vector<16x128xf32> to vector<8x128xf32>
    %14 = tpu.transpose %13, [1, 0] : vector<8x128xf32> -> vector<128x8xf32>
    %15 = arith.truncf %12 : vector<128x8xf32> to vector<128x8xbf16>
    %16 = arith.truncf %14 : vector<128x8xf32> to vector<128x8xbf16>
    %17 = vector.shape_cast %12 : vector<128x8xf32> to vector<16x8x8xf32>
    %18 = vector.shape_cast %14 : vector<128x8xf32> to vector<16x8x8xf32>
    %c0_10 = arith.constant 0 : index
    %c0_11 = arith.constant 0 : index
    %19 = vector.load %arg6[%c0_10, %c0_11] : memref<8x8xbf16, #tpu.memory_space<vmem>>, vector<8x8xbf16>
    %cst_12 = arith.constant dense<0.000000e+00> : vector<16x8xf32>
    %20 = tpu.matmul %1, %19, %cst_12 {dimension_numbers = #tpu.dot_dimension_numbers<[1], [0], [0], [1], [0, 0, 1, 1], [], []>} : vector<16x8xbf16>, vector<8x8xbf16>, vector<16x8xf32> -> vector<16x8xf32>
    %c0_13 = arith.constant 0 : index
    %c0_14 = arith.constant 0 : index
    %21 = vector.load %arg7[%c0_13, %c0_14] : memref<1x8xf32, #tpu.memory_space<vmem>>, vector<1x8xf32>
    %22 = vector.broadcast %21 : vector<1x8xf32> to vector<16x8xf32>
    %23 = arith.addf %20, %22 : vector<16x8xf32>
    %cst_15 = arith.constant 0.000000e+00 : f32
    %24 = vector.broadcast %cst_15 : f32 to vector<16x8xf32>
    %25 = arith.cmpf oge, %23, %24 : vector<16x8xf32>
    %cst_16 = arith.constant 2.000000e-01 : f32
    %26 = vector.broadcast %cst_16 : f32 to vector<16x8xf32>
    %27 = arith.mulf %26, %23 : vector<16x8xf32>
    %28 = arith.select %25, %23, %27 : vector<16x8xi1>, vector<16x8xf32>
    %29 = arith.truncf %28 : vector<16x8xf32> to vector<16x8xbf16>
    %c0_17 = arith.constant 0 : index
    %c0_18 = arith.constant 0 : index
    %30 = vector.load %arg8[%c0_17, %c0_18] : memref<8x8xbf16, #tpu.memory_space<vmem>>, vector<8x8xbf16>
    %cst_19 = arith.constant dense<0.000000e+00> : vector<128x8xf32>
    %31 = tpu.matmul %15, %30, %cst_19 {dimension_numbers = #tpu.dot_dimension_numbers<[1], [0], [0], [1], [0, 0, 1, 1], [], []>} : vector<128x8xbf16>, vector<8x8xbf16>, vector<128x8xf32> -> vector<128x8xf32>
    %32 = vector.shape_cast %31 : vector<128x8xf32> to vector<16x8x8xf32>
    %c0_20 = arith.constant 0 : index
    %c0_21 = arith.constant 0 : index
    %33 = vector.load %arg9[%c0_20, %c0_21] : memref<8x8xbf16, #tpu.memory_space<vmem>>, vector<8x8xbf16>
    %cst_22 = arith.constant dense<0.000000e+00> : vector<16x8xf32>
    %34 = tpu.matmul %29, %33, %cst_22 {dimension_numbers = #tpu.dot_dimension_numbers<[1], [0], [0], [1], [0, 0, 1, 1], [], []>} : vector<16x8xbf16>, vector<8x8xbf16>, vector<16x8xf32> -> vector<16x8xf32>
    %35 = vector.shape_cast %34 : vector<16x8xf32> to vector<16x1x8xf32>
    %36 = vector.broadcast %35 : vector<16x1x8xf32> to vector<16x8x8xf32>
    %37 = arith.addf %32, %36 : vector<16x8x8xf32>
    %cst_23 = arith.constant dense<0xFF800000> : vector<16x8xf32>
    %38 = vector.multi_reduction <maximumf>, %37, %cst_23 [1] : vector<16x8x8xf32> to vector<16x8xf32>
    %39 = vector.shape_cast %38 : vector<16x8xf32> to vector<16x1x8xf32>
    %40 = vector.broadcast %39 : vector<16x1x8xf32> to vector<16x8x8xf32>
    %41 = arith.subf %37, %40 : vector<16x8x8xf32>
    %42 = math.exp %41 : vector<16x8x8xf32>
    %43 = arith.mulf %42, %17 : vector<16x8x8xf32>
    %cst_24 = arith.constant dense<0.000000e+00> : vector<16x8xf32>
    %44 = vector.multi_reduction <add>, %43, %cst_24 [1] : vector<16x8x8xf32> to vector<16x8xf32>
    %cst_25 = arith.constant dense<0.000000e+00> : vector<16x8xf32>
    %45 = vector.multi_reduction <add>, %42, %cst_25 [1] : vector<16x8x8xf32> to vector<16x8xf32>
    %46 = tpu.reciprocal %45 {approx = true} : vector<16x8xf32> -> vector<16x8xf32>
    %47 = arith.mulf %44, %46 : vector<16x8xf32>
    %48 = arith.truncf %47 : vector<16x8xf32> to vector<16x8xbf16>
    %c0_26 = arith.constant 0 : index
    %c0_27 = arith.constant 0 : index
    %49 = vector.load %arg10[%c0_26, %c0_27] : memref<8x8xbf16, #tpu.memory_space<vmem>>, vector<8x8xbf16>
    %cst_28 = arith.constant dense<0.000000e+00> : vector<16x8xf32>
    %50 = tpu.matmul %48, %49, %cst_28 {dimension_numbers = #tpu.dot_dimension_numbers<[1], [0], [0], [1], [0, 0, 1, 1], [], []>} : vector<16x8xbf16>, vector<8x8xbf16>, vector<16x8xf32> -> vector<16x8xf32>
    %c0_29 = arith.constant 0 : index
    %c0_30 = arith.constant 0 : index
    %51 = vector.load %arg11[%c0_29, %c0_30] : memref<8x8xbf16, #tpu.memory_space<vmem>>, vector<8x8xbf16>
    %cst_31 = arith.constant dense<0.000000e+00> : vector<16x8xf32>
    %52 = tpu.matmul %29, %51, %cst_31 {dimension_numbers = #tpu.dot_dimension_numbers<[1], [0], [0], [1], [0, 0, 1, 1], [], []>} : vector<16x8xbf16>, vector<8x8xbf16>, vector<16x8xf32> -> vector<16x8xf32>
    %53 = arith.addf %50, %52 : vector<16x8xf32>
    %c0_32 = arith.constant 0 : index
    %c0_33 = arith.constant 0 : index
    %54 = vector.load %arg12[%c0_32, %c0_33] : memref<1x8xf32, #tpu.memory_space<vmem>>, vector<1x8xf32>
    %55 = vector.broadcast %54 : vector<1x8xf32> to vector<16x8xf32>
    %56 = arith.addf %53, %55 : vector<16x8xf32>
    %cst_34 = arith.constant 0.000000e+00 : f32
    %57 = vector.broadcast %cst_34 : f32 to vector<16x8xf32>
    %58 = arith.maximumf %56, %57 : vector<16x8xf32>
    %59 = arith.truncf %58 : vector<16x8xf32> to vector<16x8xbf16>
    %c0_35 = arith.constant 0 : index
    %c0_36 = arith.constant 0 : index
    %60 = vector.load %arg13[%c0_35, %c0_36] : memref<8x8xbf16, #tpu.memory_space<vmem>>, vector<8x8xbf16>
    %cst_37 = arith.constant dense<0.000000e+00> : vector<128x8xf32>
    %61 = tpu.matmul %16, %60, %cst_37 {dimension_numbers = #tpu.dot_dimension_numbers<[1], [0], [0], [1], [0, 0, 1, 1], [], []>} : vector<128x8xbf16>, vector<8x8xbf16>, vector<128x8xf32> -> vector<128x8xf32>
    %62 = vector.shape_cast %61 : vector<128x8xf32> to vector<16x8x8xf32>
    %c0_38 = arith.constant 0 : index
    %c0_39 = arith.constant 0 : index
    %63 = vector.load %arg14[%c0_38, %c0_39] : memref<8x8xbf16, #tpu.memory_space<vmem>>, vector<8x8xbf16>
    %cst_40 = arith.constant dense<0.000000e+00> : vector<16x8xf32>
    %64 = tpu.matmul %59, %63, %cst_40 {dimension_numbers = #tpu.dot_dimension_numbers<[1], [0], [0], [1], [0, 0, 1, 1], [], []>} : vector<16x8xbf16>, vector<8x8xbf16>, vector<16x8xf32> -> vector<16x8xf32>
    %65 = vector.shape_cast %64 : vector<16x8xf32> to vector<16x1x8xf32>
    %66 = vector.broadcast %65 : vector<16x1x8xf32> to vector<16x8x8xf32>
    %67 = arith.addf %62, %66 : vector<16x8x8xf32>
    %cst_41 = arith.constant dense<0xFF800000> : vector<16x8xf32>
    %68 = vector.multi_reduction <maximumf>, %67, %cst_41 [1] : vector<16x8x8xf32> to vector<16x8xf32>
    %69 = vector.shape_cast %68 : vector<16x8xf32> to vector<16x1x8xf32>
    %70 = vector.broadcast %69 : vector<16x1x8xf32> to vector<16x8x8xf32>
    %71 = arith.subf %67, %70 : vector<16x8x8xf32>
    %72 = math.exp %71 : vector<16x8x8xf32>
    %73 = arith.mulf %72, %18 : vector<16x8x8xf32>
    %cst_42 = arith.constant dense<0.000000e+00> : vector<16x8xf32>
    %74 = vector.multi_reduction <add>, %73, %cst_42 [1] : vector<16x8x8xf32> to vector<16x8xf32>
    %cst_43 = arith.constant dense<0.000000e+00> : vector<16x8xf32>
    %75 = vector.multi_reduction <add>, %72, %cst_43 [1] : vector<16x8x8xf32> to vector<16x8xf32>
    %76 = tpu.reciprocal %75 {approx = true} : vector<16x8xf32> -> vector<16x8xf32>
    %77 = arith.mulf %74, %76 : vector<16x8xf32>
    %78 = arith.truncf %77 : vector<16x8xf32> to vector<16x8xbf16>
    %c0_44 = arith.constant 0 : index
    %c0_45 = arith.constant 0 : index
    %79 = vector.load %arg15[%c0_44, %c0_45] : memref<8x16xbf16, #tpu.memory_space<vmem>>, vector<8x16xbf16>
    %cst_46 = arith.constant dense<0.000000e+00> : vector<16x16xf32>
    %80 = tpu.matmul %78, %79, %cst_46 {dimension_numbers = #tpu.dot_dimension_numbers<[1], [0], [0], [1], [0, 0, 1, 1], [], []>} : vector<16x8xbf16>, vector<8x16xbf16>, vector<16x16xf32> -> vector<16x16xf32>
    %c0_47 = arith.constant 0 : index
    %c0_48 = arith.constant 0 : index
    %81 = vector.load %arg16[%c0_47, %c0_48] : memref<8x16xbf16, #tpu.memory_space<vmem>>, vector<8x16xbf16>
    %cst_49 = arith.constant dense<0.000000e+00> : vector<16x16xf32>
    %82 = tpu.matmul %59, %81, %cst_49 {dimension_numbers = #tpu.dot_dimension_numbers<[1], [0], [0], [1], [0, 0, 1, 1], [], []>} : vector<16x8xbf16>, vector<8x16xbf16>, vector<16x16xf32> -> vector<16x16xf32>
    %83 = arith.addf %80, %82 : vector<16x16xf32>
    %c0_50 = arith.constant 0 : index
    %c0_51 = arith.constant 0 : index
    %84 = vector.load %arg17[%c0_50, %c0_51] : memref<1x16xf32, #tpu.memory_space<vmem>>, vector<1x16xf32>
    %85 = vector.broadcast %84 : vector<1x16xf32> to vector<16x16xf32>
    %86 = arith.addf %83, %85 : vector<16x16xf32>
    %cst_52 = arith.constant 0.000000e+00 : f32
    %87 = vector.broadcast %cst_52 : f32 to vector<16x16xf32>
    %88 = arith.maximumf %86, %87 : vector<16x16xf32>
    %89 = arith.truncf %88 : vector<16x16xf32> to vector<16x16xbf16>
    %c0_53 = arith.constant 0 : index
    %c0_54 = arith.constant 0 : index
    %90 = vector.load %arg18[%c0_53, %c0_54] : memref<16x32xbf16, #tpu.memory_space<vmem>>, vector<16x32xbf16>
    %cst_55 = arith.constant dense<0.000000e+00> : vector<16x32xf32>
    %91 = tpu.matmul %89, %90, %cst_55 {dimension_numbers = #tpu.dot_dimension_numbers<[1], [0], [0], [1], [0, 0, 1, 1], [], []>} : vector<16x16xbf16>, vector<16x32xbf16>, vector<16x32xf32> -> vector<16x32xf32>
    %c0_56 = arith.constant 0 : index
    %c0_57 = arith.constant 0 : index
    %92 = vector.load %arg19[%c0_56, %c0_57] : memref<8x32xbf16, #tpu.memory_space<vmem>>, vector<8x32xbf16>
    %cst_58 = arith.constant dense<0.000000e+00> : vector<16x32xf32>
    %93 = tpu.matmul %1, %92, %cst_58 {dimension_numbers = #tpu.dot_dimension_numbers<[1], [0], [0], [1], [0, 0, 1, 1], [], []>} : vector<16x8xbf16>, vector<8x32xbf16>, vector<16x32xf32> -> vector<16x32xf32>
    %94 = arith.addf %91, %93 : vector<16x32xf32>
    %c0_59 = arith.constant 0 : index
    %c0_60 = arith.constant 0 : index
    %95 = vector.load %arg20[%c0_59, %c0_60] : memref<1x32xf32, #tpu.memory_space<vmem>>, vector<1x32xf32>
    %96 = vector.broadcast %95 : vector<1x32xf32> to vector<16x32xf32>
    %97 = arith.addf %94, %96 : vector<16x32xf32>
    %cst_61 = arith.constant 0.000000e+00 : f32
    %98 = vector.broadcast %cst_61 : f32 to vector<16x32xf32>
    %99 = arith.cmpf oge, %97, %98 : vector<16x32xf32>
    %cst_62 = arith.constant 0.00999999977 : f32
    %100 = vector.broadcast %cst_62 : f32 to vector<16x32xf32>
    %101 = arith.mulf %100, %97 : vector<16x32xf32>
    %102 = arith.select %99, %97, %101 : vector<16x32xi1>, vector<16x32xf32>
    %103 = tpu.transpose %102, [1, 0] : vector<16x32xf32> -> vector<32x16xf32>
    %c0_63 = arith.constant 0 : index
    %c0_64 = arith.constant 0 : index
    %c0_65 = arith.constant 0 : index
    %104 = vector.load %arg21[%c0_63, %c0_64, %c0_65] : memref<1x32x16xf32, #tpu.memory_space<vmem>>, vector<1x32x16xf32>
    %105 = vector.shape_cast %104 : vector<1x32x16xf32> to vector<32x16xf32>
    %106 = vector.shape_cast %103 : vector<32x16xf32> to vector<1x32x16xf32>
    tpu.vector_store %arg21[%c0_63, %c0_64, %c0_65], %106 {strides = array<i32>} : memref<1x32x16xf32, #tpu.memory_space<vmem>>, vector<1x32x16xf32>,
    return
  }
  func.func @transform_0(%arg0: i32, %arg1: i32) -> (i32, i32, i32) {
    %c0_i32 = arith.constant 0 : i32
    %c0_i32_0 = arith.constant 0 : i32
    return %arg0, %c0_i32, %arg1 : i32, i32, i32
  }
  func.func @transform_1(%arg0: i32, %arg1: i32) -> (i32, i32, i32) {
    %c0_i32 = arith.constant 0 : i32
    %c0_i32_0 = arith.constant 0 : i32
    return %arg0, %arg1, %c0_i32 : i32, i32, i32
  }
  func.func @transform_2(%arg0: i32, %arg1: i32) -> (i32, i32) {
    %c0_i32 = arith.constant 0 : i32
    %c0_i32_0 = arith.constant 0 : i32
    %c0_i32_1 = arith.constant 0 : i32
    return %c0_i32, %c0_i32_0 : i32, i32
  }
  func.func @transform_3(%arg0: i32, %arg1: i32) -> (i32, i32) {
    %c0_i32 = arith.constant 0 : i32
    %c0_i32_0 = arith.constant 0 : i32
    %c0_i32_1 = arith.constant 0 : i32
    return %c0_i32, %c0_i32_0 : i32, i32
  }
  func.func @transform_4(%arg0: i32, %arg1: i32) -> (i32, i32) {
    %c0_i32 = arith.constant 0 : i32
    %c0_i32_0 = arith.constant 0 : i32
    %c0_i32_1 = arith.constant 0 : i32
    return %c0_i32, %c0_i32_0 : i32, i32
  }
  func.func @transform_5(%arg0: i32, %arg1: i32) -> (i32, i32) {
    %c0_i32 = arith.constant 0 : i32
    %c0_i32_0 = arith.constant 0 : i32
    %c0_i32_1 = arith.constant 0 : i32
    return %c0_i32, %c0_i32_0 : i32, i32
  }
  func.func @transform_6(%arg0: i32, %arg1: i32) -> (i32, i32) {
    %c0_i32 = arith.constant 0 : i32
    %c0_i32_0 = arith.constant 0 : i32
    %c0_i32_1 = arith.constant 0 : i32
    return %c0_i32, %c0_i32_0 : i32, i32
  }
  func.func @transform_7(%arg0: i32, %arg1: i32) -> (i32, i32) {
    %c0_i32 = arith.constant 0 : i32
    %c0_i32_0 = arith.constant 0 : i32
    %c0_i32_1 = arith.constant 0 : i32
    return %c0_i32, %c0_i32_0 : i32, i32
  }
  func.func @transform_8(%arg0: i32, %arg1: i32) -> (i32, i32) {
    %c0_i32 = arith.constant 0 : i32
    %c0_i32_0 = arith.constant 0 : i32
    %c0_i32_1 = arith.constant 0 : i32
    return %c0_i32, %c0_i32_0 : i32, i32
  }
  func.func @transform_9(%arg0: i32, %arg1: i32) -> (i32, i32) {
    %c0_i32 = arith.constant 0 : i32
    %c0_i32_0 = arith.constant 0 : i32
    %c0_i32_1 = arith.constant 0 : i32
    return %c0_i32, %c0_i32_0 : i32, i32
  }
  func.func @transform_10(%arg0: i32, %arg1: i32) -> (i32, i32) {
    %c0_i32 = arith.constant 0 : i32
    %c0_i32_0 = arith.constant 0 : i32
    %c0_i32_1 = arith.constant 0 : i32
    return %c0_i32, %c0_i32_0 : i32, i32
  }
  func.func @transform_11(%arg0: i32, %arg1: i32) -> (i32, i32) {
    %c0_i32 = arith.constant 0 : i32
    %c0_i32_0 = arith.constant 0 : i32
    %c0_i32_1 = arith.constant 0 : i32
    return %c0_i32, %c0_i32_0 : i32, i32
  }
  func.func @transform_12(%arg0: i32, %arg1: i32) -> (i32, i32) {
    %c0_i32 = arith.constant 0 : i32
    %c0_i32_0 = arith.constant 0 : i32
    %c0_i32_1 = arith.constant 0 : i32
    return %c0_i32, %c0_i32_0 : i32, i32
  }
  func.func @transform_13(%arg0: i32, %arg1: i32) -> (i32, i32) {
    %c0_i32 = arith.constant 0 : i32
    %c0_i32_0 = arith.constant 0 : i32
    %c0_i32_1 = arith.constant 0 : i32
    return %c0_i32, %c0_i32_0 : i32, i32
  }
  func.func @transform_14(%arg0: i32, %arg1: i32) -> (i32, i32) {
    %c0_i32 = arith.constant 0 : i32
    %c0_i32_0 = arith.constant 0 : i32
    %c0_i32_1 = arith.constant 0 : i32
    return %c0_i32, %c0_i32_0 : i32, i32
  }
  func.func @transform_15(%arg0: i32, %arg1: i32) -> (i32, i32) {
    %c0_i32 = arith.constant 0 : i32
    %c0_i32_0 = arith.constant 0 : i32
    %c0_i32_1 = arith.constant 0 : i32
    return %c0_i32, %c0_i32_0 : i32, i32
  }
  func.func @transform_16(%arg0: i32, %arg1: i32) -> (i32, i32) {
    %c0_i32 = arith.constant 0 : i32
    %c0_i32_0 = arith.constant 0 : i32
    %c0_i32_1 = arith.constant 0 : i32
    return %c0_i32, %c0_i32_0 : i32, i32
  }
  func.func @transform_17(%arg0: i32, %arg1: i32) -> (i32, i32) {
    %c0_i32 = arith.constant 0 : i32
    %c0_i32_0 = arith.constant 0 : i32
    %c0_i32_1 = arith.constant 0 : i32
    return %c0_i32, %c0_i32_0 : i32, i32
  }
  func.func @transform_18(%arg0: i32, %arg1: i32) -> (i32, i32) {
    %c0_i32 = arith.constant 0 : i32
    %c0_i32_0 = arith.constant 0 : i32
    %c0_i32_1 = arith.constant 0 : i32
    return %c0_i32, %c0_i32_0 : i32, i32
  }
  func.func @transform_19(%arg0: i32, %arg1: i32) -> (i32, i32, i32) {
    %c0_i32 = arith.constant 0 : i32
    %c0_i32_0 = arith.constant 0 : i32
    return %arg0, %c0_i32, %arg1 : i32, i32, i32
  }
}

</mosaic_0001>

<bundles_post_ra>
// kernel: tpu_custom_call.1
= control target key start
LH: loop header
LB: loop body
LE: loop exit
PB: predicated region body
PF: predicated region fallthrough
CT: control target
= control target key end

     0   :  { %s6339_s0 = inlined_call_operand.hbm [shape: f32[2,10,128], index: 0, kind: input, shape index: {}]   ;;  %s6340_s1 = inlined_call_operand.hbm [shape: bf16[2,16,8], index: 1, kind: input, shape index: {}]   ;;  %s6341_s2 = inlined_call_operand.hbm [shape: f32[16,10], index: 2, kind: input, shape index: {}]   ;;  %s6342_s3 = inlined_call_operand.hbm [shape: f32[16,1], index: 3, kind: input, shape index: {}]   ;;  %s6343_s4 = inlined_call_operand.hbm [shape: bf16[8,8], index: 4, kind: input, shape index: {}]   ;;  %s6344_s5 = inlined_call_operand.hbm [shape: f32[1,8], index: 5, kind: input, shape index: {}]   ;;  %s6345_s6 = inlined_call_operand.hbm [shape: bf16[8,8], index: 6, kind: input, shape index: {}]   ;;  %s6346_s7 = inlined_call_operand.hbm [shape: bf16[8,8], index: 7, kind: input, shape index: {}]   ;;  %s6347_s8 = inlined_call_operand.hbm [shape: bf16[8,8], index: 8, kind: input, shape index: {}]   ;;  %s6348_s9 = inlined_call_operand.hbm [shape: bf16[8,8], index: 9, kind: input, shape index: {}]   ;;  %s6349_s10 = inlined_call_operand.hbm [shape: f32[1,8], index: 10, kind: input, shape index: {}]   ;;  %s6350_s11 = inlined_call_operand.hbm [shape: bf16[8,8], index: 11, kind: input, shape index: {}]   ;;  %s6351_s12 = inlined_call_operand.hbm [shape: bf16[8,8], index: 12, kind: input, shape index: {}]   ;;  %s6352_s13 = inlined_call_operand.hbm [shape: bf16[8,16], index: 13, kind: input, shape index: {}]   ;;  %s6353_s14 = inlined_call_operand.hbm [shape: bf16[8,16], index: 14, kind: input, shape index: {}]   ;;  %s6354_s15 = inlined_call_operand.hbm [shape: f32[1,16], index: 15, kind: input, shape index: {}]   ;;  %s6355_s16 = inlined_call_operand.hbm [shape: bf16[16,32], index: 16, kind: input, shape index: {}]   ;;  %s6356_s17 = inlined_call_operand.hbm [shape: bf16[8,32], index: 17, kind: input, shape index: {}]   ;;  %s6357_s18 = inlined_call_operand.hbm [shape: f32[1,32], index: 18, kind: input, shape index: {}]   ;;  %s6358_s19 = inlined_call_operand.hbm [shape: f32[2,32,16], index: 19, kind: output, shape index: {}]  }
   0x1   :  { %6392 = sst [smem:[#allocation62_spill]] %s6339_s0 }
   0x2   :  { %6393 = sst [smem:[#allocation63_spill]] %s6340_s1 }
   0x3   :  { %6394 = sst [smem:[#allocation64_spill]] %s6341_s2 }
   0x4   :  { %6395 = sst [smem:[#allocation65_spill]] %s6342_s3 }
   0x5   :  { %6396 = sst [smem:[#allocation66_spill]] %s6343_s4 }
   0x6   :  { %6397 = sst [smem:[#allocation67_spill]] %s6344_s5 }
   0x7   :  { %6398 = sst [smem:[#allocation68_spill]] %s6345_s6 }
   0x8   :  { %6399 = sst [smem:[#allocation69_spill]] %s6346_s7 }
   0x9   :  { %6400 = sst [smem:[#allocation70_spill]] %s6347_s8 }
   0xa   :  { %6401 = sst [smem:[#allocation71_spill]] %s6348_s9 }
   0xb   :  { %6402 = sst [smem:[#allocation72_spill]] %s6349_s10 }
   0xc   :  { %6403 = sst [smem:[#allocation73_spill]] %s6350_s11 }
   0xd   :  { %6404 = sst [smem:[#allocation74_spill]] %s6351_s12 }
   0xe   :  { %6405 = sst [smem:[#allocation75_spill]] %s6352_s13 }
   0xf   :  { %6406 = sst [smem:[#allocation76_spill]] %s6353_s14 }
  0x10   :  { %6407 = sst [smem:[#allocation77_spill]] %s6354_s15 }
  0x11   :  { %6408 = sst [smem:[#allocation78_spill]] %s6355_s16 }
  0x12   :  { %6409 = sst [smem:[#allocation79_spill]] %s6356_s17 }
  0x13   :  { %6410 = sst [smem:[#allocation80_spill]] %s6357_s18 }
  0x14   :  { %6411 = sst [smem:[#allocation81_spill]] %s6358_s19 }
  0x15   :  { %24 = vsyncpa [#allocation3], 0 }
  0x16   :  { %26 = vsyncpa [#allocation3 + $0x1], 0 }
  0x17   :  { %27 = vsyncpa [#allocation6], 0 }
  0x18   :  { %29 = vsyncpa [#allocation6 + $0x1], 0 }
  0x19   :  { %30 = vsyncpa [#allocation9], 0 }
  0x1a   :  { %31 = vsyncpa [#allocation12], 0 }
  0x1b   :  { %32 = vsyncpa [#allocation15], 0 }
  0x1c   :  { %33 = vsyncpa [#allocation18], 0 }
  0x1d   :  { %34 = vsyncpa [#allocation21], 0 }
  0x1e   :  { %35 = vsyncpa [#allocation24], 0 }
  0x1f   :  { %36 = vsyncpa [#allocation27], 0 }
  0x20   :  { %37 = vsyncpa [#allocation30], 0 }
  0x21   :  { %38 = vsyncpa [#allocation4], 0 }
  0x22   :  { %40 = vsyncpa [#allocation4 + $0x1], 0  ;;  %s4946_s0 = smov 0   ;;  %s4948_s30 = smov 0  }
  0x23   :  { %s4950_s20 = smov 0   ;;  %s4952_s21 = smov 0  }
  0x24   :  { %s4954_s1 = smov 0   ;;  %s4956_s22 = smov 0  }
  0x25 LB: > { %6412 = sst [smem:[#allocation45_spill]] %s4793_s0  ;;  %s4977_s2 = sadd.s32 4294967295, %s4813_s22   ;;  %s4813_s22 = sphi %s4956_s22, %s46_s22   ;;  %s4809_s1 = sphi %s4954_s1, %s6524_s1   ;;  %s4805_s21 = sphi %s4952_s21, %s6520_s21   ;;  %s4801_s20 = sphi %s4950_s20, %s6523_s20   ;;  %s4797_s30 = sphi %s4948_s30, %s6522_s30   ;;  %s4793_s0 = sphi %s4946_s0, %s6518_s0  }
  0x26   : > { %6413 = sst [smem:[#allocation46_spill]] %s4797_s30  ;;  %p3540_p0 = scmp.ge.s32.totalorder %s4813_s22, 1 }
  0x27   : > { %6414 = sst [smem:[#allocation47_spill]] %s4801_s20  ;;  %p6376_p1 = scmp.eq.s32.totalorder %s4977_s2, 0 }
  0x28   : > { %6415 = sst [smem:[#allocation48_spill]] %s4805_s21  ;;  %p504_p2 = scmp.lt.s32.totalorder %s4813_s22, 3 }
  0x29   : > { %6416 = sst [smem:[#allocation49_spill]] %s4809_s1  ;;  %s4815_s24 = smov [#allocation7]  }
  0x2a   : > { %6417 = sst [smem:[#allocation50_spill]] %s4813_s22  ;;  %p4982_p3 = pnand %p3540_p0, %p504_p2 }
  0x2b   : > { %6418 = sst [smem:[#allocation51_spill]] %s4977_s2  ;;  %s516_s25 = sshll.u32 %s4815_s24, 4  ;;  %s4986_s25 = int_to_ptr.vmem [resolvable:$true] %s516_s25 }
  0x2c   : > { %s6419_s23 = scalar_select %p4982_p3, 1, 0 }
  0x2d   : > { %p3847_p4 = pneg %p4982_p3  ;;  %s4816_s26 = smov [#allocation8]  }
  0x2e   : > { %6420 = sst [smem:[#allocation52_spill]] %s6419_s23  ;;  %s529_s27 = sshll.u32 %s4816_s26, 4  ;;  %s4997_s27 = int_to_ptr.vmem [resolvable:$true] %s529_s27 }
  0x2f   : > { %p4993_p6 = pnand %p3847_p4, %p6376_p1  ;;  %s4817_s28 = smov [#allocation11]  }
  0x30   : > { %s4999_s29 = sshll.u32 %s4817_s28, 4  ;;  %s6422_s21 = sld [smem:[#allocation64_spill]]  ;;  %s555_s29 = int_to_ptr.vmem [resolvable:$true] %s4999_s29 }
  0x31   : > { %p5009_p8 = pneg %p4993_p6 }
  0x36   : > { %s6423_s18 = smov %s6422_s21  ;;  %s4155_s0 = scalar_lea.hbm %s6422_s21, 256 }
  0x37   : > { %p4156_p7 = scmp.ne.s32.totalorder %s6423_s18, %s4155_s0  ;;  %p4162_p11 = scmp.lt.u32.totalorder %s4155_s0, %s6423_s18 }
  0x39   : > { %p4158_p9 = pnand %p5009_p8, %p4156_p7 }
  0x3b   : > { %p4159_p10 = pneg %p4158_p9 }
  0x3d   : > { %p4164_p12 = pnand %p4162_p11, %p4159_p10 }
  0x3f   : > { %4167 = shalt.err (!%p4164_p12)
}
  0x40   : > { %s4168_s19 = scalar_lea.vmem %s4986_s25, 256  ;;  %p4176_p4 = scmp.lt.s32.totalorder %s4986_s25, %s4986_s25 }
  0x41   : > { %p4169_p13 = scmp.ne.s32.totalorder %s4986_s25, %s4168_s19  ;;  %p4177_p5 = scmp.lt.s32.totalorder %s4168_s19, %s4168_s19 }
  0x43   : > { %p4171_p0 = pnand %p4169_p13, %p5009_p8  ;;  %p4178_p7 = por %p4177_p5, %p4176_p4 }
  0x45   : > { %p4172_p2 = pneg %p4171_p0 }
  0x47   : > { %p4179_p9 = pnand %p4178_p7, %p4172_p2 }
  0x49   : > { %4182 = shalt.err (!%p4179_p9)
}
  0x4a   : > { %s6378_s30 = smov 128   ;;  %s6379_s0 = smov 8  }
  0x4b   : > { %3850 = dma.hbm_to_vmem [thread:$0]  (!%p4993_p6), %s6423_s18, 256, %s4986_s25, [#allocation6], %s6378_s30, %s6378_s30, %s6379_s0  }
  0x4c   : > { %s6425_s28 = sld [smem:[#allocation65_spill]] }
  0x52   : > { %s4183_s19 = scalar_lea.hbm %s6425_s28, 256 }
  0x53   : > { %p4184_p5 = scmp.ne.s32.totalorder %s6425_s28, %s4183_s19  ;;  %p4190_p12 = scmp.lt.u32.totalorder %s4183_s19, %s6425_s28 }
  0x55   : > { %p4186_p10 = pnand %p4184_p5, %p5009_p8 }
  0x57   : > { %p4187_p11 = pneg %p4186_p10 }
  0x59   : > { %p4192_p13 = pnand %p4190_p12, %p4187_p11 }
  0x5b   : > { %4195 = shalt.err (!%p4192_p13)
}
  0x5c   : > { %s4196_s25 = scalar_lea.vmem %s4997_s27, 256  ;;  %p4204_p7 = scmp.lt.s32.totalorder %s4997_s27, %s4997_s27 }
  0x5d   : > { %p4197_p0 = scmp.ne.s32.totalorder %s4997_s27, %s4196_s25  ;;  %p4205_p9 = scmp.lt.s32.totalorder %s4196_s25, %s4196_s25 }
  0x5f   : > { %p4199_p2 = pnand %p4197_p0, %p5009_p8  ;;  %p4206_p5 = por %p4205_p9, %p4204_p7 }
  0x61   : > { %p4200_p4 = pneg %p4199_p2 }
  0x63   : > { %p4207_p10 = pnand %p4206_p5, %p4200_p4 }
  0x65   : > { %4210 = shalt.err (!%p4207_p10)
}
  0x66   : > { %3853 = dma.hbm_to_vmem [thread:$0]  (!%p4993_p6), %s6425_s28, 256, %s4997_s27, [#allocation9], %s6378_s30, %s6378_s30, %s6379_s0  }
  0x67   : > { %s6426_s5 = sld [smem:[#allocation67_spill]] }
  0x6d   : > { %s4211_s21 = scalar_lea.hbm %s6426_s5, 16 }
  0x6e   : > { %p4212_p11 = scmp.ne.s32.totalorder %s6426_s5, %s4211_s21  ;;  %p4218_p0 = scmp.lt.u32.totalorder %s4211_s21, %s6426_s5 }
  0x70   : > { %p4214_p12 = pnand %p4212_p11, %p5009_p8 }
  0x72   : > { %p4215_p13 = pneg %p4214_p12 }
  0x74   : > { %p4220_p2 = pnand %p4218_p0, %p4215_p13 }
  0x76   : > { %4223 = shalt.err (!%p4220_p2)
}
  0x77   : > { %s4224_s25 = scalar_lea.vmem %s555_s29, 16  ;;  %s4231_s27 = scalar_lea.vmem %s555_s29, 32 }
  0x78   : > { %p4225_p4 = scmp.ne.s32.totalorder %s555_s29, %s4224_s25  ;;  %p4232_p5 = scmp.lt.s32.totalorder %s555_s29, %s555_s29 }
  0x79   : > { %p4233_p10 = scmp.lt.s32.totalorder %s4231_s27, %s4224_s25 }
  0x7a   : > { %p4227_p7 = pnand %p4225_p4, %p5009_p8 }
  0x7b   : > { %p4234_p1 = por %p4233_p10, %p4232_p5 }
  0x7c   : > { %p4228_p9 = pneg %p4227_p7 }
  0x7e   : > { %p4235_p3 = pnand %p4234_p1, %p4228_p9 }
  0x80   : > { %4238 = shalt.err (!%p4235_p3)
}
  0x81   : > { %3859 = dma.hbm_to_vmem [thread:$0]  (!%p4993_p6), %s6426_s5, 16, %s555_s29, [#allocation12]  }
  0x82   : > { %s4820_s1 = smov [#allocation14]   ;;  %s4821_s21 = smov [#allocation17]  }
  0x83   : > { %s576_s22 = sshll.u32 %s4820_s1, 4  ;;  %s598_s23 = sshll.u32 %s4821_s21, 4  ;;  %s577_s22 = int_to_ptr.vmem [resolvable:$true] %s576_s22  ;;  %s599_s23 = int_to_ptr.vmem [resolvable:$true] %s598_s23 }
  0x84   : > { %s6427_s7 = sld [smem:[#allocation69_spill]] }
  0x8a   : > { %s4239_s19 = scalar_lea.hbm %s6427_s7, 64 }
  0x8b   : > { %p4240_p1 = scmp.ne.s32.totalorder %s6427_s7, %s4239_s19  ;;  %p4246_p12 = scmp.lt.u32.totalorder %s4239_s19, %s6427_s7 }
  0x8d   : > { %p4242_p3 = pnand %p4240_p1, %p5009_p8 }
  0x8f   : > { %p4243_p11 = pneg %p4242_p3 }
  0x91   : > { %p4248_p13 = pnand %p4246_p12, %p4243_p11 }
  0x93   : > { %4251 = shalt.err (!%p4248_p13)
}
  0x94   : > { %s4252_s29 = scalar_lea.vmem %s577_s22, 64  ;;  %p4260_p7 = scmp.lt.s32.totalorder %s577_s22, %s577_s22 }
  0x95   : > { %p4253_p0 = scmp.ne.s32.totalorder %s577_s22, %s4252_s29  ;;  %p4261_p9 = scmp.lt.s32.totalorder %s4252_s29, %s4252_s29 }
  0x97   : > { %p4255_p2 = pnand %p4253_p0, %p5009_p8  ;;  %p4262_p5 = por %p4261_p9, %p4260_p7 }
  0x99   : > { %p4256_p4 = pneg %p4255_p2 }
  0x9b   : > { %p4263_p10 = pnand %p4262_p5, %p4256_p4 }
  0x9d   : > { %4266 = shalt.err (!%p4263_p10)
}
  0x9e   : > { %3865 = dma.hbm_to_vmem [thread:$0]  (!%p4993_p6), %s6427_s7, 64, %s577_s22, [#allocation15]  }
  0x9f   : > { %s6428_s9 = sld [smem:[#allocation71_spill]] }
  0xa5   : > { %s4267_s24 = scalar_lea.hbm %s6428_s9, 64 }
  0xa6   : > { %p4268_p1 = scmp.ne.s32.totalorder %s6428_s9, %s4267_s24  ;;  %p4274_p12 = scmp.lt.u32.totalorder %s4267_s24, %s6428_s9 }
  0xa8   : > { %p4270_p3 = pnand %p4268_p1, %p5009_p8 }
  0xaa   : > { %p4271_p11 = pneg %p4270_p3 }
  0xac   : > { %p4276_p13 = pnand %p4274_p12, %p4271_p11 }
  0xae   : > { %4279 = shalt.err (!%p4276_p13)
}
  0xaf   : > { %s4280_s16 = scalar_lea.vmem %s599_s23, 64  ;;  %p4288_p7 = scmp.lt.s32.totalorder %s599_s23, %s599_s23 }
  0xb0   : > { %p4281_p0 = scmp.ne.s32.totalorder %s599_s23, %s4280_s16  ;;  %p4289_p9 = scmp.lt.s32.totalorder %s4280_s16, %s4280_s16 }
  0xb2   : > { %p4283_p2 = pnand %p4281_p0, %p5009_p8  ;;  %p4290_p5 = por %p4289_p9, %p4288_p7 }
  0xb4   : > { %p4284_p4 = pneg %p4283_p2 }
  0xb6   : > { %p4291_p10 = pnand %p4290_p5, %p4284_p4 }
  0xb8   : > { %4294 = shalt.err (!%p4291_p10)
}
  0xb9   : > { %3871 = dma.hbm_to_vmem [thread:$0]  (!%p4993_p6), %s6428_s9, 64, %s599_s23, [#allocation18]  }
  0xba   : > { %s4822_s20 = smov [#allocation20]   ;;  %s4823_s30 = smov [#allocation23]  }
  0xbb   : > { %s620_s1 = sshll.u32 %s4822_s20, 4  ;;  %s642_s21 = sshll.u32 %s4823_s30, 4  ;;  %s621_s1 = int_to_ptr.vmem [resolvable:$true] %s620_s1  ;;  %s643_s21 = int_to_ptr.vmem [resolvable:$true] %s642_s21 }
  0xbc   : > { %s6429_s11 = sld [smem:[#allocation73_spill]] }
  0xc2   : > { %s4295_s19 = scalar_lea.hbm %s6429_s11, 64 }
  0xc3   : > { %p4296_p1 = scmp.ne.s32.totalorder %s6429_s11, %s4295_s19  ;;  %p4302_p12 = scmp.lt.u32.totalorder %s4295_s19, %s6429_s11 }
  0xc5   : > { %p4298_p3 = pnand %p4296_p1, %p5009_p8 }
  0xc7   : > { %p4299_p11 = pneg %p4298_p3 }
  0xc9   : > { %p4304_p13 = pnand %p4302_p12, %p4299_p11 }
  0xcb   : > { %4307 = shalt.err (!%p4304_p13)
}
  0xcc   : > { %s4308_s23 = scalar_lea.vmem %s621_s1, 64  ;;  %p4316_p7 = scmp.lt.s32.totalorder %s621_s1, %s621_s1 }
  0xcd   : > { %p4309_p0 = scmp.ne.s32.totalorder %s621_s1, %s4308_s23  ;;  %p4317_p9 = scmp.lt.s32.totalorder %s4308_s23, %s4308_s23 }
  0xcf   : > { %p4311_p2 = pnand %p4309_p0, %p5009_p8  ;;  %p4318_p5 = por %p4317_p9, %p4316_p7 }
  0xd1   : > { %p4312_p4 = pneg %p4311_p2 }
  0xd3   : > { %p4319_p10 = pnand %p4318_p5, %p4312_p4 }
  0xd5   : > { %4322 = shalt.err (!%p4319_p10)
}
  0xd6   : > { %3877 = dma.hbm_to_vmem [thread:$0]  (!%p4993_p6), %s6429_s11, 64, %s621_s1, [#allocation21]  }
  0xd7   : > { %s6430_s13 = sld [smem:[#allocation75_spill]] }
  0xdd   : > { %s4323_s26 = scalar_lea.hbm %s6430_s13, 64 }
  0xde   : > { %p4324_p1 = scmp.ne.s32.totalorder %s6430_s13, %s4323_s26  ;;  %p4330_p12 = scmp.lt.u32.totalorder %s4323_s26, %s6430_s13 }
  0xe0   : > { %p4326_p3 = pnand %p4324_p1, %p5009_p8 }
  0xe2   : > { %p4327_p11 = pneg %p4326_p3 }
  0xe4   : > { %p4332_p13 = pnand %p4330_p12, %p4327_p11 }
  0xe6   : > { %4335 = shalt.err (!%p4332_p13)
}
  0xe7   : > { %s4336_s22 = scalar_lea.vmem %s643_s21, 64  ;;  %p4344_p7 = scmp.lt.s32.totalorder %s643_s21, %s643_s21 }
  0xe8   : > { %p4337_p0 = scmp.ne.s32.totalorder %s643_s21, %s4336_s22  ;;  %p4345_p9 = scmp.lt.s32.totalorder %s4336_s22, %s4336_s22 }
  0xea   : > { %p4339_p2 = pnand %p4337_p0, %p5009_p8  ;;  %p4346_p5 = por %p4345_p9, %p4344_p7 }
  0xec   : > { %p4340_p4 = pneg %p4339_p2 }
  0xee   : > { %p4347_p10 = pnand %p4346_p5, %p4340_p4 }
  0xf0   : > { %4350 = shalt.err (!%p4347_p10)
}
  0xf1   : > { %3883 = dma.hbm_to_vmem [thread:$0]  (!%p4993_p6), %s6430_s13, 64, %s643_s21, [#allocation24]  }
  0xf2   : > { %s4824_s29 = smov [#allocation26]   ;;  %s4825_s30 = smov [#allocation29]  }
  0xf3   : > { %s664_s20 = sshll.u32 %s4824_s29, 4  ;;  %s688_s24 = sshll.u32 %s4825_s30, 4  ;;  %s665_s20 = int_to_ptr.vmem [resolvable:$true] %s664_s20  ;;  %s689_s24 = int_to_ptr.vmem [resolvable:$true] %s688_s24 }
  0xf4   : > { %s6431_s15 = sld [smem:[#allocation77_spill]] }
  0xfa   : > { %s4351_s25 = scalar_lea.hbm %s6431_s15, 16 }
  0xfb   : > { %p4352_p1 = scmp.ne.s32.totalorder %s6431_s15, %s4351_s25  ;;  %p4358_p12 = scmp.lt.u32.totalorder %s4351_s25, %s6431_s15 }
  0xfd   : > { %p4354_p3 = pnand %p4352_p1, %p5009_p8 }
  0xff   : > { %p4355_p11 = pneg %p4354_p3 }
 0x101   : > { %p4360_p13 = pnand %p4358_p12, %p4355_p11 }
 0x103   : > { %4363 = shalt.err (!%p4360_p13)
}
 0x104   : > { %s4364_s21 = scalar_lea.vmem %s665_s20, 16  ;;  %s4371_s23 = scalar_lea.vmem %s665_s20, 32 }
 0x105   : > { %p4365_p0 = scmp.ne.s32.totalorder %s665_s20, %s4364_s21  ;;  %p4372_p7 = scmp.lt.s32.totalorder %s665_s20, %s665_s20 }
 0x106   : > { %p4373_p9 = scmp.lt.s32.totalorder %s4371_s23, %s4364_s21 }
 0x107   : > { %p4367_p2 = pnand %p4365_p0, %p5009_p8 }
 0x108   : > { %p4374_p5 = por %p4373_p9, %p4372_p7 }
 0x109   : > { %p4368_p4 = pneg %p4367_p2 }
 0x10b   : > { %p4375_p10 = pnand %p4374_p5, %p4368_p4 }
 0x10d   : > { %4378 = shalt.err (!%p4375_p10)
}
 0x10e   : > { %3889 = dma.hbm_to_vmem [thread:$0]  (!%p4993_p6), %s6431_s15, 16, %s665_s20, [#allocation27]  }
 0x10f   : > { %s6432_s17 = sld [smem:[#allocation79_spill]] }
 0x115   : > { %s4379_s25 = scalar_lea.hbm %s6432_s17, 64 }
 0x116   : > { %p4380_p1 = scmp.ne.s32.totalorder %s6432_s17, %s4379_s25  ;;  %p4386_p12 = scmp.lt.u32.totalorder %s4379_s25, %s6432_s17 }
 0x118   : > { %p4382_p3 = pnand %p4380_p1, %p5009_p8 }
 0x11a   : > { %p4383_p11 = pneg %p4382_p3 }
 0x11c   : > { %p4388_p13 = pnand %p4386_p12, %p4383_p11 }
 0x11e   : > { %4391 = shalt.err (!%p4388_p13)
}
 0x11f   : > { %s4392_s21 = scalar_lea.vmem %s689_s24, 64  ;;  %p4400_p7 = scmp.lt.s32.totalorder %s689_s24, %s689_s24 }
 0x120   : > { %p4393_p0 = scmp.ne.s32.totalorder %s689_s24, %s4392_s21  ;;  %p4401_p9 = scmp.lt.s32.totalorder %s4392_s21, %s4392_s21 }
 0x122   : > { %p4395_p2 = pnand %p4393_p0, %p5009_p8  ;;  %p4402_p5 = por %p4401_p9, %p4400_p7 }
 0x124   : > { %p4396_p4 = pneg %p4395_p2 }
 0x126   : > { %p4403_p10 = pnand %p4402_p5, %p4396_p4 }
 0x128   : > { %4406 = shalt.err (!%p4403_p10)
}
 0x129   : > { %3895 = dma.hbm_to_vmem [thread:$0]  (!%p4993_p6), %s6432_s17, 64, %s689_s24, [#allocation30]  }
 0x12a   : > { %s4826_s29 = smov [#allocation10]   ;;  %s4827_s26 = smov [#allocation13]  }
 0x12b   : > { %s543_s30 = sshll.u32 %s4826_s29, 4  ;;  %s565_s19 = sshll.u32 %s4827_s26, 4  ;;  %s544_s30 = int_to_ptr.vmem [resolvable:$true] %s543_s30  ;;  %s566_s19 = int_to_ptr.vmem [resolvable:$true] %s565_s19 }
 0x12c   : > { %s6433_s4 = sld [smem:[#allocation66_spill]] }
 0x132   : > { %s4407_s16 = scalar_lea.hbm %s6433_s4, 64 }
 0x133   : > { %p4408_p1 = scmp.ne.s32.totalorder %s6433_s4, %s4407_s16  ;;  %p4414_p12 = scmp.lt.u32.totalorder %s4407_s16, %s6433_s4 }
 0x135   : > { %p4410_p3 = pnand %p4408_p1, %p5009_p8 }
 0x137   : > { %p4411_p11 = pneg %p4410_p3 }
 0x139   : > { %p4416_p13 = pnand %p4414_p12, %p4411_p11 }
 0x13b   : > { %4419 = shalt.err (!%p4416_p13)
}
 0x13c   : > { %s4420_s24 = scalar_lea.vmem %s544_s30, 64  ;;  %p4428_p7 = scmp.lt.s32.totalorder %s544_s30, %s544_s30 }
 0x13d   : > { %p4421_p0 = scmp.ne.s32.totalorder %s544_s30, %s4420_s24  ;;  %p4429_p9 = scmp.lt.s32.totalorder %s4420_s24, %s4420_s24 }
 0x13f   : > { %p4423_p2 = pnand %p4421_p0, %p5009_p8  ;;  %p4430_p5 = por %p4429_p9, %p4428_p7 }
 0x141   : > { %p4424_p4 = pneg %p4423_p2 }
 0x143   : > { %p4431_p10 = pnand %p4430_p5, %p4424_p4 }
 0x145   : > { %4434 = shalt.err (!%p4431_p10)
}
 0x146   : > { %3856 = dma.hbm_to_vmem [thread:$0]  (!%p4993_p6), %s6433_s4, 64, %s544_s30, [#allocation9]  }
 0x147   : > { %s6434_s6 = sld [smem:[#allocation68_spill]] }
 0x14d   : > { %s4435_s27 = scalar_lea.hbm %s6434_s6, 64 }
 0x14e   : > { %p4436_p1 = scmp.ne.s32.totalorder %s6434_s6, %s4435_s27  ;;  %p4442_p12 = scmp.lt.u32.totalorder %s4435_s27, %s6434_s6 }
 0x150   : > { %p4438_p3 = pnand %p4436_p1, %p5009_p8 }
 0x152   : > { %p4439_p11 = pneg %p4438_p3 }
 0x154   : > { %p4444_p13 = pnand %p4442_p12, %p4439_p11 }
 0x156   : > { %4447 = shalt.err (!%p4444_p13)
}
 0x157   : > { %s4448_s20 = scalar_lea.vmem %s566_s19, 64  ;;  %p4456_p7 = scmp.lt.s32.totalorder %s566_s19, %s566_s19 }
 0x158   : > { %p4449_p0 = scmp.ne.s32.totalorder %s566_s19, %s4448_s20  ;;  %p4457_p9 = scmp.lt.s32.totalorder %s4448_s20, %s4448_s20 }
 0x15a   : > { %p4451_p2 = pnand %p4449_p0, %p5009_p8  ;;  %p4458_p5 = por %p4457_p9, %p4456_p7 }
 0x15c   : > { %p4452_p4 = pneg %p4451_p2 }
 0x15e   : > { %p4459_p10 = pnand %p4458_p5, %p4452_p4 }
 0x160   : > { %4462 = shalt.err (!%p4459_p10)
}
 0x161   : > { %3862 = dma.hbm_to_vmem [thread:$0]  (!%p4993_p6), %s6434_s6, 64, %s566_s19, [#allocation12]  }
 0x162   : > { %s4828_s23 = smov [#allocation16]   ;;  %s4829_s26 = smov [#allocation19]  }
 0x163   : > { %s587_s29 = sshll.u32 %s4828_s23, 4  ;;  %s609_s25 = sshll.u32 %s4829_s26, 4  ;;  %s588_s29 = int_to_ptr.vmem [resolvable:$true] %s587_s29  ;;  %s610_s25 = int_to_ptr.vmem [resolvable:$true] %s609_s25 }
 0x164   : > { %s6435_s8 = sld [smem:[#allocation70_spill]] }
 0x16a   : > { %s4463_s22 = scalar_lea.hbm %s6435_s8, 64 }
 0x16b   : > { %p4464_p1 = scmp.ne.s32.totalorder %s6435_s8, %s4463_s22  ;;  %p4470_p12 = scmp.lt.u32.totalorder %s4463_s22, %s6435_s8 }
 0x16d   : > { %p4466_p3 = pnand %p4464_p1, %p5009_p8 }
 0x16f   : > { %p4467_p11 = pneg %p4466_p3 }
 0x171   : > { %p4472_p13 = pnand %p4470_p12, %p4467_p11 }
 0x173   : > { %4475 = shalt.err (!%p4472_p13)
}
 0x174   : > { %s4476_s19 = scalar_lea.vmem %s588_s29, 64  ;;  %p4484_p7 = scmp.lt.s32.totalorder %s588_s29, %s588_s29 }
 0x175   : > { %p4477_p0 = scmp.ne.s32.totalorder %s588_s29, %s4476_s19  ;;  %p4485_p9 = scmp.lt.s32.totalorder %s4476_s19, %s4476_s19 }
 0x177   : > { %p4479_p2 = pnand %p4477_p0, %p5009_p8  ;;  %p4486_p5 = por %p4485_p9, %p4484_p7 }
 0x179   : > { %p4480_p4 = pneg %p4479_p2 }
 0x17b   : > { %p4487_p10 = pnand %p4486_p5, %p4480_p4 }
 0x17d   : > { %4490 = shalt.err (!%p4487_p10)
}
 0x17e   : > { %3868 = dma.hbm_to_vmem [thread:$0]  (!%p4993_p6), %s6435_s8, 64, %s588_s29, [#allocation15]  }
 0x17f   : > { %s6436_s10 = sld [smem:[#allocation72_spill]] }
 0x185   : > { %s4491_s16 = scalar_lea.hbm %s6436_s10, 16 }
 0x186   : > { %p4492_p1 = scmp.ne.s32.totalorder %s6436_s10, %s4491_s16  ;;  %p4498_p12 = scmp.lt.u32.totalorder %s4491_s16, %s6436_s10 }
 0x188   : > { %p4494_p3 = pnand %p4492_p1, %p5009_p8 }
 0x18a   : > { %p4495_p11 = pneg %p4494_p3 }
 0x18c   : > { %p4500_p13 = pnand %p4498_p12, %p4495_p11 }
 0x18e   : > { %4503 = shalt.err (!%p4500_p13)
}
 0x18f   : > { %s4504_s30 = scalar_lea.vmem %s610_s25, 16  ;;  %s4511_s29 = scalar_lea.vmem %s610_s25, 32 }
 0x190   : > { %p4505_p0 = scmp.ne.s32.totalorder %s610_s25, %s4504_s30  ;;  %p4512_p7 = scmp.lt.s32.totalorder %s610_s25, %s610_s25 }
 0x191   : > { %p4513_p9 = scmp.lt.s32.totalorder %s4511_s29, %s4504_s30 }
 0x192   : > { %p4507_p2 = pnand %p4505_p0, %p5009_p8 }
 0x193   : > { %p4514_p5 = por %p4513_p9, %p4512_p7 }
 0x194   : > { %p4508_p4 = pneg %p4507_p2 }
 0x196   : > { %p4515_p10 = pnand %p4514_p5, %p4508_p4 }
 0x198   : > { %4518 = shalt.err (!%p4515_p10)
}
 0x199   : > { %3874 = dma.hbm_to_vmem [thread:$0]  (!%p4993_p6), %s6436_s10, 16, %s610_s25, [#allocation18]  }
 0x19a   : > { %s4830_s23 = smov [#allocation22]   ;;  %s4831_s27 = smov [#allocation25]  }
 0x19b   : > { %s631_s26 = sshll.u32 %s4830_s23, 4  ;;  %s653_s16 = sshll.u32 %s4831_s27, 4  ;;  %s632_s26 = int_to_ptr.vmem [resolvable:$true] %s631_s26  ;;  %s654_s16 = int_to_ptr.vmem [resolvable:$true] %s653_s16 }
 0x19c   : > { %s6437_s12 = sld [smem:[#allocation74_spill]] }
 0x1a2   : > { %s4519_s21 = scalar_lea.hbm %s6437_s12, 64 }
 0x1a3   : > { %p4520_p1 = scmp.ne.s32.totalorder %s6437_s12, %s4519_s21  ;;  %p4526_p12 = scmp.lt.u32.totalorder %s4519_s21, %s6437_s12 }
 0x1a5   : > { %p4522_p3 = pnand %p4520_p1, %p5009_p8 }
 0x1a7   : > { %p4523_p11 = pneg %p4522_p3 }
 0x1a9   : > { %p4528_p13 = pnand %p4526_p12, %p4523_p11 }
 0x1ab   : > { %4531 = shalt.err (!%p4528_p13)
}
 0x1ac   : > { %s4532_s25 = scalar_lea.vmem %s632_s26, 64  ;;  %p4540_p7 = scmp.lt.s32.totalorder %s632_s26, %s632_s26 }
 0x1ad   : > { %p4533_p0 = scmp.ne.s32.totalorder %s632_s26, %s4532_s25  ;;  %p4541_p9 = scmp.lt.s32.totalorder %s4532_s25, %s4532_s25 }
 0x1af   : > { %p4535_p2 = pnand %p4533_p0, %p5009_p8  ;;  %p4542_p5 = por %p4541_p9, %p4540_p7 }
 0x1b1   : > { %p4536_p4 = pneg %p4535_p2 }
 0x1b3   : > { %p4543_p10 = pnand %p4542_p5, %p4536_p4 }
 0x1b5   : > { %4546 = shalt.err (!%p4543_p10)
}
 0x1b6   : > { %3880 = dma.hbm_to_vmem [thread:$0]  (!%p4993_p6), %s6437_s12, 64, %s632_s26, [#allocation21]  }
 0x1b7   : > { %s6438_s14 = sld [smem:[#allocation76_spill]] }
 0x1bd   : > { %s4547_s1 = scalar_lea.hbm %s6438_s14, 64 }
 0x1be   : > { %p4548_p1 = scmp.ne.s32.totalorder %s6438_s14, %s4547_s1  ;;  %p4554_p12 = scmp.lt.u32.totalorder %s4547_s1, %s6438_s14 }
 0x1c0   : > { %p4550_p3 = pnand %p4548_p1, %p5009_p8 }
 0x1c2   : > { %p4551_p11 = pneg %p4550_p3 }
 0x1c4   : > { %p4556_p13 = pnand %p4554_p12, %p4551_p11 }
 0x1c6   : > { %4559 = shalt.err (!%p4556_p13)
}
 0x1c7   : > { %s4560_s19 = scalar_lea.vmem %s654_s16, 64  ;;  %p4568_p7 = scmp.lt.s32.totalorder %s654_s16, %s654_s16 }
 0x1c8   : > { %p4561_p0 = scmp.ne.s32.totalorder %s654_s16, %s4560_s19  ;;  %p4569_p9 = scmp.lt.s32.totalorder %s4560_s19, %s4560_s19 }
 0x1ca   : > { %p4563_p2 = pnand %p4561_p0, %p5009_p8  ;;  %p4570_p5 = por %p4569_p9, %p4568_p7 }
 0x1cc   : > { %p4564_p4 = pneg %p4563_p2 }
 0x1ce   : > { %p4571_p10 = pnand %p4570_p5, %p4564_p4 }
 0x1d0   : > { %4574 = shalt.err (!%p4571_p10)
}
 0x1d1   : > { %3886 = dma.hbm_to_vmem [thread:$0]  (!%p4993_p6), %s6438_s14, 64, %s654_s16, [#allocation24]  }
 0x1d2   : > { %s4832_s24 = smov [#allocation28]   ;;  %s6439_s1 = sld [smem:[#allocation78_spill]] }
 0x1d3   : > { %s674_s23 = sshll.u32 %s4832_s24, 4  ;;  %s675_s23 = int_to_ptr.vmem [resolvable:$true] %s674_s23 }
 0x1d8   : > { %s6440_s29 = smov %s6439_s1  ;;  %s4575_s21 = scalar_lea.hbm %s6439_s1, 128 }
 0x1d9   : > { %p4576_p1 = scmp.ne.s32.totalorder %s6440_s29, %s4575_s21  ;;  %p4582_p12 = scmp.lt.u32.totalorder %s4575_s21, %s6440_s29 }
 0x1db   : > { %p4578_p3 = pnand %p4576_p1, %p5009_p8 }
 0x1dd   : > { %p4579_p11 = pneg %p4578_p3 }
 0x1df   : > { %p4584_p13 = pnand %p4582_p12, %p4579_p11 }
 0x1e1   : > { %4587 = shalt.err (!%p4584_p13)
}
 0x1e2   : > { %s4588_s16 = scalar_lea.vmem %s675_s23, 128  ;;  %p4596_p7 = scmp.lt.s32.totalorder %s675_s23, %s675_s23 }
 0x1e3   : > { %p4589_p0 = scmp.ne.s32.totalorder %s675_s23, %s4588_s16  ;;  %p4597_p9 = scmp.lt.s32.totalorder %s4588_s16, %s4588_s16 }
 0x1e5   : > { %p4591_p2 = pnand %p4589_p0, %p5009_p8  ;;  %p4598_p5 = por %p4597_p9, %p4596_p7 }
 0x1e7   : > { %p4592_p4 = pneg %p4591_p2 }
 0x1e9   : > { %p4599_p10 = pnand %p4598_p5, %p4592_p4 }
 0x1eb   : > { %4602 = shalt.err (!%p4599_p10)
}
 0x1ec   : > { %s6380_s26 = smov 64   ;;  %s6381_s25 = smov 4  }
 0x1ed   : > { %3892 = dma.hbm_to_vmem [thread:$0]  (!%p4993_p6), %s6440_s29, 128, %s675_s23, [#allocation27], %s6380_s26, %s6380_s26, %s6381_s25  }
 0x1ee   : > { %s4835_s27 = smov [#allocation31]   ;;  %s6441_s20 = sld [smem:[#allocation80_spill]] }
 0x1ef   : > { %s699_s22 = sshll.u32 %s4835_s27, 4  ;;  %s700_s22 = int_to_ptr.vmem [resolvable:$true] %s699_s22 }
 0x1f4   : > { %s6442_s19 = smov %s6441_s20  ;;  %s4603_s30 = scalar_lea.hbm %s6441_s20, 16 }
 0x1f5   : > { %p4604_p1 = scmp.ne.s32.totalorder %s6442_s19, %s4603_s30  ;;  %p4610_p12 = scmp.lt.u32.totalorder %s4603_s30, %s6442_s19 }
 0x1f7   : > { %p4606_p3 = pnand %p4604_p1, %p5009_p8 }
 0x1f9   : > { %p4607_p11 = pneg %p4606_p3 }
 0x1fb   : > { %p4612_p13 = pnand %p4610_p12, %p4607_p11 }
 0x1fd   : > { %4615 = shalt.err (!%p4612_p13)
}
 0x1fe   : > { %s4616_s23 = scalar_lea.vmem %s700_s22, 16  ;;  %s4623_s0 = scalar_lea.vmem %s700_s22, 32 }
 0x1ff   : > { %p4617_p0 = scmp.ne.s32.totalorder %s700_s22, %s4616_s23  ;;  %p4624_p7 = scmp.lt.s32.totalorder %s700_s22, %s700_s22 }
 0x200   : > { %p4625_p9 = scmp.lt.s32.totalorder %s4623_s0, %s4616_s23 }
 0x201   : > { %p4619_p2 = pnand %p4617_p0, %p5009_p8 }
 0x202   : > { %p4626_p5 = por %p4625_p9, %p4624_p7 }
 0x203   : > { %p4620_p4 = pneg %p4619_p2 }
 0x205   : > { %p4627_p10 = pnand %p4626_p5, %p4620_p4 }
 0x207   : > { %4630 = shalt.err (!%p4627_p10)
}
 0x208   : > { %s6443_s5 = sld [smem:[#allocation50_spill]]  ;;  %s6444_s6 = sld [smem:[#allocation49_spill]] }
 0x209   : > { %s6445_s27 = sld [smem:[#allocation47_spill]]  ;;  %s6446_s1 = sld [smem:[#allocation46_spill]] }
 0x20a   : > { %s6447_s2 = sld [smem:[#allocation45_spill]]  ;;  %s6448_s21 = sld [smem:[#allocation51_spill]] }
 0x20b   : > { %3898 = dma.hbm_to_vmem [thread:$0]  (!%p4993_p6), %s6442_s19, 16, %s700_s22, [#allocation30]  }
 0x20c   : > { %s6454_s26 = sld [smem:[#allocation62_spill]] }
 0x20e   : > { %s3539_s20 = sadd.s32 4294967294, %s6443_s5   ;;  %s58_s30 = sadd.s32 1, %s6444_s6 }
 0x20f   : > { %s67_s3 = sadd.s32 1, %s6445_s27  ;;  %p60_p8 = scmp.ge.s32.totalorder %s58_s30, 2 }
 0x210   : > { %p74_p1 = scmp.ne.s32.totalorder %s6445_s27, %s6446_s1  ;;  %p75_p3 = scmp.eq.s32.totalorder %s6443_s5, 0 }
 0x211   : > { %p80_p11 = scmp.ne.s32.totalorder %s6446_s1, %s6447_s2  ;;  %s6526_s30 = smov (%p60_p8, %s58_s30), 0 }
 0x212   : > { %p5343_p12 = por %p75_p3, %p74_p1  ;;  %p6450_p13 = scmp.eq.s32.totalorder %s6448_s21, 0 }
 0x213   : > { %s62_s23 = ssub.s32 %s6444_s6, %s6526_s30  ;;  %p491_p0 = scmp.eq.s32.totalorder %s6448_s21, 1 }
 0x214   : > { %p5349_p6 = por %p6450_p13, %p80_p11  ;;  %p65_p2 = scmp.eq.s32.totalorder %s62_s23, 0 }
 0x215   : > { %p497_p4 = scmp.eq.s32.totalorder %s3539_s20, 1  ;;  %p5356_p7 = por %p491_p0, %p74_p1 }
 0x216   : > { %p3927_p9 = scmp.lt.s32.totalorder %s6443_s5, 2  ;;  %s5369_s1 = sand.u32 1, %s6445_s27  }
 0x217   : > { %s6452_s0 = scalar_select %p5356_p7, 1, 0 }
 0x218   : > { %s5362_s4 = scalar_select %p65_p2, %s6445_s27, %s67_s3  }
 0x219   : > { %p5364_p5 = por %p497_p4, %p80_p11  ;;  %s3559_s2 = sshll.u32 %s5369_s1, 4 }
 0x21a   : > { %s3625_s21 = sshll.u32 %s6444_s6, 8  ;;  %s714_s3 = scalar_lea.vmem [#allocation2], %s3559_s2 }
 0x21b   : > { %s6453_s24 = scalar_select %p5364_p5, 1, 0 }
 0x21c   : > { %s5376_s25 = scalar_lea.hbm %s6454_s26, %s3625_s21  ;;  %s722_s7 = sshll.u32 %s714_s3, 4  ;;  %s5378_s7 = int_to_ptr.vmem [resolvable:$true] %s722_s7 }
 0x21d   : > { %p5382_p10 = pnand %p3927_p9, %p5343_p12  ;;  %s711_s23 = scalar_lea.sflag [#allocation3], %s5369_s1 }
 0x21e   : > { %s4631_s21 = scalar_lea.hbm %s5376_s25, 256  ;;  %s4636_s16 = scalar_lea.hbm %s6454_s26, 512 }
 0x21f   : > { %p4632_p8 = scmp.ne.s32.totalorder %s5376_s25, %s4631_s21  ;;  %p4633_p1 = pneg %p5382_p10 }
 0x220   : > { %p4637_p12 = scmp.lt.u32.totalorder %s5376_s25, %s6454_s26  ;;  %p4638_p13 = scmp.lt.u32.totalorder %s4636_s16, %s4631_s21 }
 0x221   : > { %p4634_p3 = pnand %p4633_p1, %p4632_p8  ;;  %p4640_p2 = scmp.lt.u32.totalorder %s4631_s21, %s5376_s25 }
 0x222   : > { %p4639_p0 = por %p4638_p13, %p4637_p12 }
 0x223   : > { %p4635_p11 = pneg %p4634_p3 }
 0x224   : > { %p4641_p4 = por %p4640_p2, %p4639_p0 }
 0x226   : > { %p4642_p9 = pnand %p4641_p4, %p4635_p11 }
 0x228   : > { %4645 = shalt.err (!%p4642_p9)
}
 0x229   : > { %s4646_s8 = scalar_lea.vmem %s5378_s7, 256  ;;  %s4836_s2 = smov [#allocation2]  }
 0x22a   : > { %p4647_p8 = scmp.ne.s32.totalorder %s5378_s7, %s4646_s8  ;;  %s4651_s20 = sshll.u32 %s4836_s2, 4  ;;  %s4652_s20 = int_to_ptr.vmem [resolvable:$false] %s4651_s20 }
 0x22b   : > { %s4653_s10 = scalar_lea.vmem %s4652_s20, 512  ;;  %p4654_p7 = scmp.lt.s32.totalorder %s5378_s7, %s4652_s20 }
 0x22c   : > { %p4649_p3 = pnand %p4647_p8, %p4633_p1  ;;  %p4655_p12 = scmp.lt.s32.totalorder %s4653_s10, %s4646_s8 }
 0x22e   : > { %p4650_p5 = pneg %p4649_p3  ;;  %p4656_p13 = por %p4655_p12, %p4654_p7 }
 0x230   : > { %p4657_p0 = pnand %p4656_p13, %p4650_p5 }
 0x232   : > { %4660 = shalt.err (!%p4657_p0)
}
 0x233   : > { %s6456_s21 = smov 8   ;;  %s6457_s16 = smov 128  }
 0x234   : > { %3902 = dma.hbm_to_vmem [thread:$0]  (!%p5382_p10), %s5376_s25, 256, %s5378_s7, %s711_s23, %s6457_s16, %s6457_s16, %s6456_s21  }
 0x235   : > { %s3626_s3 = sshll.u32 %s6444_s6, 7  ;;  %s6458_s20 = sld [smem:[#allocation63_spill]] }
 0x236   : > { %s6460_s11 = sshll.u32 %s5369_s1, 3  ;;  %s6461_s14 = sand.u32 1, %s6443_s5  }
 0x237   : > { %s736_s12 = scalar_lea.vmem [#allocation5], %s6460_s11  ;;  %s5431_s15 = scalar_lea.sflag [#allocation6], %s6461_s14 }
 0x238   : > { %s745_s13 = sshll.u32 %s736_s12, 4  ;;  %s5427_s13 = int_to_ptr.vmem [resolvable:$true] %s745_s13 }
 0x23b   : > { %s6459_s10 = smov %s6458_s20  ;;  %s5423_s9 = scalar_lea.hbm %s6458_s20, %s3626_s3 }
 0x23c   : > { %s4661_s17 = scalar_lea.hbm %s5423_s9, 128  ;;  %s4666_s6 = scalar_lea.hbm %s6459_s10, 256 }
 0x23d   : > { %p4662_p7 = scmp.ne.s32.totalorder %s5423_s9, %s4661_s17  ;;  %p4667_p2 = scmp.lt.u32.totalorder %s5423_s9, %s6459_s10 }
 0x23e   : > { %p4668_p4 = scmp.lt.u32.totalorder %s4666_s6, %s4661_s17  ;;  %p4670_p8 = scmp.lt.u32.totalorder %s4661_s17, %s5423_s9 }
 0x23f   : > { %p4664_p5 = pnand %p4662_p7, %p4633_p1 }
 0x240   : > { %p4669_p9 = por %p4668_p4, %p4667_p2 }
 0x241   : > { %p4665_p11 = pneg %p4664_p5 }
 0x242   : > { %p4671_p3 = por %p4670_p8, %p4669_p9 }
 0x244   : > { %p4672_p12 = pnand %p4671_p3, %p4665_p11 }
 0x246   : > { %4675 = shalt.err (!%p4672_p12)
}
 0x247   : > { %s4676_s11 = scalar_lea.vmem %s5427_s13, 128  ;;  %s4837_s12 = smov [#allocation5]  }
 0x248   : > { %p4677_p13 = scmp.ne.s32.totalorder %s5427_s13, %s4676_s11  ;;  %s4681_s14 = sshll.u32 %s4837_s12, 4  ;;  %s4682_s14 = int_to_ptr.vmem [resolvable:$false] %s4681_s14 }
 0x249   : > { %s4683_s5 = scalar_lea.vmem %s4682_s14, 256  ;;  %p4684_p5 = scmp.lt.s32.totalorder %s5427_s13, %s4682_s14 }
 0x24a   : > { %p4679_p0 = pnand %p4677_p13, %p4633_p1  ;;  %p4685_p2 = scmp.lt.s32.totalorder %s4683_s5, %s4676_s11 }
 0x24c   : > { %p4680_p7 = pneg %p4679_p0  ;;  %p4686_p4 = por %p4685_p2, %p4684_p5 }
 0x24e   : > { %p4687_p9 = pnand %p4686_p4, %p4680_p7 }
 0x250   : > { %4690 = shalt.err (!%p4687_p9)
}
 0x251   : > { %s6462_s17 = smov 4   ;;  %s6463_s21 = smov 64  }
 0x252   : > { %3905 = dma.hbm_to_vmem [thread:$0]  (!%p5382_p10), %s5423_s9, 128, %s5427_s13, %s5431_s15, %s6463_s21, %s6463_s21, %s6462_s17  }
 0x253   : > { %s6464_s16 = sld [smem:[#allocation52_spill]] }
 0x259   : > { %p6465_p1 = scmp.ne.s32.totalorder %s6464_s16, 0 }
 0x25b   : > { %757 = sbr.rel (%p6465_p1) target bundleno = 2579 (0xa13), region = 96 }
 0x262   : > { %s6466_s3 = sld [smem:[#allocation46_spill]] }
 0x268   : > { %s5463_s2 = sand.u32 1, %s6466_s3  }
 0x269   : > { %s3566_s8 = sshll.u32 %s5463_s2, 4  ;;  %s760_s20 = scalar_lea.sflag [#allocation3], %s5463_s2 }
 0x26a   : > { %s5467_s7 = scalar_lea.vmem [#allocation2], %s3566_s8 }
 0x26b   : > { %4744 = dma.done.wait (%p5349_p6), %s760_s20, 256  }
 0x26c   : > { %4746 = vsyncadd (%p5349_p6), %s760_s20, 4294967040  ;;  %s6467_s27 = sld [smem:[#allocation51_spill]]  ;;  %s3567_s13 = sshll.u32 %s5463_s2, 3 }
 0x26d   : > { %s5475_s25 = scalar_lea.vmem [#allocation5], %s3567_s13 }
 0x272   : > { %s768_s9 = sand.u32 1, %s6467_s27  }
 0x273   : > { %s769_s15 = scalar_lea.sflag [#allocation6], %s768_s9 }
 0x274   : > { %4748 = dma.done.wait (%p5349_p6), %s769_s15, 128  }
 0x275   : > { %4750 = vsyncadd (%p5349_p6), %s769_s15, 4294967168  ;;  %p6468_p10 = scmp.eq.s32.totalorder %s6467_s27, 0 }
 0x277   : > { %4752 = dma.done.wait (%p6468_p10), [#allocation6], 256   ;;  %p6469_p11 = pmov %p6468_p10 }
 0x278   : > { %p6470_p8 = pmov %p6468_p10 }
 0x279   : > { %4754 = vsyncadd (%p6469_p11), [#allocation6], 4294967040 }
 0x27a   : > { %4756 = dma.done.wait (%p6470_p8), [#allocation9], 320   ;;  %p6471_p3 = pmov %p6470_p8 }
 0x27c   : > { %4758 = vsyncadd (%p6471_p3), [#allocation9], 4294966976  ;;  %p6472_p12 = pmov %p6471_p3 }
 0x27d   : > { %p6473_p13 = pmov %p6471_p3 }
 0x27e   : > { %4760 = dma.done.wait (%p6472_p12), [#allocation12], 80  }
 0x27f   : > { %4762 = vsyncadd (%p6473_p13), [#allocation12], 4294967216  ;;  %p6474_p6 = pmov %p6471_p3 }
 0x280   : > { %p6475_p0 = pmov %p6471_p3 }
 0x281   : > { %4764 = dma.done.wait (%p6474_p6), [#allocation15], 128  }
 0x282   : > { %4766 = vsyncadd (%p6475_p0), [#allocation15], 4294967168  ;;  %p6476_p7 = pmov %p6475_p0 }
 0x283   : > { %p6477_p5 = pmov %p6475_p0 }
 0x284   : > { %4768 = dma.done.wait (%p6476_p7), [#allocation18], 80  }
 0x285   : > { %4770 = vsyncadd (%p6477_p5), [#allocation18], 4294967216  ;;  %p6478_p2 = pmov %p6475_p0 }
 0x286   : > { %p6479_p4 = pmov %p6475_p0 }
 0x287   : > { %4772 = dma.done.wait (%p6478_p2), [#allocation21], 128  }
 0x288   : > { %4774 = vsyncadd (%p6479_p4), [#allocation21], 4294967168  ;;  %p6480_p9 = pmov %p6475_p0 }
 0x289   : > { %p6481_p1 = pmov %p6475_p0 }
 0x28a   : > { %4776 = dma.done.wait (%p6480_p9), [#allocation24], 128  }
 0x28b   : > { %4778 = vsyncadd (%p6481_p1), [#allocation24], 4294967168  ;;  %p6482_p10 = pmov %p6475_p0 }
 0x28c   : > { %p6483_p11 = pmov %p6475_p0 }
 0x28d   : > { %4780 = dma.done.wait (%p6482_p10), [#allocation27], 144  }
 0x28e   : > { %4782 = vsyncadd (%p6483_p11), [#allocation27], 4294967152  ;;  %p6484_p8 = pmov %p6475_p0 }
 0x28f   : > { %p6485_p3 = pmov %p6475_p0 }
 0x290   : > { %4784 = dma.done.wait (%p6484_p8), [#allocation30], 80  }
 0x291   : > { %4786 = vsyncadd (%p6485_p3), [#allocation30], 4294967216  ;;  %v4838_v0 = vmov 0   ;;  %v6383_v1 = vmov 0.0   ;;  %vm4840_vm0 = vmmov 0   ;;  %vm927_vm1 = vcmask 1041408  }
 0x292   : > { %4023 = vset.pattern.permute.xlu1 %v4838_v0  ;;  %4022 = vset.pattern.permute.xlu0 %v4838_v0  ;;  %vm920_vm2 = vcmask 80896   ;;  %vm4841_vm3 = vmmov 1   ;;  %v904_v2 = vld [vmem:[%s5467_s7] sm:$0xff]  ;;  %v905_v3 = vld [vmem:[%s5467_s7 + $0x8] sm:$0x3]  ;;  %vm1105_vm5 = vcmask 1043456  }
 0x293   : > { %3675 = vmatprep.subr.bf16.mxu1 %v6383_v1  ;;  %3677 = vmatprep.mubr.msk.bf16.mxu1 %vm4840_vm0, %v6383_v1  ;;  %vm3766_vm4 = vmpackc.low %vm927_vm1, %vm4841_vm3  ;;  %v906_v4 = vld [vmem:[#allocation7] sm:$0xff]  ;;  %v3765_v5 = vpack.c.bf16 %v905_v3, %v904_v2  ;;  %v909_v6 = vld [vmem:[#allocation8 + $0x8] sm:$0xff]  ;;  %vm1101_vm6 = vcmask 64512   ;;  %vm2052_vm9 = vcmask 1041409   ;;  %vm2054_vm10 = vcmask 1042434   ;;  %s6511_s22 = sld [smem:[#allocation48_spill]] }
 0x294   : > { %3672 = vmatprep.mubr.msk.f32.mxu0 %vm920_vm2, %v906_v4  ;;  %v908_v7 = vld [vmem:[#allocation8] sm:$0xff]  ;;  %917 = vperm.xlu1 %4023, %v909_v6   ;;  %v1088_v8 = vld [vmem:[#allocation10] sm:$0xf]  ;;  %v907_v11 = vld [vmem:[#allocation7 + $0x8] sm:$0xff]  ;;  %vm2056_vm11 = vcmask 1043459   ;;  %vm2058_vm12 = vcmask 1044484  }
 0x295   : > { %912 = vperm.xlu0 %4022, %v908_v7   ;;  %3767 = vmatprep.subr.msk.bf16.mxu0 %vm3766_vm4, %v3765_v5  ;;  %v1107_v9 = vsel %vm1105_vm5, %v1088_v8, 0  ;;  %v4024_v10 = vld [vmem:[%s5475_s25] sm:$0xff]   ;;  %v3589_v13 = vld [vmem:[#allocation11] ss:$0 sm:$0xff]  ;;  %v1282_v32 = vld [vmem:[#allocation14] sm:$0xf] }
 0x296   : > { %3770 = vmatpush3.bf16.msk.msra.mxu0 %vm3766_vm4, %v3765_v5  ;;  %3676 = vmatpush3.bf16.msra.mxu1 %v1107_v9  ;;  %v1287_v33 = vsel %vm1105_vm5, %v1282_v32, 0  ;;  %v1157_v34 = vld [vmem:[#allocation13] sm:$0xf]  ;;  %v1975_v36 = vld [vmem:[#allocation17] sm:$0xf]  ;;  %v1336_v9 = vlaneseq  ;;  %vm2060_vm13 = vcmask 1045509  }
 0x297   : > { %3699 = vmatprep.subr.bf16.mxu1 %v6383_v1  ;;  %3771 = vmatprep.subr.msk.bf16.mxu0 %vm1105_vm5, %v1157_v34  ;;  %v1183_v35 = vsel %vm1105_vm5, %v1157_v34, 0  ;;  %v1977_v37 = vsel %vm1105_vm5, %v1975_v36, 0  ;;  %v4842_v7 = vmov 1966171168   ;;  %vm2062_vm14 = vcmask 1046534   ;;  %s3585_s6 = sshll.u32 %s5463_s2, 5 }
 0x298   : > { %v1334_v8 = vunpack.c.l.s4 %v4842_v7  ;;  %vm2064_vm15 = vcmask 1047559   ;;  %s899_s1 = scalar_lea.vmem [#allocation32], %s3585_s6  ;;  %s6512_s5 = sld [smem:[#allocation81_spill]] }
 0x299   : > { %3673 = vmatmul.mubr.msk.f32.vlgmr.msra.gmra.mrb[0].mxu0 %vm920_vm2, %v907_v11  ;;  %3678 = vmatmul.mubr.msk.bf16.vlgmr.msra.gmra.mrb[0].mxu1 %vm1101_vm6, %v4024_v10  ;;  %v1337_v11 = vshrl.u32 %v1336_v9, 7  ;;  %s3266_s23 = sshll.u32 %s899_s1, 4  ;;  %s3627_s11 = sshll.u32 %s6511_s22, 9  ;;  %s6283_s23 = int_to_ptr.vmem [resolvable:$true] %s3266_s23 }
 0x29a   : > { %3701 = vmatprep.mubr.msk.bf16.mxu1 %vm4840_vm0, %v6383_v1  ;;  %3700 = vmatpush3.bf16.msra.mxu1 %v1287_v33  ;;  %v1335_v10 = vunpack.c.0.s8 %v1334_v8  ;;  %s3252_s21 = scalar_lea.sflag [#allocation4], %s5463_s2  ;;  %s4691_s16 = scalar_lea.vmem %s6283_s23, 512 }
 0x29b   : > { %3705 = vmatprep.subr.bf16.mxu1 %v6383_v1  ;;  %3682 = vmatpush3.bf16.msra.mxu0 %v1183_v35  ;;  %p4692_p12 = scmp.ne.s32.totalorder %s6283_s23, %s4691_s16  ;;  %p6513_p13 = scmp.ne.s32.totalorder %s6452_s0, 0 }
 0x29c   : > { %3735 = vmatprep.subr.bf16.mxu0 %v6383_v1  ;;  %s4843_s3 = smov [#allocation32]  }
 0x29d   : > { %p4693_p6 = pnand %p4692_p12, %p6513_p13  ;;  %s4695_s8 = sshll.u32 %s4843_s3, 4  ;;  %s4696_s8 = int_to_ptr.vmem [resolvable:$false] %s4695_s8 }
 0x29e   : > { %s6289_s17 = scalar_lea.hbm %s6512_s5, %s3627_s11  ;;  %s4697_s20 = scalar_lea.vmem %s4696_s8, 1024 }
 0x29f   : > { %p4694_p0 = pneg %p4693_p6  ;;  %p4698_p7 = scmp.lt.s32.totalorder %s6283_s23, %s4696_s8 }
 0x2a0   : > { %p4699_p5 = scmp.lt.s32.totalorder %s4697_s20, %s4691_s16 }
 0x2a2   : > { %p4700_p2 = por %p4699_p5, %p4698_p7 }
 0x2a4   : > { %p4701_p4 = pnand %p4700_p2, %p4694_p0 }
 0x313   : > { %v918_v12 = vpop.permute.xlu1 %917 }
 0x314   : > { %v913_v14 = vpop.permute.xlu0 %912 }
 0x36c   : > { %v3674_v15 = vpop.f32.mrb[0].mxu0  ;;  %v1143_v16 = vpop.f32.mrb[0].mxu1 }
 0x36d   : > { %v1003_v17 = vadd.f32 %v3674_v15, %v918_v12  ;;  %v997_v18 = vpop.f32.mrb[1].mxu0  ;;  %v1144_v19 = vadd.f32 %v3589_v13, %v1143_v16  ;;  %v3679_v20 = vpop.f32.mrb[1].mxu1  ;;  %v5607_v12 = vsub.s32 %v1335_v10, %v1337_v11 }
 0x36e   : > { %v998_v21 = vadd.f32 %v997_v18, %v913_v14  ;;  %v1146_v22 = vpop.f32.mrb[2].mxu1  ;;  %v5612_v18 = vsub.s32 0, %v1337_v11 }
 0x36f   : > { %v1007_v23 = vmax.f32 %v1003_v17, 0.0  ;;  %vm1150_vm7 = vcmp.ge.f32.partialorder %v1144_v19, 0.0  ;;  %v1152_v24 = vmul.f32 0.2, %v1144_v19  ;;  %v1147_v25 = vadd.f32 %v3589_v13, %v1146_v22  ;;  %v3680_v26 = vpop.f32.mrb[3].mxu1 }
 0x370   : > { %v1006_v27 = vmax.f32 %v998_v21, 0.0 }
 0x371   : > { %1040 = vxpose.xlu1.b32.start.end [1/1] (short) %v1007_v23, 128  ;;  %v1154_v28 = vsel %vm1150_vm7, %v1144_v19, %v1152_v24  ;;  %vm1151_vm8 = vcmp.ge.f32.partialorder %v1147_v25, 0.0  ;;  %v1153_v29 = vmul.f32 0.2, %v1147_v25 }
 0x372   : > { %1008 = vxpose.xlu0.b32.start.end [1/1] (short) %v1006_v27, 128 }
 0x373   : > { %v1155_v30 = vsel %vm1151_vm8, %v1147_v25, %v1153_v29 }
 0x374   : > { %v1156_v31 = vpack.c.bf16 %v1155_v30, %v1154_v28 }
 0x376   : > { %3702 = vmatmul.mubr.msk.bf16.vlgmr.msra.gmra.mrb[4].mxu1 %vm1101_vm6, %v1156_v31 }
 0x377   : > { %3707 = vmatprep.mubr.msk.bf16.mxu1 %vm4840_vm0, %v6383_v1  ;;  %3706 = vmatpush3.bf16.msra.mxu1 %v1977_v37 }
 0x378   : > { %3711 = vmatprep.subr.bf16.mxu1 %v6383_v1 }
 0x37e   : > { %3708 = vmatmul.mubr.msk.bf16.vlgmr.msra.gmra.mrb[8].mxu1 %vm1101_vm6, %v1156_v31 }
 0x37f   : > { %3713 = vmatprep.mubr.msk.bf16.mxu1 %vm4840_vm0, %v6383_v1 }
 0x3f2   : > { %v5543_v38 = vpop.trf.xlu0 }
 0x3f6   : > { %v5545_v39 = vpop.trf.xlu0 }
 0x3f7   : > { %v1072_v40 = vpack.c.bf16 %v5545_v39, %v5543_v38 }
 0x3f9   : > { %3683 = vmatprep.mubr.msk.bf16.mxu0 %vm1101_vm6, %v1072_v40 }
 0x3fa   : > { %v5550_v41 = vpop.trf.xlu0 }
 0x3fe   : > { %v5552_v42 = vpop.trf.xlu0 }
 0x3ff   : > { %v1073_v43 = vpack.c.bf16 %v5552_v42, %v5550_v41 }
 0x401   : > { %3684 = vmatmul.mubr.msk.bf16.vlgmr.msra.gmra.mrb[4].mxu0 %vm1101_vm6, %v1073_v43 }
 0x402   : > { %v5557_v44 = vpop.trf.xlu0 }
 0x406   : > { %v5559_v45 = vpop.trf.xlu0 }
 0x407   : > { %v1074_v46 = vpack.c.bf16 %v5559_v45, %v5557_v44 }
 0x409   : > { %3687 = vmatprep.mubr.msk.bf16.mxu0 %vm1101_vm6, %v1074_v46 }
 0x40a   : > { %v5564_v47 = vpop.trf.xlu0 }
 0x40e   : > { %v5566_v48 = vpop.trf.xlu0 }
 0x40f   : > { %v1075_v49 = vpack.c.bf16 %v5566_v48, %v5564_v47 }
 0x411   : > { %3688 = vmatmul.mubr.msk.bf16.gmra.mrb[8].mxu0 %vm1101_vm6, %v1075_v49 }
 0x412   : > { %v5571_v50 = vpop.trf.xlu0 }
 0x416   : > { %v5573_v51 = vpop.trf.xlu0 }
 0x417   : > { %v1076_v52 = vpack.c.bf16 %v5573_v51, %v5571_v50 }
 0x419   : > { %3691 = vmatprep.mubr.msk.bf16.mxu0 %vm1101_vm6, %v1076_v52 }
 0x41a   : > { %v5578_v53 = vpop.trf.xlu0 }
 0x41e   : > { %v5580_v54 = vpop.trf.xlu0 }
 0x41f   : > { %v1077_v55 = vpack.c.bf16 %v5580_v54, %v5578_v53 }
 0x421   : > { %3692 = vmatmul.mubr.msk.bf16.gmra.mrb[12].mxu0 %vm1101_vm6, %v1077_v55 }
 0x422   : > { %v5585_v56 = vpop.trf.xlu0 }
 0x426   : > { %v5587_v57 = vpop.trf.xlu0 }
 0x427   : > { %v1078_v58 = vpack.c.bf16 %v5587_v57, %v5585_v56 }
 0x429   : > { %3695 = vmatprep.mubr.msk.bf16.mxu0 %vm1101_vm6, %v1078_v58 }
 0x42a   : > { %v5592_v59 = vpop.trf.xlu0 }
 0x42e   : > { %v5594_v60 = vpop.trf.xlu0 }
 0x42f   : > { %v1079_v61 = vpack.c.bf16 %v5594_v60, %v5592_v59 }
 0x431   : > { %3696 = vmatmul.mubr.msk.bf16.gmra.mrb[16].mxu0 %vm1101_vm6, %v1079_v61 }
 0x432   : > { %3737 = vmatprep.mubr.msk.bf16.mxu0 %vm4840_vm0, %v6383_v1 }
 0x449   : > { %v1323_v62 = vpop.f32.mrb[4].mxu1 }
 0x44a   : > { %v3703_v63 = vpop.f32.mrb[5].mxu1  ;;  %v1339_v13 = vrot.slane %v1323_v62, %v5607_v12  ;;  %v1332_v19 = vcombine.high %v1323_v62, %v1323_v62 }
 0x44b   : > { %v5601_v0 = vpop.f32.mrb[6].mxu1 }
 0x44c   : > { %v3704_v2 = vpop.f32.mrb[7].mxu1  ;;  %v1347_v14 = vcombine.high %v1339_v13, %v1339_v13  ;;  %v1355_v15 = vrot.slane %v1339_v13, %v5607_v12  ;;  %v1346_v23 = vrot.slane %v1332_v19, %v5607_v12 }
 0x44e   : > { %v1369_v16 = vrot.slane %v1347_v14, %v5607_v12  ;;  %v1377_v17 = vcombine.high %v1355_v15, %v1355_v15  ;;  %v1433_v22 = vrot.slane %v1355_v15, %v5612_v18  ;;  %v1348_v31 = vcombine.high %v1346_v23, %v1346_v23 }
 0x44f   : > { %v1362_v40 = vrot.slane %v1346_v23, %v5607_v12  ;;  %v1388_v23 = vrot.slane %v5601_v0, %v5607_v12 }
 0x450   : > { %v1379_v20 = vcombine.high %v1369_v16, %v1369_v16  ;;  %v1441_v21 = vrot.slane %v1377_v17, %v5612_v18  ;;  %v1437_v26 = vrot.slane %v1369_v16, %v5612_v18  ;;  %v1376_v62 = vrot.slane %v1348_v31, %v5607_v12 }
 0x451   : > { %v5603_v3 = vpop.f32.mrb[8].mxu1  ;;  %v1378_v7 = vcombine.high %v1362_v40, %v1362_v40 }
 0x452   : > { %6486 = vst [vmem:[#allocation53_spill] sm:$0xff] %v5603_v3  ;;  %v3709_v4 = vpop.f32.mrb[9].mxu1  ;;  %v1445_v24 = vrot.slane %v1379_v20, %v5612_v18  ;;  %v1380_v13 = vcombine.high %v1376_v62, %v1376_v62 }
 0x453   : > { %v5605_v5 = vpop.f32.mrb[10].mxu1  ;;  %v1457_v19 = vrot.slane %v1378_v7, %v5612_v18 }
 0x454   : > { %6487 = vst [vmem:[#allocation54_spill] sm:$0xff] %v5605_v5  ;;  %v3710_v6 = vpop.f32.mrb[11].mxu1 }
 0x4d4   : > { %v3685_v25 = vpop.f32.mrb[4].mxu0 }
 0x4d5   : > { %v1512_v27 = vadd.f32 %v3685_v25, %v1441_v21  ;;  %v1219_v28 = vpop.f32.mrb[5].mxu0 }
 0x4d6   : > { %v1510_v29 = vadd.f32 %v1433_v22, %v1219_v28  ;;  %v3686_v30 = vpop.f32.mrb[6].mxu0  ;;  %v1449_v22 = vrot.slane %v1362_v40, %v5612_v18  ;;  %v1974_v28 = vld [vmem:[#allocation16] sm:$0xf]  ;;  %v1453_v40 = vrot.slane %v1376_v62, %v5612_v18 }
 0x4d7   : > { %v1540_v32 = vsel %vm1101_vm6, %v1512_v27, -inf  ;;  %v1513_v33 = vadd.f32 %v3686_v30, %v1445_v24  ;;  %v1222_v34 = vpop.f32.mrb[7].mxu0 }
 0x4d8   : > { %v1541_v35 = vrot.slane %v1540_v32, 4  ;;  %v1526_v36 = vsel %vm1101_vm6, %v1510_v29, -inf  ;;  %v1511_v37 = vadd.f32 %v1437_v26, %v1222_v34  ;;  %v1461_v26 = vrot.slane %v1380_v13, %v5612_v18 }
 0x4d9   : > { %v1527_v43 = vrot.slane %v1526_v36, 4  ;;  %v1547_v46 = vsel %vm1101_vm6, %v1513_v33, -inf  ;;  %v2078_v34 = vsel %vm1105_vm5, %v1974_v28, 0 }
 0x4da   : > { %v1542_v49 = vmax.f32 %v1540_v32, %v1541_v35  ;;  %v1548_v52 = vrot.slane %v1547_v46, 4  ;;  %v1533_v55 = vsel %vm1101_vm6, %v1511_v37, -inf  ;;  %3712 = vmatpush3.bf16.msra.mxu1 %v2078_v34 }
 0x4db   : > { %v1528_v58 = vmax.f32 %v1526_v36, %v1527_v43  ;;  %v1534_v61 = vrot.slane %v1533_v55, 4 }
 0x4dc   : > { %v1543_v63 = vrot.slane %v1542_v49, 2  ;;  %v1549_v2 = vmax.f32 %v1547_v46, %v1548_v52 }
 0x4dd   : > { %v1529_v4 = vrot.slane %v1528_v58, 2  ;;  %v1535_v6 = vmax.f32 %v1533_v55, %v1534_v61  ;;  %v5637_v61 = vrot.slane %v1388_v23, %v5607_v12 }
 0x4de   : > { %v1544_v8 = vmax.f32 %v1542_v49, %v1543_v63  ;;  %v1550_v9 = vrot.slane %v1549_v2, 2 }
 0x4df   : > { %v1530_v10 = vmax.f32 %v1528_v58, %v1529_v4  ;;  %v1536_v11 = vrot.slane %v1535_v6, 2 }
 0x4e0   : > { %v1545_v14 = vrot.slane %v1544_v8, 1  ;;  %v1551_v15 = vmax.f32 %v1549_v2, %v1550_v9 }
 0x4e1   : > { %v1531_v16 = vrot.slane %v1530_v10, 1  ;;  %v1537_v17 = vmax.f32 %v1535_v6, %v1536_v11  ;;  %v1396_v11 = vcombine.high %v1388_v23, %v1388_v23 }
 0x4e2   : > { %v1546_v20 = vmax.f32 %v1544_v8, %v1545_v14  ;;  %v1552_v21 = vrot.slane %v1551_v15, 1 }
 0x4e3   : > { %v1532_v24 = vmax.f32 %v1530_v10, %v1531_v16  ;;  %v1538_v25 = vrot.slane %v1537_v17, 1  ;;  %v1426_v16 = vcombine.high %v5637_v61, %v5637_v61 }
 0x4e4   : > { %v1640_v30 = vsub.f32 %v1512_v27, %v1546_v20  ;;  %v1553_v31 = vmax.f32 %v1551_v15, %v1552_v21  ;;  %v3689_v32 = vpop.f32.mrb[8].mxu0 }
 0x4e5   : > { %v1638_v35 = vsub.f32 %v1510_v29, %v1532_v24  ;;  %v1539_v36 = vmax.f32 %v1537_v17, %v1538_v25  ;;  %v5631_v43 = vadd.f32 %v3689_v32, %v1457_v19  ;;  %v1235_v46 = vpop.f32.mrb[9].mxu0  ;;  %v1381_v17 = vcombine.high %v5601_v0, %v5601_v0 }
 0x4e6   : > { %v1658_v49 = vmul.f32 1.442695, %v1640_v30  ;;  %v1641_v52 = vsub.f32 %v1513_v33, %v1553_v31  ;;  %v5634_v55 = vadd.f32 %v1449_v22, %v1235_v46  ;;  %v3690_v58 = vpop.f32.mrb[10].mxu0  ;;  %v5654_v19 = vrot.slane %v1396_v11, %v5607_v12 }
 0x4e7   : > { %v1654_v27 = vmul.f32 1.442695, %v1638_v35  ;;  %v1639_v63 = vsub.f32 %v1511_v37, %v1539_v36  ;;  %v1568_v29 = vsel %vm1101_vm6, %v5631_v43, -inf  ;;  %v5641_v2 = vadd.f32 %v3690_v58, %v1461_v26  ;;  %v1238_v4 = vpop.f32.mrb[11].mxu0 }
 0x4e8   : > { %4026 = vpow2.f32 %v1658_v49  ;;  %v1660_v6 = vmul.f32 1.442695, %v1641_v52  ;;  %v1569_v62 = vrot.slane %v1568_v29, 4  ;;  %v1554_v33 = vsel %vm1101_vm6, %v5634_v55, -inf }
 0x4e9   : > { %4028 = vpow2.f32 %v1654_v27  ;;  %v1656_v7 = vmul.f32 1.442695, %v1639_v63  ;;  %v1555_v8 = vrot.slane %v1554_v33, 4  ;;  %v1575_v9 = vsel %vm1101_vm6, %v5641_v2, -inf }
 0x4ea   : > { %4030 = vpow2.f32 %v1660_v6  ;;  %v1570_v37 = vmax.f32 %v1568_v29, %v1569_v62  ;;  %v5647_v10 = vadd.f32 %v1453_v40, %v1238_v4  ;;  %v1576_v14 = vrot.slane %v1575_v9, 4 }
 0x4eb   : > { %4032 = vpow2.f32 %v1656_v7  ;;  %v1556_v13 = vmax.f32 %v1554_v33, %v1555_v8  ;;  %v5659_v23 = vrot.slane %v1426_v16, %v5612_v18  ;;  %v5662_v28 = vrot.slane %v1381_v17, %v5607_v12 }
 0x4ec   : > { %v1571_v15 = vrot.slane %v1570_v37, 2  ;;  %v1577_v21 = vmax.f32 %v1575_v9, %v1576_v14  ;;  %v1561_v22 = vsel %vm1101_vm6, %v5647_v10, -inf  ;;  %v1428_v30 = vcombine.high %v5654_v19, %v5654_v19 }
 0x4ed   : > { %v1557_v20 = vrot.slane %v1556_v13, 2  ;;  %v1562_v26 = vrot.slane %v1561_v22, 4  ;;  %v5685_v14 = vrot.slane %v5662_v28, %v5607_v12 }
 0x4ee   : > { %v1572_v24 = vmax.f32 %v1570_v37, %v1571_v15  ;;  %v1578_v36 = vrot.slane %v1577_v21, 2  ;;  %v1477_v5 = vrot.slane %v1428_v30, %v5612_v18 }
 0x4ef   : > { %v1558_v35 = vmax.f32 %v1556_v13, %v1557_v20  ;;  %v1563_v13 = vmax.f32 %v1561_v22, %v1562_v26  ;;  %v5691_v26 = vld [vmem:[#allocation20] sm:$0xf] }
 0x4f0   : > { %v1573_v58 = vrot.slane %v1572_v24, 1  ;;  %v1579_v20 = vmax.f32 %v1577_v21, %v1578_v36  ;;  %3772 = vmatprep.subr.msk.bf16.mxu1 %vm1105_vm5, %v5691_v26 }
 0x4f1   : > { %v1559_v17 = vrot.slane %v1558_v35, 1  ;;  %v1564_v1 = vrot.slane %v1563_v13, 2 }
 0x4f2   : > { %v4027_v25 = vpop.eup %4026 }
 0x4f3   : > { %v4029_v31 = vpop.eup %4028  ;;  %v1688_v32 = vmul.f32 %v4027_v25, %v5550_v41  ;;  %v1828_v34 = vsel %vm1101_vm6, %v4027_v25, 0.0  ;;  %v1565_v0 = vmax.f32 %v1563_v13, %v1564_v1 }
 0x4f4   : > { %v4031_v46 = vpop.eup %4030  ;;  %v1829_v40 = vrot.slane %v1828_v34, 4  ;;  %v1686_v49 = vmul.f32 %v4029_v31, %v5543_v38  ;;  %v1814_v52 = vsel %vm1101_vm6, %v4029_v31, 0.0  ;;  %v5672_v27 = vpop.f32.mrb[12].mxu0 }
 0x4f5   : > { %v4033_v63 = vpop.eup %4032  ;;  %v1716_v29 = vsel %vm1101_vm6, %v1688_v32, 0.0  ;;  %v1815_v4 = vrot.slane %v1814_v52, 4  ;;  %v1689_v6 = vmul.f32 %v4031_v46, %v5552_v42  ;;  %v1835_v41 = vsel %vm1101_vm6, %v4031_v46, 0.0  ;;  %v5677_v62 = vpop.f32.mrb[13].mxu0 }
 0x4f6   : > { %v1717_v33 = vrot.slane %v1716_v29, 4  ;;  %v1830_v7 = vadd.f32 %v1829_v40, %v1828_v34  ;;  %v1702_v8 = vsel %vm1101_vm6, %v1686_v49, 0.0  ;;  %v1836_v38 = vrot.slane %v1835_v41, 4  ;;  %v5680_v9 = vpop.f32.mrb[14].mxu0 }
 0x4f7   : > { %v1816_v37 = vadd.f32 %v1815_v4, %v1814_v52  ;;  %v1687_v11 = vmul.f32 %v4033_v63, %v5545_v39  ;;  %v5687_v42 = vpop.f32.mrb[15].mxu0  ;;  %v1703_v25 = vrot.slane %v1702_v8, 4  ;;  %v1821_v32 = vsel %vm1101_vm6, %v4033_v63, 0.0 }
 0x4f8   : > { %v1831_v15 = vrot.slane %v1830_v7, 2  ;;  %v1837_v16 = vadd.f32 %v1836_v38, %v1835_v41  ;;  %v1574_v34 = vmax.f32 %v1572_v24, %v1573_v58  ;;  %v1718_v46 = vadd.f32 %v1717_v33, %v1716_v29 }
 0x4f9   : > { %v1817_v31 = vrot.slane %v1816_v37, 2  ;;  %v1723_v39 = vsel %vm1101_vm6, %v1689_v6, 0.0  ;;  %v1709_v52 = vsel %vm1101_vm6, %v1687_v11, 0.0  ;;  %v1822_v4 = vrot.slane %v1821_v32, 4 }
 0x4fa   : > { %v1832_v40 = vadd.f32 %v1831_v15, %v1830_v7  ;;  %v1838_v22 = vrot.slane %v1837_v16, 2  ;;  %v1580_v41 = vrot.slane %v1579_v20, 1  ;;  %v1427_v24 = vcombine.high %v5685_v14, %v5685_v14 }
 0x4fb   : > { %v1818_v49 = vadd.f32 %v1817_v31, %v1816_v37  ;;  %v1704_v58 = vadd.f32 %v1703_v25, %v1702_v8  ;;  %v1724_v29 = vrot.slane %v1723_v39, 4  ;;  %v1823_v6 = vadd.f32 %v1822_v4, %v1821_v32 }
 0x4fc   : > { %v1833_v21 = vrot.slane %v1832_v40, 1  ;;  %v1839_v36 = vadd.f32 %v1838_v22, %v1837_v16  ;;  %v1719_v33 = vrot.slane %v1718_v46, 2  ;;  %v1710_v7 = vrot.slane %v1709_v52, 4 }
 0x4fd   : > { %v1819_v63 = vrot.slane %v1818_v49, 1  ;;  %v1644_v38 = vsub.f32 %v5631_v43, %v1574_v34  ;;  %v1560_v37 = vmax.f32 %v1558_v35, %v1559_v17  ;;  %v1824_v31 = vrot.slane %v1823_v6, 2 }
 0x4fe   : > { %v1834_v11 = vadd.f32 %v1833_v21, %v1832_v40  ;;  %v1840_v15 = vrot.slane %v1839_v36, 1  ;;  %v1469_v16 = vrot.slane %v5654_v19, %v5612_v18  ;;  %v1489_v22 = vrot.slane %v1427_v24, %v5612_v18 }
 0x4ff   : > { %v1481_v8 = vrot.slane %v5685_v14, %v5612_v18  ;;  %v1705_v25 = vrot.slane %v1704_v58, 2  ;;  %v1820_v32 = vadd.f32 %v1819_v63, %v1818_v49  ;;  %v1725_v4 = vadd.f32 %v1724_v29, %v1723_v39 }
 0x500   : > { %v1825_v3 = vadd.f32 %v1824_v31, %v1823_v6  ;;  %v1720_v43 = vadd.f32 %v1719_v33, %v1718_v46  ;;  %v1711_v35 = vadd.f32 %v1710_v7, %v1709_v52  ;;  %v1666_v17 = vmul.f32 1.442695, %v1644_v38 }
 0x501   : > { %v1642_v34 = vsub.f32 %v5634_v55, %v1560_v37  ;;  %4034 = vrcp.f32 %v1834_v11  ;;  %v1841_v1 = vadd.f32 %v1840_v15, %v1839_v36  ;;  %v1581_v30 = vmax.f32 %v1579_v20, %v1580_v41 }
 0x502   : > { %v1566_v13 = vrot.slane %v1565_v0, 1  ;;  %4036 = vpow2.f32 %v1666_v17  ;;  %v5708_v40 = vadd.f32 %v5672_v27, %v5659_v23  ;;  %v6488_v14 = vrot.slane %v5637_v61, %v5612_v18 }
 0x503   : > { %v1662_v19 = vmul.f32 1.442695, %v1642_v34  ;;  %4038 = vrcp.f32 %v1820_v32  ;;  %v1826_v49 = vrot.slane %v1825_v3, 1  ;;  %v1645_v55 = vsub.f32 %v5641_v2, %v1581_v30 }
 0x504   : > { %v5714_v39 = vadd.f32 %v6488_v14, %v5677_v62  ;;  %v3697_v46 = vpop.f32.mrb[16].mxu0  ;;  %v1567_v52 = vmax.f32 %v1565_v0, %v1566_v13  ;;  %v1596_v21 = vsel %vm1101_vm6, %v5708_v40, -inf  ;;  %v5722_v27 = vadd.f32 %v5680_v9, %v1477_v5 }
 0x505   : > { %v1267_v20 = vpop.f32.mrb[17].mxu0  ;;  %4040 = vpow2.f32 %v1662_v19  ;;  %v1726_v62 = vrot.slane %v1725_v4, 2  ;;  %v1668_v36 = vmul.f32 1.442695, %v1645_v55  ;;  %v1597_v41 = vrot.slane %v1596_v21, 4 }
 0x506   : > { %v1582_v23 = vsel %vm1101_vm6, %v5714_v39, -inf  ;;  %v5724_v61 = vpop.f32.mrb[18].mxu0  ;;  %4042 = vrcp.f32 %v1841_v1  ;;  %v1643_v2 = vsub.f32 %v5647_v10, %v1567_v52  ;;  %v5730_v63 = vadd.f32 %v1469_v16, %v5687_v42 }
 0x507   : > { %v5726_v24 = vpop.f32.mrb[19].mxu0  ;;  %v1583_v0 = vrot.slane %v1582_v23, 4  ;;  %v5732_v29 = vadd.f32 %v3697_v46, %v1489_v22  ;;  %v1706_v6 = vadd.f32 %v1705_v25, %v1704_v58  ;;  %v1827_v33 = vadd.f32 %v1826_v49, %v1825_v3 }
 0x508   : > { %v1598_v5 = vmax.f32 %v1596_v21, %v1597_v41  ;;  %v1712_v9 = vrot.slane %v1711_v35, 2  ;;  %v5734_v38 = vadd.f32 %v1481_v8, %v1267_v20  ;;  %v1727_v37 = vadd.f32 %v1726_v62, %v1725_v4 }
 0x509   : > { %v1584_v7 = vmax.f32 %v1582_v23, %v1583_v0  ;;  %4044 = vpow2.f32 %v1668_v36  ;;  %v1397_v11 = vcombine.high %v5662_v28, %v5662_v28  ;;  %v1721_v10 = vrot.slane %v1720_v43, 1 }
 0x50a   : > { %v1599_v15 = vrot.slane %v1598_v5, 2  ;;  %v1664_v31 = vmul.f32 1.442695, %v1643_v2  ;;  %v1707_v42 = vrot.slane %v1706_v6, 1  ;;  %4046 = vrcp.f32 %v1827_v33 }
 0x50b   : > { %v4035_v32 = vpop.eup %4034  ;;  %v1603_v58 = vsel %vm1101_vm6, %v5722_v27, -inf  ;;  %v1713_v16 = vadd.f32 %v1712_v9, %v1711_v35  ;;  %v1585_v25 = vrot.slane %v1584_v7, 2  ;;  %v1728_v17 = vrot.slane %v1727_v37, 1 }
 0x50c   : > { %v4037_v3 = vpop.eup %4036  ;;  %v1600_v22 = vmax.f32 %v1598_v5, %v1599_v15  ;;  %v5743_v28 = vrot.slane %v1397_v11, %v5607_v12  ;;  %v1722_v30 = vadd.f32 %v1721_v10, %v1720_v43  ;;  %4048 = vpow2.f32 %v1664_v31 }
 0x50d   : > { %v4039_v8 = vpop.eup %4038  ;;  %v1692_v4 = vmul.f32 %v4037_v3, %v5564_v47  ;;  %v1856_v34 = vsel %vm1101_vm6, %v4037_v3, 0.0  ;;  %v1604_v19 = vrot.slane %v1603_v58, 4  ;;  %v1708_v46 = vadd.f32 %v1707_v42, %v1706_v6 }
 0x50e   : > { %v1857_v13 = vrot.slane %v1856_v34, 4  ;;  %v1714_v52 = vrot.slane %v1713_v16, 1  ;;  %v1601_v47 = vrot.slane %v1600_v22, 1  ;;  %v1586_v20 = vmax.f32 %v1584_v7, %v1585_v25 }
 0x50f   : > { %v4041_v1 = vpop.eup %4040  ;;  %v1744_v35 = vsel %vm1101_vm6, %v1692_v4, 0.0  ;;  %v1589_v21 = vsel %vm1101_vm6, %v5730_v63, -inf  ;;  %v1729_v23 = vadd.f32 %v1728_v17, %v1727_v37  ;;  %v1624_v36 = vsel %vm1101_vm6, %v5732_v29, -inf }
 0x510   : > { %v4043_v14 = vpop.eup %4042  ;;  %v1690_v49 = vmul.f32 %v4041_v1, %v5557_v44  ;;  %v1842_v55 = vsel %vm1101_vm6, %v4041_v1, 0.0  ;;  %v1745_v62 = vrot.slane %v1744_v35, 4  ;;  %v1858_v43 = vadd.f32 %v1857_v13, %v1856_v34 }
 0x511   : > { %v1944_v41 = vmul.f32 %v4035_v32, %v1722_v30  ;;  %v1843_v0 = vrot.slane %v1842_v55, 4  ;;  %v1605_v6 = vmax.f32 %v1603_v58, %v1604_v19  ;;  %v1942_v33 = vmul.f32 %v4039_v8, %v1708_v46 }
 0x512   : > { %v1730_v2 = vsel %vm1101_vm6, %v1690_v49, 0.0  ;;  %v1945_v5 = vmul.f32 %v4043_v14, %v1729_v23  ;;  %v1590_v9 = vrot.slane %v1589_v21, 4  ;;  %v1429_v7 = vcombine.high %v5743_v28, %v5743_v28 }
 0x513   : > { %v4045_v44 = vpop.eup %4044  ;;  %v1715_v11 = vadd.f32 %v1714_v52, %v1713_v16  ;;  %v1602_v15 = vmax.f32 %v1600_v22, %v1601_v47  ;;  %v1587_v37 = vrot.slane %v1586_v20, 1  ;;  %v1485_v10 = vrot.slane %v5743_v28, %v5612_v18 }
 0x514   : > { %v4047_v31 = vpop.eup %4046  ;;  %v1746_v42 = vadd.f32 %v1745_v62, %v1744_v35  ;;  %v1859_v32 = vrot.slane %v1858_v43, 2  ;;  %v1731_v3 = vrot.slane %v1730_v2, 4  ;;  %v1625_v25 = vrot.slane %v1624_v36, 4 }
 0x515   : > { %v1960_v17 = vpack.c.bf16 %v1944_v41, %v1944_v41  ;;  %v1844_v58 = vadd.f32 %v1843_v0, %v1842_v55  ;;  %v1693_v8 = vmul.f32 %v4045_v44, %v5566_v48  ;;  %v1606_v4 = vrot.slane %v1605_v6, 2 }
 0x516   : > { %v1958_v34 = vpack.c.bf16 %v1942_v33, %v1942_v33  ;;  %v1961_v1 = vpack.c.bf16 %v1945_v5, %v1945_v5  ;;  %v1591_v30 = vmax.f32 %v1589_v21, %v1590_v9  ;;  %v1493_v16 = vrot.slane %v1429_v7, %v5612_v18  ;;  %v4049_v22 = vpop.eup %4048 }
 0x517   : > { %v5759_v13 = vmul.f32 %v4047_v31, %v1715_v11  ;;  %v1863_v28 = vsel %vm1101_vm6, %v4045_v44, 0.0  ;;  %v1648_v19 = vsub.f32 %v5708_v40, %v1602_v15  ;;  %v1588_v14 = vmax.f32 %v1586_v20, %v1587_v37 }
 0x518   : > { %v1747_v46 = vrot.slane %v1746_v42, 2  ;;  %v1860_v35 = vadd.f32 %v1859_v32, %v1858_v43  ;;  %v1732_v49 = vadd.f32 %v1731_v3, %v1730_v2  ;;  %v1626_v55 = vmax.f32 %v1624_v36, %v1625_v25 }
 0x519   : > { %v5763_v52 = vunpack.c.l.b16 %v1960_v17  ;;  %v1845_v48 = vrot.slane %v1844_v58, 2  ;;  %v1751_v47 = vsel %vm1101_vm6, %v1693_v8, 0.0  ;;  %v1607_v21 = vmax.f32 %v1605_v6, %v1606_v4 }
 0x51a   : > { %v5766_v23 = vunpack.c.l.b16 %v1958_v34  ;;  %v5768_v62 = vunpack.c.l.b16 %v1961_v1  ;;  %v1864_v41 = vrot.slane %v1863_v28, 4  ;;  %v1691_v0 = vmul.f32 %v4049_v22, %v5559_v45 }
 0x51b   : > { %v1959_v40 = vpack.c.bf16 %v5759_v13, %v5759_v13  ;;  %v1849_v20 = vsel %vm1101_vm6, %v4049_v22, 0.0  ;;  %v1674_v43 = vmul.f32 1.442695, %v1648_v19  ;;  %v1646_v36 = vsub.f32 %v5714_v39, %v1588_v14 }
 0x51c   : > { %v5775_v2 = vadd.f32 %v1747_v46, %v1746_v42  ;;  %v1861_v44 = vrot.slane %v1860_v35, 1  ;;  %v1733_v33 = vrot.slane %v1732_v49, 2  ;;  %v1752_v6 = vrot.slane %v1751_v47, 4 }
 0x51d   : > { %v1846_v5 = vadd.f32 %v1845_v48, %v1844_v58  ;;  %4050 = vpow2.f32 %v1674_v43  ;;  %v1670_v9 = vmul.f32 1.442695, %v1646_v36  ;;  %v1608_v7 = vrot.slane %v1607_v21, 1 }
 0x51e   : > { %v1865_v11 = vadd.f32 %v1864_v41, %v1863_v28  ;;  %v5778_v45 = vsel %vm1101_vm6, %v1691_v0, 0.0  ;;  %v1850_v15 = vrot.slane %v1849_v20, 4  ;;  %v1592_v37 = vrot.slane %v1591_v30, 2 }
 0x51f   : > { %4052 = vpow2.f32 %v1670_v9  ;;  %v1609_v31 = vmax.f32 %v1607_v21, %v1608_v7  ;;  %v1627_v32 = vrot.slane %v1626_v55, 2  ;;  %v1610_v39 = vsel %vm1101_vm6, %v5734_v38, -inf }
 0x520   : > { %v1749_v42 = vrot.slane %v5775_v2, 1  ;;  %v1862_v3 = vadd.f32 %v1861_v44, %v1860_v35  ;;  %v5783_v25 = vadd.f32 %v1733_v33, %v1732_v49  ;;  %v1593_v17 = vmax.f32 %v1591_v30, %v1592_v37 }
 0x521   : > { %v1649_v58 = vsub.f32 %v5722_v27, %v1609_v31  ;;  %v1628_v8 = vmax.f32 %v1626_v55, %v1627_v32  ;;  %v1611_v4 = vrot.slane %v1610_v39, 4  ;;  %v5787_v34 = vadd.f32 %v5724_v61, %v1493_v16 }
 0x522   : > { %v1866_v1 = vrot.slane %v1865_v11, 2  ;;  %v1851_v22 = vadd.f32 %v1850_v15, %v1849_v20  ;;  %v1594_v28 = vrot.slane %v1593_v17, 1  ;;  %v5790_v19 = vadd.f32 %v1485_v10, %v5726_v24 }
 0x523   : > { %v1676_v14 = vmul.f32 1.442695, %v1649_v58  ;;  %v1629_v46 = vrot.slane %v1628_v8, 1  ;;  %v1612_v48 = vmax.f32 %v1610_v39, %v1611_v4  ;;  %v1631_v35 = vsel %vm1101_vm6, %v5787_v34, -inf }
 0x524   : > { %v1847_v30 = vrot.slane %v1846_v5, 1  ;;  %v5794_v49 = vadd.f32 %v1752_v6, %v1751_v47  ;;  %v1595_v27 = vmax.f32 %v1593_v17, %v1594_v28  ;;  %v1632_v55 = vrot.slane %v1631_v35, 4 }
 0x525   : > { %v1738_v61 = vrot.slane %v5778_v45, 4  ;;  %4054 = vpow2.f32 %v1676_v14  ;;  %v1630_v16 = vmax.f32 %v1628_v8, %v1629_v46  ;;  %v1613_v21 = vrot.slane %v1612_v48, 2 }
 0x526   : > { %v1852_v41 = vrot.slane %v1851_v22, 2  ;;  %v1647_v24 = vsub.f32 %v5730_v63, %v1595_v27  ;;  %v1633_v10 = vmax.f32 %v1631_v35, %v1632_v55  ;;  %v1617_v0 = vsel %vm1101_vm6, %v5790_v19, -inf }
 0x527   : > { %v4051_v20 = vpop.eup %4050  ;;  %4056 = vrcp.f32 %v1862_v3  ;;  %v1867_v43 = vadd.f32 %v1866_v1, %v1865_v11  ;;  %v1652_v47 = vsub.f32 %v5732_v29, %v1630_v16  ;;  %v1614_v36 = vmax.f32 %v1612_v48, %v1613_v21 }
 0x528   : > { %v1696_v44 = vmul.f32 %v4051_v20, %v5578_v53  ;;  %v1884_v33 = vsel %vm1101_vm6, %v4051_v20, 0.0  ;;  %v1672_v6 = vmul.f32 1.442695, %v1647_v24  ;;  %v1634_v9 = vrot.slane %v1633_v10, 2 }
 0x529   : > { %v4053_v7 = vpop.eup %4052  ;;  %v1885_v15 = vrot.slane %v1884_v33, 4  ;;  %v1682_v37 = vmul.f32 1.442695, %v1652_v47  ;;  %v1615_v63 = vrot.slane %v1614_v36, 1  ;;  %v1618_v31 = vrot.slane %v1617_v0, 4 }
 0x52a   : > { %v1853_v32 = vadd.f32 %v1852_v41, %v1851_v22  ;;  %v1694_v39 = vmul.f32 %v4053_v7, %v5571_v50  ;;  %v1870_v3 = vsel %vm1101_vm6, %v4053_v7, 0.0  ;;  %4058 = vpow2.f32 %v1672_v6 }
 0x52b   : > { %v1848_v11 = vadd.f32 %v1847_v30, %v1846_v5  ;;  %v1868_v29 = vrot.slane %v1867_v43, 1  ;;  %v1886_v17 = vadd.f32 %v1885_v15, %v1884_v33  ;;  %v1871_v58 = vrot.slane %v1870_v3, 4 }
 0x52c   : > { %v1772_v53 = vsel %vm1101_vm6, %v1696_v44, 0.0  ;;  %v1758_v8 = vsel %vm1101_vm6, %v1694_v39, 0.0  ;;  %v1616_v4 = vmax.f32 %v1614_v36, %v1615_v63  ;;  %v1635_v1 = vmax.f32 %v1633_v10, %v1634_v9 }
 0x52d   : > { %v1887_v28 = vrot.slane %v1886_v17, 2  ;;  %v1872_v14 = vadd.f32 %v1871_v58, %v1870_v3  ;;  %4060 = vpow2.f32 %v1682_v37  ;;  %v1619_v46 = vmax.f32 %v1617_v0, %v1618_v31 }
 0x52e   : > { %v1739_v22 = vadd.f32 %v1738_v61, %v5778_v45  ;;  %v1854_v50 = vrot.slane %v1853_v32, 1  ;;  %v1650_v48 = vsub.f32 %v5734_v38, %v1616_v4  ;;  %v1636_v35 = vrot.slane %v1635_v1, 1 }
 0x52f   : > { %v4055_v5 = vpop.eup %4054  ;;  %v1773_v30 = vrot.slane %v1772_v53, 4  ;;  %v1888_v27 = vadd.f32 %v1887_v28, %v1886_v17  ;;  %v1759_v55 = vrot.slane %v1758_v8, 4  ;;  %v1873_v16 = vrot.slane %v1872_v14, 2 }
 0x530   : > { %v1697_v21 = vmul.f32 %v4055_v5, %v5580_v54  ;;  %v1891_v41 = vsel %vm1101_vm6, %v4055_v5, 0.0  ;;  %v1678_v24 = vmul.f32 1.442695, %v1650_v48  ;;  %v1637_v10 = vmax.f32 %v1635_v1, %v1636_v35 }
 0x531   : > { %v5811_v20 = vpop.eup %4056  ;;  %v1869_v0 = vadd.f32 %v1868_v29, %v1867_v43  ;;  %v1889_v47 = vrot.slane %v1888_v27, 1  ;;  %v1874_v45 = vadd.f32 %v1873_v16, %v1872_v14  ;;  %v1620_v61 = vrot.slane %v1619_v46, 2 }
 0x532   : > { %v1779_v38 = vsel %vm1101_vm6, %v1697_v21, 0.0  ;;  %v1892_v36 = vrot.slane %v1891_v41, 4  ;;  %4062 = vpow2.f32 %v1678_v24  ;;  %v1653_v44 = vsub.f32 %v5787_v34, %v1637_v10 }
 0x533   : > { %v1754_v33 = vrot.slane %v5794_v49, 2  ;;  %v1855_v6 = vadd.f32 %v1854_v50, %v1853_v32  ;;  %v1774_v54 = vadd.f32 %v1773_v30, %v1772_v53  ;;  %v1875_v9 = vrot.slane %v1874_v45, 1 }
 0x534   : > { %v4059_v7 = vpop.eup %4058  ;;  %4064 = vrcp.f32 %v1848_v11  ;;  %v1760_v15 = vadd.f32 %v1759_v55, %v1758_v8  ;;  %v1780_v37 = vrot.slane %v1779_v38, 4  ;;  %v1893_v63 = vadd.f32 %v1892_v36, %v1891_v41 }
 0x535   : > { %4066 = vrcp.f32 %v1869_v0  ;;  %v1740_v43 = vrot.slane %v1739_v22, 2  ;;  %v1890_v31 = vadd.f32 %v1889_v47, %v1888_v27  ;;  %v1621_v39 = vmax.f32 %v1619_v46, %v1620_v61 }
 0x536   : > { %v1894_v3 = vrot.slane %v1893_v63, 2  ;;  %v1695_v29 = vmul.f32 %v4059_v7, %v5573_v51  ;;  %v1877_v17 = vsel %vm1101_vm6, %v4059_v7, 0.0  ;;  %v1684_v34 = vmul.f32 1.442695, %v1653_v44 }
 0x537   : > { %v5818_v58 = vpop.eup %4060  ;;  %4068 = vrcp.f32 %v1855_v6  ;;  %v1775_v32 = vrot.slane %v1774_v54, 2  ;;  %v1876_v53 = vadd.f32 %v1875_v9, %v1874_v45  ;;  %v1878_v4 = vrot.slane %v1877_v17, 4 }
 0x538   : > { %v1761_v11 = vrot.slane %v1760_v15, 2  ;;  %v1781_v8 = vadd.f32 %v1780_v37, %v1779_v38  ;;  %v1895_v1 = vadd.f32 %v1894_v3, %v1893_v63  ;;  %v1765_v28 = vsel %vm1101_vm6, %v1695_v29, 0.0 }
 0x539   : > { %v1741_v14 = vadd.f32 %v1740_v43, %v1739_v22  ;;  %4070 = vrcp.f32 %v1890_v31  ;;  %v1766_v46 = vrot.slane %v1765_v28, 4  ;;  %v1879_v50 = vadd.f32 %v1878_v4, %v1877_v17 }
 0x53a   : > { %v1896_v48 = vrot.slane %v1895_v1, 1  ;;  %v1912_v51 = vsel %vm1101_vm6, %v5818_v58, 0.0  ;;  %4072 = vpow2.f32 %v1684_v34  ;;  %v1622_v35 = vrot.slane %v1621_v39, 1 }
 0x53b   : > { %v1735_v5 = vrot.slane %v5783_v25, 1  ;;  %v1776_v30 = vadd.f32 %v1775_v32, %v1774_v54  ;;  %4074 = vrcp.f32 %v1876_v53  ;;  %v1880_v27 = vrot.slane %v1879_v50, 2 }
 0x53c   : > { %v4063_v55 = vpop.eup %4062  ;;  %v1762_v16 = vadd.f32 %v1761_v11, %v1760_v15  ;;  %v1782_v21 = vrot.slane %v1781_v8, 2  ;;  %v1897_v41 = vadd.f32 %v1896_v48, %v1895_v1  ;;  %v1767_v24 = vadd.f32 %v1766_v46, %v1765_v28  ;;  %v5841_v46 = vpop.trf.xlu1 }
 0x53d   : > { %v1755_v22 = vadd.f32 %v1754_v33, %v5794_v49  ;;  %v1881_v10 = vadd.f32 %v1880_v27, %v1879_v50  ;;  %v1913_v0 = vrot.slane %v1912_v51, 4  ;;  %v1698_v47 = vmul.f32 %v4063_v55, %v5585_v56 }
 0x53e   : > { %v4065_v45 = vpop.eup %4064  ;;  %v1742_v61 = vrot.slane %v1741_v14, 1  ;;  %4076 = vrcp.f32 %v1897_v41  ;;  %v1898_v38 = vsel %vm1101_vm6, %v4063_v55, 0.0  ;;  %v1623_v36 = vmax.f32 %v1621_v39, %v1622_v35 }
 0x53f   : > { %v4067_v44 = vpop.eup %4066  ;;  %v5830_v6 = vunpack.c.l.b16 %v1959_v40  ;;  %v1777_v54 = vrot.slane %v1776_v30, 1  ;;  %v1882_v9 = vrot.slane %v1881_v10, 1  ;;  %v1786_v49 = vsel %vm1101_vm6, %v1698_v47, 0.0 }
 0x540   : > { %v1763_v33 = vrot.slane %v1762_v16, 1  ;;  %v1783_v7 = vadd.f32 %v1782_v21, %v1781_v8  ;;  %v1768_v15 = vrot.slane %v1767_v24, 2  ;;  %v1899_v56 = vrot.slane %v1898_v38, 4 }
 0x541   : > { %v4069_v37 = vpop.eup %4068  ;;  %v1750_v63 = vadd.f32 %v1749_v42, %v5775_v2  ;;  %v1736_v43 = vadd.f32 %v1735_v5, %v5783_v25  ;;  %v1883_v31 = vadd.f32 %v1882_v9, %v1881_v10  ;;  %v1914_v39 = vadd.f32 %v1913_v0, %v1912_v51  ;;  %v5846_v9 = vpop.trf.xlu1 }
 0x542   : > { %v1756_v13 = vrot.slane %v1755_v22, 1  ;;  %v1743_v40 = vadd.f32 %v1742_v61, %v1741_v14  ;;  %v1787_v3 = vrot.slane %v1786_v49, 4  ;;  %v1651_v29 = vsub.f32 %v5790_v19, %v1623_v36 }
 0x543   : > { %v4071_v17 = vpop.eup %4070  ;;  %v1946_v34 = vmul.f32 %v4065_v45, %v1736_v43  ;;  %v1778_v32 = vadd.f32 %v1777_v54, %v1776_v30  ;;  %4078 = vrcp.f32 %v1883_v31  ;;  %v1900_v53 = vadd.f32 %v1899_v56, %v1898_v38 }
 0x544   : > { %v4073_v4 = vpop.eup %4072  ;;  %v1764_v11 = vadd.f32 %v1763_v33, %v1762_v16  ;;  %v1784_v2 = vrot.slane %v1783_v7, 1  ;;  %v1769_v42 = vadd.f32 %v1768_v15, %v1767_v24  ;;  %v1700_v25 = vmul.f32 %v5818_v58, %v5592_v59 }
 0x545   : > { %v4075_v8 = vpop.eup %4074  ;;  %v1915_v1 = vrot.slane %v1914_v39, 2  ;;  %v1901_v28 = vrot.slane %v1900_v53, 2  ;;  %v1919_v19 = vsel %vm1101_vm6, %v4073_v4, 0.0  ;;  %v1947_v14 = vmul.f32 %v4069_v37, %v1743_v40 }
 0x546   : > { %v1952_v50 = vmul.f32 %v4071_v17, %v1778_v32  ;;  %v1788_v48 = vadd.f32 %v1787_v3, %v1786_v49  ;;  %v1920_v51 = vrot.slane %v1919_v19, 4  ;;  %v1680_v35 = vmul.f32 1.442695, %v1651_v29 }
 0x547   : > { %v1962_v5 = vpack.c.bf16 %v1946_v34, %v1946_v34  ;;  %v1902_v30 = vadd.f32 %v1901_v28, %v1900_v53  ;;  %v1757_v27 = vadd.f32 %v1756_v13, %v1755_v22  ;;  %v1948_v55 = vmul.f32 %v5811_v20, %v1750_v63 }
 0x548   : > { %v4077_v59 = vpop.eup %4076  ;;  %v1950_v58 = vmul.f32 %v4075_v8, %v1764_v11  ;;  %v1770_v16 = vrot.slane %v1769_v42, 1  ;;  %v1921_v21 = vadd.f32 %v1920_v51, %v1919_v19  ;;  %4080 = vpow2.f32 %v1680_v35 }
 0x549   : > { %v1785_v41 = vadd.f32 %v1784_v2, %v1783_v7  ;;  %v1903_v24 = vrot.slane %v1902_v30, 1  ;;  %v1949_v10 = vmul.f32 %v4067_v44, %v1757_v27  ;;  %v1963_v0 = vpack.c.bf16 %v1947_v14, %v1947_v14  ;;  %v2258_v7 = vld [vmem:[#allocation22] sm:$0xf]  ;;  %v5859_v2 = vpop.trf.xlu1 }
 0x54a   : > { %v1968_v47 = vpack.c.bf16 %v1952_v50, %v1952_v50  ;;  %v1800_v45 = vsel %vm1101_vm6, %v1700_v25, 0.0  ;;  %v1916_v61 = vadd.f32 %v1915_v1, %v1914_v39  ;;  %v1789_v38 = vrot.slane %v1788_v48, 2 }
 0x54b   : > { %v1953_v36 = vmul.f32 %v4077_v59, %v1785_v41  ;;  %v1904_v22 = vadd.f32 %v1903_v24, %v1902_v30  ;;  %v1701_v20 = vmul.f32 %v4073_v4, %v5594_v60  ;;  %v2040_v54 = vunpack.c.l.b16 %v1962_v5 }
 0x54c   : > { %v1966_v49 = vpack.c.bf16 %v1950_v58, %v1950_v58  ;;  %v1771_v33 = vadd.f32 %v1770_v16, %v1769_v42  ;;  %v1922_v15 = vrot.slane %v1921_v21, 2  ;;  %v2053_v44 = vsel %vm2052_vm9, %v5830_v6, %v5766_v23 }
 0x54d   : > { %v4079_v56 = vpop.eup %4078  ;;  %4082 = vrcp.f32 %v1904_v22  ;;  %v1964_v37 = vpack.c.bf16 %v1948_v55, %v1948_v55  ;;  %v2041_v63 = vunpack.c.l.b16 %v1963_v0  ;;  %v2055_v43 = vsel %vm2054_vm10, %v5763_v52, %v2053_v44  ;;  %v5870_v0 = vpop.trf.xlu1 }
 0x54e   : > { %v1951_v31 = vmul.f32 %v4079_v56, %v1771_v33  ;;  %v1790_v60 = vadd.f32 %v1789_v38, %v1788_v48  ;;  %v1965_v39 = vpack.c.bf16 %v1949_v10, %v1949_v10  ;;  %v2057_v13 = vsel %vm2056_vm11, %v5768_v62, %v2055_v43 }
 0x54f   : > { %v1969_v40 = vpack.c.bf16 %v1953_v36, %v1953_v36  ;;  %v1807_v3 = vsel %vm1101_vm6, %v1701_v20, 0.0  ;;  %v2059_v29 = vsel %vm2058_vm12, %v2040_v54, %v2057_v13  ;;  %v2263_v23 = vsel %vm1105_vm5, %v2258_v7, 0 }
 0x550   : > { %v1967_v6 = vpack.c.bf16 %v1951_v31, %v1951_v31  ;;  %v1801_v17 = vrot.slane %v1800_v45, 4  ;;  %v1917_v34 = vrot.slane %v1916_v61, 1  ;;  %v1923_v32 = vadd.f32 %v1922_v15, %v1921_v21  ;;  %3736 = vmatpush3.bf16.msra.mxu0 %v2263_v23 }
 0x551   : > { %v2046_v53 = vunpack.c.l.b16 %v1968_v47  ;;  %v2044_v52 = vunpack.c.l.b16 %v1966_v49  ;;  %v2042_v4 = vunpack.c.l.b16 %v1964_v37  ;;  %v2061_v11 = vsel %vm2060_vm13, %v2041_v63, %v2059_v29  ;;  %v5872_v7 = vpop.trf.xlu1 }
 0x552   : > { %v6489_v62 = vmov 0.0   ;;  %v4081_v42 = vpop.eup %4080  ;;  %v2045_v25 = vunpack.c.l.b16 %v1967_v6  ;;  %v1791_v8 = vrot.slane %v1790_v60, 1  ;;  %v1808_v1 = vrot.slane %v1807_v3, 4 }
 0x553   : > { %3741 = vmatprep.subr.bf16.mxu0 %v6489_v62  ;;  %v2043_v28 = vunpack.c.l.b16 %v1965_v39  ;;  %v2047_v19 = vunpack.c.l.b16 %v1969_v40  ;;  %v1699_v14 = vmul.f32 %v4081_v42, %v5587_v57  ;;  %v1905_v50 = vsel %vm1101_vm6, %v4081_v42, 0.0 }
 0x554   : > { %v2063_v48 = vsel %vm2062_vm14, %v2042_v4, %v2061_v11  ;;  %v1924_v51 = vrot.slane %v1923_v32, 1  ;;  %v1906_v35 = vrot.slane %v1905_v50, 4  ;;  %v2066_v30 = vsel %vm2052_vm9, %v2045_v25, %v2044_v52 }
 0x555   : > { %v2065_v5 = vsel %vm2064_vm15, %v2043_v28, %v2063_v48  ;;  %v1802_v27 = vadd.f32 %v1801_v17, %v1800_v45  ;;  %v1793_v55 = vsel %vm1101_vm6, %v1699_v14, 0.0  ;;  %v2067_v59 = vsel %vm2054_vm10, %v2046_v53, %v2066_v30  ;;  %v5875_v39 = vpop.trf.xlu1 }
 0x556   : > { %v1792_v58 = vadd.f32 %v1791_v8, %v1790_v60  ;;  %v1794_v16 = vrot.slane %v1793_v55, 4  ;;  %v1907_v21 = vadd.f32 %v1906_v35, %v1905_v50  ;;  %v2068_v57 = vsel %vm2056_vm11, %v2047_v19, %v2067_v59 }
 0x557   : > { %v4083_v41 = vpop.eup %4082  ;;  %v1918_v24 = vadd.f32 %v1917_v34, %v1916_v61  ;;  %v1809_v10 = vadd.f32 %v1808_v1, %v1807_v3  ;;  %v1925_v38 = vadd.f32 %v1924_v51, %v1923_v32  ;;  %v1803_v20 = vrot.slane %v1802_v27, 2 }
 0x558   : > { %v1954_v47 = vmul.f32 %v4083_v41, %v1792_v58  ;;  %v1908_v36 = vrot.slane %v1907_v21, 2  ;;  %v1795_v22 = vadd.f32 %v1794_v16, %v1793_v55  ;;  %v1080_v48 = vpack.c.bf16 %v5846_v9, %v5841_v46 }
 0x559   : > { %4084 = vrcp.f32 %v1918_v24  ;;  %v1810_v49 = vrot.slane %v1809_v10, 2  ;;  %v1804_v56 = vadd.f32 %v1803_v20, %v1802_v27  ;;  %v5877_v32 = vpop.trf.xlu1  ;;  %v2159_v35 = vsel %vm1105_vm5, %v5691_v26, 0  ;;  %v6497_v20 = vld [vmem:[#allocation53_spill] sm:$0xff] }
 0x55a   : > { %v1970_v45 = vpack.c.bf16 %v1954_v47, %v1954_v47  ;;  %v1909_v54 = vadd.f32 %v1908_v36, %v1907_v21  ;;  %4086 = vrcp.f32 %v1925_v38  ;;  %v1796_v44 = vrot.slane %v1795_v22, 2 }
 0x55b   : > { %v1811_v63 = vadd.f32 %v1810_v49, %v1809_v10  ;;  %v1805_v31 = vrot.slane %v1804_v56, 1  ;;  %v1081_v27 = vpack.c.bf16 %v5870_v0, %v5859_v2  ;;  %v1082_v55 = vpack.c.bf16 %v5875_v39, %v5872_v7 }
 0x55c   : > { %v1910_v33 = vrot.slane %v1909_v54, 1  ;;  %v2048_v15 = vunpack.c.l.b16 %v1970_v45  ;;  %v1797_v43 = vadd.f32 %v1796_v44, %v1795_v22  ;;  %v3603_v22 = vld [vmem:[#allocation19] ss:$0 sm:$0xff] }
 0x55d   : > { %v1812_v60 = vrot.slane %v1811_v63, 1  ;;  %v1806_v29 = vadd.f32 %v1805_v31, %v1804_v56  ;;  %v5879_v8 = vpop.trf.xlu1 }
 0x55e   : > { %v1911_v61 = vadd.f32 %v1910_v33, %v1909_v54  ;;  %v2069_v37 = vsel %vm2058_vm12, %v2048_v15, %v2068_v57  ;;  %v1798_v40 = vrot.slane %v1797_v43, 1  ;;  %6490 = vst [vmem:[#allocation55_spill] sm:$0xff] %v5879_v8  ;;  %v6498_v15 = vld [vmem:[#allocation54_spill] sm:$0xff] }
 0x55f   : > { %v1813_v23 = vadd.f32 %v1812_v60, %v1811_v63 }
 0x560   : > { %4088 = vrcp.f32 %v1911_v61  ;;  %v1799_v17 = vadd.f32 %v1798_v40, %v1797_v43 }
 0x561   : > { %v5888_v30 = vpop.trf.xlu1 }
 0x563   : > { %v4085_v13 = vpop.eup %4084 }
 0x564   : > { %v4087_v3 = vpop.eup %4086  ;;  %v1956_v6 = vmul.f32 %v4085_v13, %v1806_v29 }
 0x565   : > { %v1957_v34 = vmul.f32 %v4087_v3, %v1813_v23  ;;  %v5897_v59 = vpop.trf.xlu1 }
 0x566   : > { %v1972_v4 = vpack.c.bf16 %v1956_v6, %v1956_v6  ;;  %v1084_v58 = vpack.c.bf16 %v5897_v59, %v5888_v30 }
 0x567   : > { %v1973_v42 = vpack.c.bf16 %v1957_v34, %v1957_v34 }
 0x568   : > { %v2050_v1 = vunpack.c.l.b16 %v1972_v4 }
 0x569   : > { %v2051_v28 = vunpack.c.l.b16 %v1973_v42  ;;  %v5901_v26 = vpop.trf.xlu1 }
 0x56a   : > { %v4089_v53 = vpop.eup %4088  ;;  %6491 = vst [vmem:[#allocation56_spill] sm:$0xff] %v5901_v26 }
 0x56b   : > { %v1955_v52 = vmul.f32 %v4089_v53, %v1799_v17 }
 0x56d   : > { %v1971_v11 = vpack.c.bf16 %v1955_v52, %v1955_v52  ;;  %v5909_v16 = vpop.trf.xlu1 }
 0x56e   : > { %6492 = vst [vmem:[#allocation57_spill] sm:$0xff] %v5909_v16  ;;  %v1085_v21 = vpack.c.bf16 %v5909_v16, %v5901_v26 }
 0x56f   : > { %v2049_v25 = vunpack.c.l.b16 %v1971_v11 }
 0x571   : > { %v2070_v19 = vsel %vm2060_vm13, %v2049_v25, %v2069_v37  ;;  %v5914_v57 = vpop.trf.xlu1  ;;  %v2951_v37 = vld [vmem:[#allocation25] sm:$0xf] }
 0x572   : > { %v2071_v14 = vsel %vm2062_vm14, %v2050_v1, %v2070_v19  ;;  %6493 = vst [vmem:[#allocation58_spill] sm:$0xff] %v5914_v57  ;;  %v2953_v13 = vsel %vm1105_vm5, %v2951_v37, 0 }
 0x573   : > { %v2072_v50 = vsel %vm2064_vm15, %v2051_v28, %v2071_v14 }
 0x574   : > { %v2073_v51 = vpack.c.b16 %v2072_v50, %v2065_v5  ;;  %v1083_v5 = vpack.c.bf16 %v5879_v8, %v5877_v32 }
 0x575   : > { %v5916_v41 = vpop.trf.xlu1 }
 0x576   : > { %3714 = vmatmul.mubr.msk.bf16.vlgmr.msra.gmra.mrb[12].mxu1 %vm1101_vm6, %v2073_v51  ;;  %6494 = vst [vmem:[#allocation59_spill] sm:$0xff] %v5916_v41  ;;  %v1086_v24 = vpack.c.bf16 %v5916_v41, %v5914_v57 }
 0x577   : > { %3719 = vmatprep.mubr.msk.bf16.mxu1 %vm1101_vm6, %v1080_v48  ;;  %3718 = vmatpush3.bf16.msra.mxu1 %v2159_v35 }
 0x578   : > { %3759 = vmatprep.subr.bf16.mxu1 %v6489_v62 }
 0x579   : > { %v5921_v10 = vpop.trf.xlu1 }
 0x57a   : > { %6495 = vst [vmem:[#allocation60_spill] sm:$0xff] %v5921_v10 }
 0x57d   : > { %v5923_v47 = vpop.trf.xlu1 }
 0x57e   : > { %3720 = vmatmul.mubr.msk.bf16.vlgmr.msra.gmra.mrb[16].mxu1 %vm1101_vm6, %v1081_v27  ;;  %6496 = vst [vmem:[#allocation61_spill] sm:$0xff] %v5923_v47  ;;  %v1087_v38 = vpack.c.bf16 %v5923_v47, %v5921_v10 }
 0x57f   : > { %3723 = vmatprep.mubr.msk.bf16.mxu1 %vm1101_vm6, %v1082_v55 }
 0x586   : > { %3724 = vmatmul.mubr.msk.bf16.gmra.mrb[20].mxu1 %vm1101_vm6, %v1083_v5 }
 0x587   : > { %3727 = vmatprep.mubr.msk.bf16.mxu1 %vm1101_vm6, %v1084_v58 }
 0x58e   : > { %3728 = vmatmul.mubr.msk.bf16.gmra.mrb[24].mxu1 %vm1101_vm6, %v1085_v21 }
 0x58f   : > { %3731 = vmatprep.mubr.msk.bf16.mxu1 %vm1101_vm6, %v1086_v24 }
 0x596   : > { %3732 = vmatmul.mubr.msk.bf16.gmra.mrb[28].mxu1 %vm1101_vm6, %v1087_v38 }
 0x597   : > { %3761 = vmatprep.mubr.msk.bf16.mxu1 %vm4840_vm0, %v6489_v62 }
 0x649   : > { %v2114_v36 = vpop.f32.mrb[12].mxu1 }
 0x64a   : > { %v2115_v45 = vadd.f32 %v2114_v36, %v6497_v20  ;;  %v3715_v54 = vpop.f32.mrb[13].mxu1 }
 0x64b   : > { %v2117_v49 = vpop.f32.mrb[14].mxu1 }
 0x64c   : > { %v2128_v33 = vadd.f32 %v3603_v22, %v2115_v45  ;;  %v2118_v44 = vadd.f32 %v2117_v49, %v6498_v15  ;;  %v3716_v56 = vpop.f32.mrb[15].mxu1 }
 0x64e   : > { %v2129_v61 = vadd.f32 %v3603_v22, %v2118_v44  ;;  %v2130_v63 = vmax.f32 %v2128_v33, 0.0 }
 0x650   : > { %v2131_v43 = vmax.f32 %v2129_v61, 0.0 }
 0x651   : > { %v3721_v31 = vpop.f32.mrb[16].mxu1 }
 0x652   : > { %v2132_v60 = vpack.c.bf16 %v2131_v43, %v2130_v63  ;;  %v2195_v40 = vpop.f32.mrb[17].mxu1 }
 0x653   : > { %v3722_v3 = vpop.f32.mrb[18].mxu1 }
 0x654   : > { %3738 = vmatmul.mubr.msk.bf16.vlgmr.msra.gmra.mrb[20].mxu0 %vm1101_vm6, %v2132_v60  ;;  %v2198_v29 = vpop.f32.mrb[19].mxu1 }
 0x655   : > { %3742 = vmatpush3.bf16.msra.mxu0 %v2953_v13  ;;  %3743 = vmatprep.mubr.msk.bf16.mxu0 %vm4840_vm0, %v6489_v62 }
 0x656   : > { %3747 = vmatprep.subr.bf16.mxu0 %v6489_v62 }
 0x659   : > { %v3725_v23 = vpop.f32.mrb[20].mxu1 }
 0x65a   : > { %v2211_v6 = vpop.f32.mrb[21].mxu1 }
 0x65b   : > { %v3726_v17 = vpop.f32.mrb[22].mxu1 }
 0x65c   : > { %3744 = vmatmul.mubr.msk.bf16.vlgmr.msra.gmra.mrb[24].mxu0 %vm1101_vm6, %v2132_v60  ;;  %v2214_v34 = vpop.f32.mrb[23].mxu1 }
 0x65d   : > { %3749 = vmatprep.mubr.msk.bf16.mxu0 %vm4840_vm0, %v6489_v62 }
 0x661   : > { %v5940_v53 = vpop.f32.mrb[24].mxu1 }
 0x662   : > { %v5942_v52 = vpop.f32.mrb[25].mxu1 }
 0x663   : > { %v5944_v4 = vpop.f32.mrb[26].mxu1 }
 0x664   : > { %v5946_v11 = vpop.f32.mrb[27].mxu1 }
 0x669   : > { %v5948_v42 = vpop.f32.mrb[28].mxu1 }
 0x66a   : > { %v5950_v25 = vpop.f32.mrb[29].mxu1 }
 0x66b   : > { %v5952_v1 = vpop.f32.mrb[30].mxu1 }
 0x66c   : > { %v5954_v28 = vpop.f32.mrb[31].mxu1 }
 0x727   : > { %v2299_v19 = vpop.f32.mrb[20].mxu0 }
 0x728   : > { %v2308_v14 = vcombine.high %v2299_v19, %v2299_v19  ;;  %v2315_v50 = vrot.slane %v2299_v19, %v5607_v12  ;;  %v3739_v48 = vpop.f32.mrb[21].mxu0 }
 0x729   : > { %v2302_v51 = vpop.f32.mrb[22].mxu0 }
 0x72a   : > { %v2322_v35 = vrot.slane %v2308_v14, %v5607_v12  ;;  %v2323_v27 = vcombine.high %v2315_v50, %v2315_v50  ;;  %v2331_v55 = vrot.slane %v2315_v50, %v5607_v12  ;;  %v2357_v5 = vcombine.high %v2302_v51, %v2302_v51  ;;  %v3740_v58 = vpop.f32.mrb[23].mxu0 }
 0x72b   : > { %v5960_v21 = vrot.slane %v2302_v51, %v5607_v12 }
 0x72c   : > { %v2324_v24 = vcombine.high %v2322_v35, %v2322_v35  ;;  %v2338_v38 = vrot.slane %v2322_v35, %v5607_v12  ;;  %v2345_v36 = vrot.slane %v2323_v27, %v5607_v12  ;;  %v2353_v22 = vcombine.high %v2331_v55, %v2331_v55 }
 0x72d   : > { %v2409_v20 = vrot.slane %v2331_v55, %v5612_v18  ;;  %v5966_v45 = vrot.slane %v2357_v5, %v5607_v12  ;;  %v5978_v63 = vrot.slane %v5960_v21, %v5607_v12 }
 0x72e   : > { %v2352_v49 = vrot.slane %v2324_v24, %v5607_v12  ;;  %v2354_v33 = vcombine.high %v2338_v38, %v2338_v38  ;;  %v2355_v15 = vcombine.high %v2345_v36, %v2345_v36  ;;  %v2413_v44 = vrot.slane %v2345_v36, %v5612_v18 }
 0x72f   : > { %v2417_v56 = vrot.slane %v2353_v22, %v5612_v18  ;;  %v2425_v61 = vrot.slane %v2338_v38, %v5612_v18  ;;  %v5974_v37 = vadd.f32 %v2409_v20, %v2195_v40  ;;  %v5980_v43 = vpop.f32.mrb[24].mxu0 }
 0x730   : > { %6499 = vst [vmem:[#allocation53_spill] sm:$0xff] %v5980_v43  ;;  %v2356_v60 = vcombine.high %v2352_v49, %v2352_v49  ;;  %v2421_v13 = vrot.slane %v2355_v15, %v5612_v18  ;;  %v2429_v19 = vrot.slane %v2352_v49, %v5612_v18  ;;  %v2433_v14 = vrot.slane %v2354_v33, %v5612_v18  ;;  %v3745_v50 = vpop.f32.mrb[25].mxu0 }
 0x731   : > { %v5985_v48 = vadd.f32 %v2413_v44, %v2198_v29  ;;  %v5987_v51 = vadd.f32 %v3721_v31, %v2417_v56  ;;  %v5989_v40 = vadd.f32 %v2425_v61, %v2211_v6  ;;  %v2502_v35 = vsel %vm1101_vm6, %v5974_v37, -inf  ;;  %v5993_v27 = vpop.f32.mrb[26].mxu0 }
 0x732   : > { %6500 = vst [vmem:[#allocation54_spill] sm:$0xff] %v5993_v27  ;;  %v2437_v55 = vrot.slane %v2356_v60, %v5612_v18  ;;  %v5996_v5 = vadd.f32 %v3722_v3, %v2421_v13  ;;  %v5998_v58 = vadd.f32 %v2429_v19, %v2214_v34  ;;  %v6000_v24 = vadd.f32 %v3725_v23, %v2433_v14  ;;  %v3746_v38 = vpop.f32.mrb[27].mxu0 }
 0x733   : > { %v2503_v29 = vrot.slane %v2502_v35, 4  ;;  %v2509_v31 = vsel %vm1101_vm6, %v5985_v48, -inf  ;;  %v2516_v6 = vsel %vm1101_vm6, %v5987_v51, -inf  ;;  %v2530_v36 = vsel %vm1101_vm6, %v5989_v40, -inf }
 0x734   : > { %v6008_v22 = vadd.f32 %v3726_v17, %v2437_v55  ;;  %v2510_v20 = vrot.slane %v2509_v31, 4  ;;  %v2517_v3 = vrot.slane %v2516_v6, 4  ;;  %v2523_v34 = vsel %vm1101_vm6, %v5996_v5, -inf }
 0x735   : > { %v2504_v23 = vmax.f32 %v2502_v35, %v2503_v29  ;;  %v2524_v49 = vrot.slane %v2523_v34, 4  ;;  %v2531_v33 = vrot.slane %v2530_v36, 4  ;;  %v2537_v15 = vsel %vm1101_vm6, %v5998_v58, -inf }
 0x736   : > { %v2511_v44 = vmax.f32 %v2509_v31, %v2510_v20  ;;  %v2518_v56 = vmax.f32 %v2516_v6, %v2517_v3  ;;  %v2538_v61 = vrot.slane %v2537_v15, 4  ;;  %v2544_v60 = vsel %vm1101_vm6, %v6000_v24, -inf }
 0x737   : > { %v2505_v13 = vrot.slane %v2504_v23, 2  ;;  %v2525_v17 = vmax.f32 %v2523_v34, %v2524_v49  ;;  %v2532_v19 = vmax.f32 %v2530_v36, %v2531_v33  ;;  %v2545_v14 = vrot.slane %v2544_v60, 4 }
 0x738   : > { %v2512_v50 = vrot.slane %v2511_v44, 2  ;;  %v2519_v55 = vrot.slane %v2518_v56, 2  ;;  %v2539_v38 = vmax.f32 %v2537_v15, %v2538_v61  ;;  %v2551_v35 = vsel %vm1101_vm6, %v6008_v22, -inf }
 0x739   : > { %v2506_v29 = vmax.f32 %v2504_v23, %v2505_v13  ;;  %v2526_v54 = vrot.slane %v2525_v17, 2  ;;  %v2533_v27 = vrot.slane %v2532_v19, 2  ;;  %v2546_v43 = vmax.f32 %v2544_v60, %v2545_v14 }
 0x73a   : > { %v2513_v31 = vmax.f32 %v2511_v44, %v2512_v50  ;;  %v2520_v6 = vmax.f32 %v2518_v56, %v2519_v55  ;;  %v2540_v20 = vrot.slane %v2539_v38, 2  ;;  %v2552_v3 = vrot.slane %v2551_v35, 4 }
 0x73b   : > { %v2507_v41 = vrot.slane %v2506_v29, 1  ;;  %v2527_v47 = vmax.f32 %v2525_v17, %v2526_v54  ;;  %v2534_v57 = vmax.f32 %v2532_v19, %v2533_v27  ;;  %v2547_v34 = vrot.slane %v2546_v43, 2 }
 0x73c   : > { %v2514_v36 = vrot.slane %v2513_v31, 1  ;;  %v2521_v49 = vrot.slane %v2520_v6, 1  ;;  %v2541_v33 = vmax.f32 %v2539_v38, %v2540_v20  ;;  %v2553_v10 = vmax.f32 %v2551_v35, %v2552_v3  ;;  %v4025_v35 = vld [vmem:[#allocation28] sm:$0xff]  }
 0x73d   : > { %v2508_v15 = vmax.f32 %v2506_v29, %v2507_v41  ;;  %v2528_v61 = vrot.slane %v2527_v47, 1  ;;  %v2535_v16 = vrot.slane %v2534_v57, 1  ;;  %v2548_v8 = vmax.f32 %v2546_v43, %v2547_v34  ;;  %3760 = vmatpush3.bf16.msra.mxu1 %v4025_v35 }
 0x73e   : > { %v2515_v23 = vmax.f32 %v2513_v31, %v2514_v36  ;;  %v2522_v13 = vmax.f32 %v2520_v6, %v2521_v49  ;;  %v2542_v26 = vrot.slane %v2541_v33, 1  ;;  %v2554_v60 = vrot.slane %v2553_v10, 2 }
 0x73f   : > { %v2529_v44 = vmax.f32 %v2527_v47, %v2528_v61  ;;  %v2536_v56 = vmax.f32 %v2534_v57, %v2535_v16  ;;  %v2549_v14 = vrot.slane %v2548_v8, 1  ;;  %v2614_v50 = vsub.f32 %v5974_v37, %v2508_v15 }
 0x740   : > { %v2543_v54 = vmax.f32 %v2541_v33, %v2542_v26  ;;  %v2555_v27 = vmax.f32 %v2553_v10, %v2554_v60  ;;  %v2615_v17 = vsub.f32 %v5985_v48, %v2515_v23  ;;  %v2616_v19 = vsub.f32 %v5987_v51, %v2522_v13 }
 0x741   : > { %v2550_v55 = vmax.f32 %v2548_v8, %v2549_v14  ;;  %v2617_v41 = vsub.f32 %v5996_v5, %v2529_v44  ;;  %v2618_v43 = vsub.f32 %v5989_v40, %v2536_v56  ;;  %v2630_v38 = vmul.f32 1.442695, %v2614_v50 }
 0x742   : > { %v2556_v29 = vrot.slane %v2555_v27, 1  ;;  %v2619_v47 = vsub.f32 %v5998_v58, %v2543_v54  ;;  %v2632_v16 = vmul.f32 1.442695, %v2615_v17  ;;  %v2634_v57 = vmul.f32 1.442695, %v2616_v19 }
 0x743   : > { %4090 = vpow2.f32 %v2630_v38  ;;  %v2636_v37 = vmul.f32 1.442695, %v2617_v41  ;;  %v2638_v26 = vmul.f32 1.442695, %v2618_v43  ;;  %v2387_v8 = vrot.slane %v5966_v45, %v5607_v12 }
 0x744   : > { %v2557_v10 = vmax.f32 %v2555_v27, %v2556_v29  ;;  %4092 = vpow2.f32 %v2632_v16  ;;  %v2640_v48 = vmul.f32 1.442695, %v2619_v47  ;;  %v2620_v51 = vsub.f32 %v6000_v24, %v2550_v55 }
 0x745   : > { %4094 = vpow2.f32 %v2634_v57  ;;  %v6501_v40 = vcombine.high %v5960_v21, %v5960_v21  ;;  %v2402_v58 = vcombine.high %v5978_v63, %v5978_v63  ;;  %v2441_v6 = vrot.slane %v5978_v63, %v5612_v18 }
 0x746   : > { %v2621_v31 = vsub.f32 %v6008_v22, %v2557_v10  ;;  %4096 = vpow2.f32 %v2636_v37  ;;  %v2403_v20 = vcombine.high %v2387_v8, %v2387_v8  ;;  %v2642_v49 = vmul.f32 1.442695, %v2620_v51 }
 0x747   : > { %v2394_v5 = vrot.slane %v6501_v40, %v5607_v12  ;;  %4098 = vpow2.f32 %v2638_v26  ;;  %v2449_v34 = vrot.slane %v2402_v58, %v5612_v18  ;;  %v6039_v21 = vadd.f32 %v2441_v6, %v5942_v52 }
 0x748   : > { %4100 = vpow2.f32 %v2640_v48  ;;  %v2465_v36 = vrot.slane %v2403_v20, %v5612_v18  ;;  %v2457_v61 = vrot.slane %v2387_v8, %v5612_v18  ;;  %v2644_v23 = vmul.f32 1.442695, %v2621_v31 }
 0x749   : > { %v2404_v3 = vcombine.high %v2394_v5, %v2394_v5  ;;  %v2445_v24 = vrot.slane %v2394_v5, %v5612_v18  ;;  %v6047_v63 = vadd.f32 %v5940_v53, %v2449_v34  ;;  %4102 = vpow2.f32 %v2642_v49 }
 0x74a   : > { %v6050_v15 = vadd.f32 %v5948_v42, %v2465_v36  ;;  %v6057_v13 = vadd.f32 %v2457_v61, %v5950_v25  ;;  %4104 = vpow2.f32 %v2644_v23 }
 0x74b   : > { %v2453_v22 = vrot.slane %v2404_v3, %v5612_v18  ;;  %v6044_v33 = vadd.f32 %v2445_v24, %v5946_v11  ;;  %v2558_v11 = vsel %vm1101_vm6, %v6039_v21, -inf  ;;  %v2572_v26 = vsel %vm1101_vm6, %v6047_v63, -inf }
 0x74c   : > { %v2559_v17 = vrot.slane %v2558_v11, 4  ;;  %v6082_v5 = vsel %vm1101_vm6, %v6050_v15, -inf  ;;  %v2573_v6 = vrot.slane %v2572_v26, 4 }
 0x74d   : > { %v6054_v52 = vadd.f32 %v5944_v4, %v2453_v22  ;;  %v4091_v60 = vpop.eup %4090  ;;  %v2565_v19 = vsel %vm1101_vm6, %v6044_v33, -inf  ;;  %v2601_v61 = vrot.slane %v6082_v5, 4 }
 0x74e   : > { %v4093_v44 = vpop.eup %4092  ;;  %v2662_v53 = vmul.f32 %v4091_v60, %v5841_v46  ;;  %v2790_v42 = vsel %vm1101_vm6, %v4091_v60, 0.0  ;;  %v2566_v40 = vrot.slane %v2565_v19, 4  ;;  %v2560_v31 = vmax.f32 %v2558_v11, %v2559_v17 }
 0x74f   : > { %v4095_v56 = vpop.eup %4094  ;;  %v2663_v14 = vmul.f32 %v4093_v44, %v5846_v9  ;;  %v2791_v50 = vrot.slane %v2790_v42, 4  ;;  %v2797_v4 = vsel %vm1101_vm6, %v4093_v44, 0.0  ;;  %v6086_v20 = vsel %vm1101_vm6, %v6054_v52, -inf }
 0x750   : > { %v4097_v54 = vpop.eup %4096  ;;  %v2664_v25 = vmul.f32 %v4095_v56, %v5859_v2  ;;  %v2678_v27 = vsel %vm1101_vm6, %v2662_v53, 0.0  ;;  %v2798_v38 = vrot.slane %v2797_v4, 4  ;;  %v2804_v36 = vsel %vm1101_vm6, %v4095_v56, 0.0 }
 0x751   : > { %v4099_v55 = vpop.eup %4098  ;;  %v2665_v46 = vmul.f32 %v4097_v54, %v5870_v0  ;;  %v2679_v41 = vrot.slane %v2678_v27, 4  ;;  %v2685_v43 = vsel %vm1101_vm6, %v2663_v14, 0.0  ;;  %v2792_v2 = vadd.f32 %v2791_v50, %v2790_v42 }
 0x752   : > { %v4101_v9 = vpop.eup %4100  ;;  %v2666_v35 = vmul.f32 %v4099_v55, %v5872_v7  ;;  %v2686_v29 = vrot.slane %v2685_v43, 4  ;;  %v2692_v47 = vsel %vm1101_vm6, %v2664_v25, 0.0  ;;  %v2799_v51 = vadd.f32 %v2798_v38, %v2797_v4 }
 0x753   : > { %v2680_v16 = vadd.f32 %v2679_v41, %v2678_v27  ;;  %v2693_v57 = vrot.slane %v2692_v47, 4  ;;  %v2699_v37 = vsel %vm1101_vm6, %v2665_v46, 0.0  ;;  %v2667_v0 = vmul.f32 %v4101_v9, %v5875_v39  ;;  %v4103_v39 = vpop.eup %4102 }
 0x754   : > { %v2687_v10 = vadd.f32 %v2686_v29, %v2685_v43  ;;  %v2700_v48 = vrot.slane %v2699_v37, 4  ;;  %v2706_v8 = vsel %vm1101_vm6, %v2666_v35, 0.0  ;;  %v2373_v7 = vcombine.high %v5966_v45, %v5966_v45  ;;  %v6091_v23 = vpop.eup %4104 }
 0x755   : > { %v2793_v58 = vrot.slane %v2792_v2, 2  ;;  %v2681_v3 = vrot.slane %v2680_v16, 2  ;;  %v2694_v24 = vadd.f32 %v2693_v57, %v2692_v47  ;;  %v2707_v34 = vrot.slane %v2706_v8, 4 }
 0x756   : > { %v2688_v49 = vrot.slane %v2687_v10, 2  ;;  %v2701_v45 = vadd.f32 %v2700_v48, %v2699_v37  ;;  %v2713_v22 = vsel %vm1101_vm6, %v2667_v0, 0.0  ;;  %v2800_v11 = vrot.slane %v2799_v51, 2 }
 0x757   : > { %v2794_v60 = vadd.f32 %v2793_v58, %v2792_v2  ;;  %v2567_v44 = vmax.f32 %v2565_v19, %v2566_v40  ;;  %v6094_v53 = vrot.slane %v2373_v7, %v5607_v12  ;;  %v6097_v42 = vmul.f32 %v4103_v39, %v5877_v32 }
 0x758   : > { %v2805_v14 = vrot.slane %v2804_v36, 4  ;;  %v2561_v50 = vrot.slane %v2560_v31, 2  ;;  %v2574_v56 = vmax.f32 %v2572_v26, %v2573_v6  ;;  %v2682_v4 = vadd.f32 %v2681_v3, %v2680_v16 }
 0x759   : > { %v2695_v25 = vrot.slane %v2694_v24, 2  ;;  %v2708_v27 = vadd.f32 %v2707_v34, %v2706_v8  ;;  %v2714_v17 = vrot.slane %v2713_v22, 4  ;;  %v2689_v46 = vadd.f32 %v2688_v49, %v2687_v10 }
 0x75a   : > { %v2702_v41 = vrot.slane %v2701_v45, 2  ;;  %v2806_v43 = vadd.f32 %v2805_v14, %v2804_v36  ;;  %v2811_v38 = vsel %vm1101_vm6, %v4097_v54, 0.0  ;;  %v2795_v35 = vrot.slane %v2794_v60, 1 }
 0x75b   : > { %v2801_v19 = vadd.f32 %v2800_v11, %v2799_v51  ;;  %v2812_v29 = vrot.slane %v2811_v38, 4  ;;  %v2818_v12 = vsel %vm1101_vm6, %v4099_v55, 0.0  ;;  %v2825_v2 = vsel %vm1101_vm6, %v4101_v9, 0.0 }
 0x75c   : > { %v2807_v47 = vrot.slane %v2806_v43, 2  ;;  %v2819_v32 = vrot.slane %v2818_v12, 4  ;;  %v2832_v57 = vsel %vm1101_vm6, %v4103_v39, 0.0  ;;  %v2826_v37 = vrot.slane %v2825_v2, 4 }
 0x75d   : > { %v2813_v16 = vadd.f32 %v2812_v29, %v2811_v38  ;;  %v2833_v26 = vrot.slane %v2832_v57, 4  ;;  %v2839_v0 = vsel %vm1101_vm6, %v6091_v23, 0.0  ;;  %v2683_v10 = vrot.slane %v2682_v4, 1 }
 0x75e   : > { %v6105_v48 = vadd.f32 %v2695_v25, %v2694_v24  ;;  %v6107_v54 = vadd.f32 %v2714_v17, %v2713_v22  ;;  %v2820_v8 = vadd.f32 %v2819_v32, %v2818_v12  ;;  %v2709_v51 = vrot.slane %v2708_v27, 2 }
 0x75f   : > { %v2802_v55 = vrot.slane %v2801_v19, 1  ;;  %v2808_v7 = vadd.f32 %v2807_v47, %v2806_v43  ;;  %v2814_v40 = vrot.slane %v2813_v16, 2  ;;  %v2690_v58 = vrot.slane %v2689_v46, 1 }
 0x760   : > { %v6109_v9 = vadd.f32 %v2702_v41, %v2701_v45  ;;  %v2840_v6 = vrot.slane %v2839_v0, 4  ;;  %v2562_v39 = vmax.f32 %v2560_v31, %v2561_v50  ;;  %v2796_v3 = vadd.f32 %v2795_v35, %v2794_v60 }
 0x761   : > { %v2827_v34 = vadd.f32 %v2826_v37, %v2825_v2  ;;  %v2834_v36 = vadd.f32 %v2833_v26, %v2832_v57  ;;  %v2568_v49 = vrot.slane %v2567_v44, 2  ;;  %v6111_v11 = vadd.f32 %v2683_v10, %v2682_v4 }
 0x762   : > { %v2697_v24 = vrot.slane %v6105_v48, 1  ;;  %v2821_v22 = vrot.slane %v2820_v8, 2  ;;  %v2563_v14 = vrot.slane %v2562_v39, 1  ;;  %v2803_v25 = vadd.f32 %v2802_v55, %v2801_v19 }
 0x763   : > { %v2809_v17 = vrot.slane %v2808_v7, 1  ;;  %v2815_v38 = vadd.f32 %v2814_v40, %v2813_v16  ;;  %v2569_v43 = vmax.f32 %v2567_v44, %v2568_v49  ;;  %v6114_v29 = vadd.f32 %v2690_v58, %v2689_v46 }
 0x764   : > { %v6116_v45 = vadd.f32 %v2709_v51, %v2708_v27  ;;  %v6118_v41 = vadd.f32 %v2840_v6, %v2839_v0  ;;  %v2564_v31 = vmax.f32 %v2562_v39, %v2563_v14  ;;  %v2828_v60 = vrot.slane %v2827_v34, 2 }
 0x765   : > { %v2835_v50 = vrot.slane %v2834_v36, 2  ;;  %4106 = vrcp.f32 %v2796_v3  ;;  %v2570_v4 = vrot.slane %v2569_v43, 1  ;;  %v2822_v35 = vadd.f32 %v2821_v22, %v2820_v8 }
 0x766   : > { %v2575_v12 = vrot.slane %v2574_v56, 2  ;;  %v2580_v47 = vrot.slane %v6086_v20, 4  ;;  %v2622_v19 = vsub.f32 %v6039_v21, %v2564_v31  ;;  %v2810_v32 = vadd.f32 %v2809_v17, %v2808_v7  ;;  %v2950_v7 = vld [vmem:[#allocation23] sm:$0xf] }
 0x767   : > { %v2816_v2 = vrot.slane %v2815_v38, 1  ;;  %4108 = vrcp.f32 %v2803_v25  ;;  %v2571_v44 = vmax.f32 %v2569_v43, %v2570_v4  ;;  %v2842_v27 = vrot.slane %v6118_v41, 2 }
 0x768   : > { %v2576_v46 = vmax.f32 %v2574_v56, %v2575_v12  ;;  %v2581_v57 = vmax.f32 %v6086_v20, %v2580_v47  ;;  %v2646_v16 = vmul.f32 1.442695, %v2622_v19  ;;  %v2829_v37 = vadd.f32 %v2828_v60, %v2827_v34 }
 0x769   : > { %v2836_v26 = vadd.f32 %v2835_v50, %v2834_v36  ;;  %v2623_v0 = vsub.f32 %v6044_v33, %v2571_v44  ;;  %v2602_v10 = vmax.f32 %v6082_v5, %v2601_v61  ;;  %v2823_v8 = vrot.slane %v2822_v35, 1 }
 0x76a   : > { %v2577_v21 = vrot.slane %v2576_v46, 1  ;;  %v2582_v51 = vrot.slane %v2581_v57, 2  ;;  %v2586_v55 = vsel %vm1101_vm6, %v6057_v13, -inf  ;;  %v2817_v40 = vadd.f32 %v2816_v2, %v2815_v38 }
 0x76b   : > { %4110 = vpow2.f32 %v2646_v16  ;;  %v2648_v56 = vmul.f32 1.442695, %v2623_v0  ;;  %v2603_v20 = vrot.slane %v2602_v10, 2  ;;  %v2587_v39 = vrot.slane %v2586_v55, 4 }
 0x76c   : > { %v2578_v58 = vmax.f32 %v2576_v46, %v2577_v21  ;;  %v2583_v6 = vmax.f32 %v2581_v57, %v2582_v51  ;;  %v2405_v33 = vcombine.high %v6094_v53, %v6094_v53  ;;  %v2461_v5 = vrot.slane %v6094_v53, %v5612_v18 }
 0x76d   : > { %4112 = vpow2.f32 %v2648_v56  ;;  %v2604_v3 = vmax.f32 %v2602_v10, %v2603_v20  ;;  %v3047_v61 = vsel %vm1105_vm5, %v2950_v7, 0  ;;  %v2588_v49 = vmax.f32 %v2586_v55, %v2587_v39 }
 0x76e   : > { %v2584_v34 = vrot.slane %v2583_v6, 1  ;;  %v2624_v36 = vsub.f32 %v6047_v63, %v2578_v58  ;;  %v2469_v22 = vrot.slane %v2405_v33, %v5612_v18  ;;  %3748 = vmatpush3.bf16.msra.mxu0 %v3047_v61  ;;  %v2830_v25 = vrot.slane %v2829_v37, 1 }
 0x76f   : > { %v4107_v14 = vpop.eup %4106  ;;  %v2837_v17 = vrot.slane %v2836_v26, 1  ;;  %v2605_v38 = vrot.slane %v2604_v3, 1  ;;  %v6138_v43 = vadd.f32 %v2461_v5, %v5954_v28  ;;  %3753 = vmatprep.subr.bf16.mxu0 %v6489_v62  ;;  %v2589_v60 = vrot.slane %v2588_v49, 2 }
 0x770   : > { %v2585_v31 = vmax.f32 %v2583_v6, %v2584_v34  ;;  %v2650_v53 = vmul.f32 1.442695, %v2624_v36  ;;  %v6142_v50 = vadd.f32 %v5952_v1, %v2469_v22  ;;  %v2824_v4 = vadd.f32 %v2823_v8, %v2822_v35 }
 0x771   : > { %v6144_v63 = vpop.eup %4108  ;;  %4114 = vrcp.f32 %v2810_v32  ;;  %v2606_v18 = vmax.f32 %v2604_v3, %v2605_v38  ;;  %v2593_v12 = vsel %vm1101_vm6, %v6138_v43, -inf  ;;  %v2590_v28 = vmax.f32 %v2588_v49, %v2589_v60  ;;  %v6502_v49 = vld [vmem:[#allocation56_spill] sm:$0xff] }
 0x772   : > { %v2625_v47 = vsub.f32 %v6054_v52, %v2585_v31  ;;  %4116 = vpow2.f32 %v2650_v53  ;;  %v2607_v19 = vsel %vm1101_vm6, %v6142_v50, -inf  ;;  %v2831_v2 = vadd.f32 %v2830_v25, %v2829_v37  ;;  %v6503_v53 = vld [vmem:[#allocation55_spill] sm:$0xff] }
 0x773   : > { %v2628_v44 = vsub.f32 %v6050_v15, %v2606_v18  ;;  %v2608_v1 = vrot.slane %v2607_v19, 4  ;;  %v2594_v46 = vrot.slane %v2593_v12, 4  ;;  %v2838_v57 = vadd.f32 %v2837_v17, %v2836_v26 }
 0x774   : > { %4118 = vrcp.f32 %v2817_v40  ;;  %v2652_v35 = vmul.f32 1.442695, %v2625_v47  ;;  %v2591_v32 = vrot.slane %v2590_v28, 1  ;;  %v6155_v15 = vmul.f32 %v4107_v14, %v6111_v11 }
 0x775   : > { %v4111_v16 = vpop.eup %4110  ;;  %4120 = vrcp.f32 %v2824_v4  ;;  %v2658_v0 = vmul.f32 1.442695, %v2628_v44  ;;  %v2609_v10 = vmax.f32 %v2607_v19, %v2608_v1  ;;  %v2595_v8 = vmax.f32 %v2593_v12, %v2594_v46 }
 0x776   : > { %4122 = vpow2.f32 %v2652_v35  ;;  %v2670_v52 = vmul.f32 %v4111_v16, %v5888_v30  ;;  %v2846_v21 = vsel %vm1101_vm6, %v4111_v16, 0.0  ;;  %v2592_v51 = vmax.f32 %v2590_v28, %v2591_v32 }
 0x777   : > { %v4113_v37 = vpop.eup %4112  ;;  %v2847_v55 = vrot.slane %v2846_v21, 4  ;;  %4124 = vpow2.f32 %v2658_v0  ;;  %v2610_v26 = vrot.slane %v2609_v10, 2  ;;  %v2596_v39 = vrot.slane %v2595_v8, 2 }
 0x778   : > { %v2671_v7 = vmul.f32 %v4113_v37, %v5897_v59  ;;  %v2734_v40 = vsel %vm1101_vm6, %v2670_v52, 0.0  ;;  %v2853_v56 = vsel %vm1101_vm6, %v4113_v37, 0.0  ;;  %v2626_v20 = vsub.f32 %v6057_v13, %v2592_v51 }
 0x779   : > { %v2735_v58 = vrot.slane %v2734_v40, 4  ;;  %v2848_v30 = vadd.f32 %v2847_v55, %v2846_v21  ;;  %v2854_v6 = vrot.slane %v2853_v56, 4  ;;  %v6164_v11 = vadd.f32 %v2697_v24, %v6105_v48 }
 0x77a   : > { %v6169_v33 = vadd.f32 %v2842_v27, %v6118_v41  ;;  %4126 = vrcp.f32 %v2831_v2  ;;  %v2654_v59 = vmul.f32 1.442695, %v2626_v20  ;;  %v2741_v13 = vsel %vm1101_vm6, %v2671_v7, 0.0 }
 0x77b   : > { %v6171_v3 = vpop.eup %4114  ;;  %4128 = vrcp.f32 %v2838_v57  ;;  %v2849_v5 = vrot.slane %v2848_v30, 2  ;;  %v2855_v61 = vadd.f32 %v2854_v6, %v2853_v56  ;;  %v2934_v36 = vpack.c.bf16 %v6155_v15, %v6155_v15  ;;  %v6504_v57 = vld [vmem:[#allocation57_spill] sm:$0xff]  ;;  %v6505_v6 = vld [vmem:[#allocation60_spill] sm:$0xff] }
 0x77c   : > { %v4117_v34 = vpop.eup %4116  ;;  %4130 = vpow2.f32 %v2654_v59  ;;  %v2611_v48 = vmax.f32 %v2609_v10, %v2610_v26  ;;  %v2716_v24 = vrot.slane %v6107_v54, 2  ;;  %v2736_v27 = vadd.f32 %v2735_v58, %v2734_v40 }
 0x77d   : > { %v2672_v41 = vmul.f32 %v4117_v34, %v6502_v49  ;;  %v2850_v22 = vadd.f32 %v2849_v5, %v2848_v30  ;;  %v2597_v14 = vmax.f32 %v2595_v8, %v2596_v39  ;;  %v2742_v17 = vrot.slane %v2741_v13, 4 }
 0x77e   : > { %v6178_v25 = vpop.eup %4118  ;;  %v2856_v38 = vrot.slane %v2855_v61, 2  ;;  %v2860_v31 = vsel %vm1101_vm6, %v4117_v34, 0.0  ;;  %v6183_v60 = vmul.f32 %v6091_v23, %v6503_v53  ;;  %v2704_v47 = vrot.slane %v6109_v9, 1 }
 0x77f   : > { %v6185_v4 = vpop.eup %4120  ;;  %v2748_v18 = vsel %vm1101_vm6, %v2672_v41, 0.0  ;;  %v2851_v12 = vrot.slane %v2850_v22, 1  ;;  %v6191_v28 = vsel %vm1101_vm6, %v6097_v42, 0.0  ;;  %v2861_v44 = vrot.slane %v2860_v31, 4 }
 0x780   : > { %v4123_v19 = vpop.eup %4122  ;;  %v2749_v2 = vrot.slane %v2748_v18, 4  ;;  %v2612_v1 = vrot.slane %v2611_v48, 1  ;;  %v6194_v46 = vadd.f32 %v2716_v24, %v6107_v54  ;;  %v2737_v32 = vrot.slane %v2736_v27, 2 }
 0x781   : > { %v4125_v23 = vpop.eup %4124  ;;  %v2673_v35 = vmul.f32 %v4123_v19, %v6504_v57  ;;  %v2598_v16 = vrot.slane %v2597_v14, 1  ;;  %v2711_v0 = vrot.slane %v6116_v45, 1  ;;  %v2743_v10 = vadd.f32 %v2742_v17, %v2741_v13 }
 0x782   : > { %v2857_v8 = vadd.f32 %v2856_v38, %v2855_v61  ;;  %v2862_v52 = vadd.f32 %v2861_v44, %v2860_v31  ;;  %v2867_v42 = vsel %vm1101_vm6, %v4123_v19, 0.0  ;;  %v2852_v51 = vadd.f32 %v2851_v12, %v2850_v22  ;;  %v6506_v22 = vld [vmem:[#allocation58_spill] sm:$0xff] }
 0x783   : > { %v2755_v21 = vsel %vm1101_vm6, %v2673_v35, 0.0  ;;  %v2868_v37 = vrot.slane %v2867_v42, 4  ;;  %v2721_v55 = vrot.slane %v6191_v28, 4  ;;  %v2750_v26 = vadd.f32 %v2749_v2, %v2748_v18 }
 0x784   : > { %v6201_v54 = vpop.eup %4126  ;;  %v2863_v7 = vrot.slane %v2862_v52, 2  ;;  %v2613_v40 = vmax.f32 %v2611_v48, %v2612_v1  ;;  %v2718_v56 = vrot.slane %v6194_v46, 1  ;;  %v2738_v58 = vadd.f32 %v2737_v32, %v2736_v27 }
 0x785   : > { %v6204_v20 = vpop.eup %4128  ;;  %v2869_v30 = vadd.f32 %v2868_v37, %v2867_v42  ;;  %v2676_v39 = vmul.f32 %v4125_v23, %v6505_v6  ;;  %v2599_v59 = vmax.f32 %v2597_v14, %v2598_v16  ;;  %v2744_v5 = vrot.slane %v2743_v10, 2 }
 0x786   : > { %v4131_v13 = vpop.eup %4130  ;;  %v2756_v61 = vrot.slane %v2755_v21, 4  ;;  %v2858_v34 = vrot.slane %v2857_v8, 1  ;;  %v2864_v24 = vadd.f32 %v2863_v7, %v2862_v52  ;;  %4132 = vrcp.f32 %v2852_v51 }
 0x787   : > { %v2870_v49 = vrot.slane %v2869_v30, 2  ;;  %v2888_v41 = vsel %vm1101_vm6, %v4125_v23, 0.0  ;;  %v2674_v48 = vmul.f32 %v4131_v13, %v6506_v22  ;;  %v2751_v17 = vrot.slane %v2750_v26, 2 }
 0x788   : > { %v2865_v38 = vrot.slane %v2864_v24, 1  ;;  %v2776_v31 = vsel %vm1101_vm6, %v2676_v39, 0.0  ;;  %v2629_v27 = vsub.f32 %v6142_v50, %v2613_v40  ;;  %v2889_v18 = vrot.slane %v2888_v41, 4 }
 0x789   : > { %v2871_v53 = vadd.f32 %v2870_v49, %v2869_v30  ;;  %v2762_v14 = vsel %vm1101_vm6, %v2674_v48, 0.0  ;;  %v2874_v12 = vsel %vm1101_vm6, %v4131_v13, 0.0  ;;  %v2739_v19 = vrot.slane %v2738_v58, 1 }
 0x78a   : > { %v2745_v2 = vadd.f32 %v2744_v5, %v2743_v10  ;;  %v2757_v44 = vadd.f32 %v2756_v61, %v2755_v21  ;;  %v2859_v1 = vadd.f32 %v2858_v34, %v2857_v8  ;;  %v2890_v23 = vadd.f32 %v2889_v18, %v2888_v41 }
 0x78b   : > { %v2872_v57 = vrot.slane %v2871_v53, 1  ;;  %v2763_v35 = vrot.slane %v2762_v14, 4  ;;  %v2875_v32 = vrot.slane %v2874_v12, 4  ;;  %v2752_v16 = vadd.f32 %v2751_v17, %v2750_v26 }
 0x78c   : > { %v2777_v52 = vrot.slane %v2776_v31, 4  ;;  %v2660_v42 = vmul.f32 1.442695, %v2629_v27  ;;  %v2627_v51 = vsub.f32 %v6138_v43, %v2599_v59  ;;  %v2866_v50 = vadd.f32 %v2865_v38, %v2864_v24 }
 0x78d   : > { %v2891_v37 = vrot.slane %v2890_v23, 2  ;;  %v2764_v7 = vadd.f32 %v2763_v35, %v2762_v14  ;;  %v2876_v40 = vadd.f32 %v2875_v32, %v2874_v12  ;;  %v2758_v30 = vrot.slane %v2757_v44, 2 }
 0x78e   : > { %v2873_v6 = vadd.f32 %v2872_v57, %v2871_v53  ;;  %4134 = vpow2.f32 %v2660_v42  ;;  %v2656_v39 = vmul.f32 1.442695, %v2627_v51  ;;  %v2740_v13 = vadd.f32 %v2739_v19, %v2738_v58 }
 0x78f   : > { %4136 = vrcp.f32 %v2859_v1  ;;  %v2892_v10 = vadd.f32 %v2891_v37, %v2890_v23  ;;  %v2765_v8 = vrot.slane %v2764_v7, 2  ;;  %v2877_v21 = vrot.slane %v2876_v40, 2 }
 0x790   : > { %v2778_v5 = vadd.f32 %v2777_v52, %v2776_v31  ;;  %4138 = vpow2.f32 %v2656_v39  ;;  %v2722_v26 = vadd.f32 %v2721_v55, %v6191_v28  ;;  %v4133_v61 = vpop.eup %4132  ;;  %v2727_v34 = vsel %vm1101_vm6, %v6183_v60, 0.0 }
 0x791   : > { %4140 = vrcp.f32 %v2866_v50  ;;  %v2893_v43 = vrot.slane %v2892_v10, 1  ;;  %v2878_v59 = vadd.f32 %v2877_v21, %v2876_v40  ;;  %v2759_v24 = vadd.f32 %v2758_v30, %v2757_v44  ;;  %v6508_v30 = vld [vmem:[#allocation59_spill] sm:$0xff] }
 0x792   : > { %4142 = vrcp.f32 %v2873_v6  ;;  %v2766_v49 = vadd.f32 %v2765_v8, %v2764_v7  ;;  %v2728_v41 = vrot.slane %v2727_v34, 4  ;;  %v2746_v22 = vrot.slane %v2745_v2, 1 }
 0x793   : > { %v2753_v48 = vrot.slane %v2752_v16, 1  ;;  %v2879_v17 = vrot.slane %v2878_v59, 1  ;;  %v2723_v38 = vrot.slane %v2722_v26, 2  ;;  %v6217_v58 = vmul.f32 %v4133_v61, %v2740_v13 }
 0x794   : > { %v2779_v31 = vrot.slane %v2778_v5, 2  ;;  %v2729_v27 = vadd.f32 %v2728_v41, %v2727_v34  ;;  %v2844_v28 = vrot.slane %v6169_v33, 1  ;;  %v2894_v55 = vadd.f32 %v2893_v43, %v2892_v10 }
 0x795   : > { %v2880_v53 = vadd.f32 %v2879_v17, %v2878_v59  ;;  %v2705_v60 = vadd.f32 %v2704_v47, %v6109_v9  ;;  %v2712_v18 = vadd.f32 %v2711_v0, %v6116_v45  ;;  %v2767_v14 = vrot.slane %v2766_v49, 1  ;;  %v6507_v47 = vld [vmem:[#allocation61_spill] sm:$0xff] }
 0x796   : > { %v2730_v12 = vrot.slane %v2729_v27, 2  ;;  %v2760_v19 = vrot.slane %v2759_v24, 1  ;;  %v2845_v44 = vadd.f32 %v2844_v28, %v6169_v33  ;;  %v2747_v1 = vadd.f32 %v2746_v22, %v2745_v2 }
 0x797   : > { %v2754_v57 = vadd.f32 %v2753_v48, %v2752_v16  ;;  %4144 = vrcp.f32 %v2880_v53  ;;  %v2724_v23 = vadd.f32 %v2723_v38, %v2722_v26  ;;  %v2942_v32 = vpack.c.bf16 %v6217_v58, %v6217_v58 }
 0x798   : > { %v4135_v35 = vpop.eup %4134  ;;  %v6229_v52 = vadd.f32 %v2779_v31, %v2778_v5  ;;  %v2719_v9 = vadd.f32 %v2718_v56, %v6194_v46  ;;  %4146 = vrcp.f32 %v2845_v44  ;;  %v2731_v2 = vadd.f32 %v2730_v12, %v2729_v27 }
 0x799   : > { %v4137_v45 = vpop.eup %4136  ;;  %v2677_v0 = vmul.f32 %v4135_v35, %v6507_v47  ;;  %v2895_v33 = vsel %vm1101_vm6, %v4135_v35, 0.0  ;;  %v2919_v16 = vmul.f32 %v6144_v63, %v6114_v29  ;;  %4148 = vrcp.f32 %v2894_v55 }
 0x79a   : > { %v4139_v42 = vpop.eup %4138  ;;  %v2768_v51 = vadd.f32 %v2767_v14, %v2766_v49  ;;  %v2896_v50 = vrot.slane %v2895_v33, 4  ;;  %v2761_v37 = vadd.f32 %v2760_v19, %v2759_v24  ;;  %v2725_v6 = vrot.slane %v2724_v23, 1 }
 0x79b   : > { %v4141_v7 = vpop.eup %4140  ;;  %v2783_v40 = vsel %vm1101_vm6, %v2677_v0, 0.0  ;;  %v2675_v46 = vmul.f32 %v4139_v42, %v6508_v30  ;;  %v2881_v56 = vsel %vm1101_vm6, %v4139_v42, 0.0  ;;  %v2920_v29 = vmul.f32 %v6171_v3, %v6164_v11 }
 0x79c   : > { %v4143_v39 = vpop.eup %4142  ;;  %v2784_v10 = vrot.slane %v2783_v40, 4  ;;  %v2897_v8 = vadd.f32 %v2896_v50, %v2895_v33  ;;  %v2882_v21 = vrot.slane %v2881_v56, 4  ;;  %v2732_v13 = vrot.slane %v2731_v2, 1 }
 0x79d   : > { %v2769_v63 = vsel %vm1101_vm6, %v2675_v46, 0.0  ;;  %v2921_v5 = vmul.f32 %v6178_v25, %v2705_v60  ;;  %v2922_v26 = vmul.f32 %v6185_v4, %v2712_v18  ;;  %v2923_v34 = vmul.f32 %v6201_v54, %v2719_v9 }
 0x79e   : > { %v2898_v61 = vrot.slane %v2897_v8, 2  ;;  %v2770_v43 = vrot.slane %v2769_v63, 4  ;;  %v2883_v59 = vadd.f32 %v2882_v21, %v2881_v56  ;;  %v2726_v24 = vadd.f32 %v2725_v6, %v2724_v23 }
 0x79f   : > { %v2927_v49 = vmul.f32 %v4137_v45, %v2747_v1  ;;  %v2928_v41 = vmul.f32 %v4141_v7, %v2754_v57  ;;  %v2929_v22 = vmul.f32 %v4143_v39, %v2761_v37  ;;  %v2785_v48 = vadd.f32 %v2784_v10, %v2783_v40 }
 0x7a0   : > { %v2899_v17 = vadd.f32 %v2898_v61, %v2897_v8  ;;  %v2771_v38 = vadd.f32 %v2770_v43, %v2769_v63  ;;  %v2884_v11 = vrot.slane %v2883_v59, 2  ;;  %v2733_v31 = vadd.f32 %v2732_v13, %v2731_v2 }
 0x7a1   : > { %v4145_v3 = vpop.eup %4144  ;;  %v2924_v27 = vmul.f32 %v6204_v20, %v2726_v24  ;;  %v2935_v25 = vpack.c.bf16 %v2919_v16, %v2919_v16  ;;  %v2936_v28 = vpack.c.bf16 %v2920_v29, %v2920_v29  ;;  %v2937_v60 = vpack.c.bf16 %v2921_v5, %v2921_v5 }
 0x7a2   : > { %v4147_v4 = vpop.eup %4146  ;;  %v2930_v55 = vmul.f32 %v4145_v3, %v2768_v51  ;;  %v2900_v53 = vrot.slane %v2899_v17, 1  ;;  %v2938_v18 = vpack.c.bf16 %v2922_v26, %v2922_v26  ;;  %v2885_v54 = vadd.f32 %v2884_v11, %v2883_v59 }
 0x7a3   : > { %v2939_v14 = vpack.c.bf16 %v2923_v34, %v2923_v34  ;;  %v2943_v12 = vpack.c.bf16 %v2927_v49, %v2927_v49  ;;  %v2944_v19 = vpack.c.bf16 %v2928_v41, %v2928_v41  ;;  %v4149_v44 = vpop.eup %4148  ;;  %v2786_v1 = vrot.slane %v2785_v48, 2 }
 0x7a4   : > { %v2901_v57 = vadd.f32 %v2900_v53, %v2899_v17  ;;  %v2772_v23 = vrot.slane %v2771_v38, 2  ;;  %v2945_v35 = vpack.c.bf16 %v2929_v22, %v2929_v22  ;;  %v2886_v9 = vrot.slane %v2885_v54, 1 }
 0x7a5   : > { %v2925_v45 = vmul.f32 %v4147_v4, %v2733_v31  ;;  %v2940_v47 = vpack.c.bf16 %v2924_v27, %v2924_v27  ;;  %v3013_v20 = vunpack.c.l.b16 %v2935_v25  ;;  %v2946_v0 = vpack.c.bf16 %v2930_v55, %v2930_v55 }
 0x7a6   : > { %4150 = vrcp.f32 %v2901_v57  ;;  %v3012_v33 = vunpack.c.l.b16 %v2934_v36  ;;  %v3014_v2 = vunpack.c.l.b16 %v2936_v28  ;;  %v2887_v16 = vadd.f32 %v2886_v9, %v2885_v54  ;;  %v6510_v9 = vld [vmem:[#allocation54_spill] sm:$0xff] }
 0x7a7   : > { %v3015_v42 = vunpack.c.l.b16 %v2937_v60  ;;  %v3020_v51 = vunpack.c.l.b16 %v2942_v32  ;;  %v3021_v50 = vunpack.c.l.b16 %v2943_v12  ;;  %v2787_v37 = vadd.f32 %v2786_v1, %v2785_v48 }
 0x7a8   : > { %v2773_v7 = vadd.f32 %v2772_v23, %v2771_v38  ;;  %v3022_v40 = vunpack.c.l.b16 %v2944_v19  ;;  %v3023_v30 = vunpack.c.l.b16 %v2945_v35  ;;  %4152 = vrcp.f32 %v2887_v16  ;;  %v3615_v19 = vld [vmem:[#allocation26] ss:$0 sm:$0xff] }
 0x7a9   : > { %v2941_v46 = vpack.c.bf16 %v2925_v45, %v2925_v45  ;;  %v3028_v56 = vsel %vm2052_vm9, %v3013_v20, %v3012_v33  ;;  %v3035_v6 = vsel %vm2052_vm9, %v3021_v50, %v3020_v51  ;;  %v3016_v15 = vunpack.c.l.b16 %v2938_v18  ;;  %v3104_v18 = vld [vmem:[#allocation29] sm:$0xf] }
 0x7aa   : > { %v3024_v36 = vunpack.c.l.b16 %v2946_v0  ;;  %v3029_v39 = vsel %vm2054_vm10, %v3014_v2, %v3028_v56  ;;  %v3036_v10 = vsel %vm2054_vm10, %v3022_v40, %v3035_v6  ;;  %v2781_v58 = vrot.slane %v6229_v52, 1 }
 0x7ab   : > { %v3017_v32 = vunpack.c.l.b16 %v2939_v14  ;;  %v3030_v8 = vsel %vm2056_vm11, %v3015_v42, %v3029_v39  ;;  %v3037_v21 = vsel %vm2056_vm11, %v3023_v30, %v3036_v10  ;;  %v2788_v29 = vrot.slane %v2787_v37, 1  ;;  %v4154_v14 = vld [vmem:[%s5475_s25] sm:$0xff]  }
 0x7ac   : > { %v3018_v63 = vunpack.c.l.b16 %v2940_v47  ;;  %v3031_v13 = vsel %vm2058_vm12, %v3016_v15, %v3030_v8  ;;  %v3038_v5 = vsel %vm2058_vm12, %v3024_v36, %v3037_v21  ;;  %v3019_v26 = vunpack.c.l.b16 %v2941_v46 }
 0x7ad   : > { %v3032_v61 = vsel %vm2060_vm13, %v3017_v32, %v3031_v13  ;;  %v2774_v43 = vrot.slane %v2773_v7, 1  ;;  %v2782_v34 = vadd.f32 %v2781_v58, %v6229_v52  ;;  %v2789_v41 = vadd.f32 %v2788_v29, %v2787_v37  ;;  %v3619_v37 = vld [vmem:[#allocation31] ss:$0 sm:$0xff] }
 0x7ae   : > { %v3033_v59 = vsel %vm2062_vm14, %v3018_v63, %v3032_v61  ;;  %v3106_v54 = vsel %vm1105_vm5, %v3104_v18, 0 }
 0x7af   : > { %v3034_v24 = vsel %vm2064_vm15, %v3019_v26, %v3033_v59  ;;  %v2932_v22 = vmul.f32 %v4149_v44, %v2782_v34  ;;  %v2775_v48 = vadd.f32 %v2774_v43, %v2773_v7  ;;  %v6509_v44 = vld [vmem:[#allocation53_spill] sm:$0xff] }
 0x7b0   : > { %v4151_v49 = vpop.eup %4150 }
 0x7b1   : > { %v2933_v17 = vmul.f32 %v4151_v49, %v2789_v41  ;;  %v2948_v3 = vpack.c.bf16 %v2932_v22, %v2932_v22 }
 0x7b2   : > { %v4153_v38 = vpop.eup %4152 }
 0x7b3   : > { %v2931_v11 = vmul.f32 %v4153_v38, %v2775_v48  ;;  %v2949_v27 = vpack.c.bf16 %v2933_v17, %v2933_v17  ;;  %v3026_v28 = vunpack.c.l.b16 %v2948_v3 }
 0x7b5   : > { %v2947_v31 = vpack.c.bf16 %v2931_v11, %v2931_v11  ;;  %v3027_v4 = vunpack.c.l.b16 %v2949_v27 }
 0x7b7   : > { %v3025_v25 = vunpack.c.l.b16 %v2947_v31 }
 0x7b9   : > { %v3039_v55 = vsel %vm2060_vm13, %v3025_v25, %v3038_v5 }
 0x7ba   : > { %v3040_v52 = vsel %vm2062_vm14, %v3026_v28, %v3039_v55 }
 0x7bb   : > { %v3041_v53 = vsel %vm2064_vm15, %v3027_v4, %v3040_v52 }
 0x7bc   : > { %v3042_v60 = vpack.c.b16 %v3041_v53, %v3034_v24 }
 0x7be   : > { %3750 = vmatmul.mubr.msk.bf16.vlgmr.msra.gmra.mrb[28].mxu0 %vm1101_vm6, %v3042_v60 }
 0x7bf   : > { %3755 = vmatprep.mubr.msk.bf16.mxu0 %vm4840_vm0, %v6489_v62  ;;  %3754 = vmatpush3.bf16.msra.mxu0 %v3106_v54  ;;  %vm3155_vm0 = vcmask 130048  }
 0x7c6   : > { %3756 = vmatmul.mubr.msk.bf16.vlgmr.msra.gmra.mrb[32].mxu0 %vm1101_vm6, %v4154_v14 }
 0x891   : > { %v3083_v12 = vpop.f32.mrb[28].mxu0 }
 0x892   : > { %v3084_v1 = vadd.f32 %v3083_v12, %v6509_v44  ;;  %v3751_v57 = vpop.f32.mrb[29].mxu0 }
 0x893   : > { %v3086_v23 = vpop.f32.mrb[30].mxu0 }
 0x894   : > { %v3097_v35 = vadd.f32 %v3615_v19, %v3084_v1  ;;  %v3087_v45 = vadd.f32 %v3086_v23, %v6510_v9  ;;  %v3752_v47 = vpop.f32.mrb[31].mxu0 }
 0x896   : > { %v3098_v20 = vadd.f32 %v3615_v19, %v3087_v45  ;;  %v3099_v0 = vmax.f32 %v3097_v35, 0.0 }
 0x898   : > { %v3100_v62 = vmax.f32 %v3098_v20, 0.0 }
 0x899   : > { %v3142_v2 = vpop.f32.mrb[32].mxu0 }
 0x89a   : > { %v3101_v33 = vpack.c.bf16 %v3100_v62, %v3099_v0  ;;  %v3757_v16 = vpop.f32.mrb[33].mxu0 }
 0x89b   : > { %v3145_v42 = vpop.f32.mrb[34].mxu0 }
 0x89c   : > { %3762 = vmatmul.mubr.msk.bf16.vlgmr.msra.gmra.mrb[32].mxu1 %vm3155_vm0, %v3101_v33  ;;  %v3758_v51 = vpop.f32.mrb[35].mxu0 }
 0x96f   : > { %v3193_v50 = vpop.f32.mrb[32].mxu1 }
 0x970   : > { %v3194_v7 = vadd.f32 %v3193_v50, %v3142_v2  ;;  %v3763_v40 = vpop.f32.mrb[33].mxu1 }
 0x971   : > { %v3196_v30 = vpop.f32.mrb[34].mxu1 }
 0x972   : > { %v3207_v46 = vadd.f32 %v3619_v37, %v3194_v7  ;;  %v3197_v56 = vadd.f32 %v3196_v30, %v3145_v42  ;;  %v3764_v6 = vpop.f32.mrb[35].mxu1 }
 0x974   : > { %v3208_v15 = vadd.f32 %v3619_v37, %v3197_v56  ;;  %vm3209_vm1 = vcmp.ge.f32.partialorder %v3207_v46, 0.0  ;;  %v3211_v36 = vmul.f32 0.01, %v3207_v46 }
 0x976   : > { %v3212_v39 = vmul.f32 0.01, %v3208_v15  ;;  %v3213_v10 = vsel %vm3209_vm1, %v3207_v46, %v3211_v36  ;;  %vm3210_vm2 = vcmp.ge.f32.partialorder %v3208_v15, 0.0 }
 0x977   : > { %3215 = vxpose.xlu0.b32.start [1/2] (short) (narrow) %v3213_v10, 32 }
 0x978   : > { %v3214_v58 = vsel %vm3210_vm2, %v3208_v15, %v3212_v39 }
 0x97b   : > { %3216 = vxpose.xlu0.b32.end [2/2] (short) (narrow) %v3214_v58, 32 }
 0x9f7   : > { %v3231_v32 = vpop.trf.xlu0 }
 0x9f8   : > { %3247 = vst.msk [vmem:[%s899_s1] sm:$0xff] %vm3155_vm0, %v3231_v32 }
 0x9fb   : > { %v3232_v8 = vpop.trf.xlu0 }
 0x9fc   : > { %3248 = vst.msk [vmem:[%s899_s1 + $0x8] sm:$0xff] %vm3155_vm0, %v3232_v8 }
 0x9ff   : > { %v3233_v21 = vpop.trf.xlu0 }
 0xa00   : > { %3249 = vst.msk [vmem:[%s899_s1 + $0x10] sm:$0xff] %vm3155_vm0, %v3233_v21 }
 0xa03   : > { %v3234_v29 = vpop.trf.xlu0 }
 0xa04   : > { %3250 = vst.msk [vmem:[%s899_s1 + $0x18] sm:$0xff] %vm3155_vm0, %v3234_v29 }
 0xa05   : > { %4704 = shalt.err (!%p4701_p4)
}
 0xa06   : > { %s4705_s7 = scalar_lea.hbm %s6289_s17, 512  ;;  %s4709_s13 = scalar_lea.hbm %s6512_s5, 1024 }
 0xa07   : > { %p4706_p9 = scmp.ne.s32.totalorder %s6289_s17, %s4705_s7  ;;  %p4710_p11 = scmp.lt.u32.totalorder %s6289_s17, %s6512_s5 }
 0xa08   : > { %p4711_p8 = scmp.lt.u32.totalorder %s4709_s13, %s4705_s7  ;;  %p4713_p12 = scmp.lt.u32.totalorder %s4705_s7, %s6289_s17 }
 0xa09   : > { %p4707_p1 = pnand %p4706_p9, %p6513_p13 }
 0xa0a   : > { %p4712_p3 = por %p4711_p8, %p4710_p11 }
 0xa0b   : > { %p4708_p10 = pneg %p4707_p1 }
 0xa0c   : > { %p4714_p6 = por %p4713_p12, %p4712_p3 }
 0xa0e   : > { %p4715_p0 = pnand %p4714_p6, %p4708_p10 }
 0xa10   : > { %4718 = shalt.err (!%p4715_p0)
}
 0xa11   : > { %s4844_s22 = smov 128   ;;  %s4845_s6 = smov 8  }
 0xa12   : > { %3845 = dma.vmem_to_hbm [thread:$0]  (%p6513_p13), %s6283_s23, 512, %s6289_s17, %s3252_s21, %s4844_s22, %s4844_s22, %s4845_s6  }
 0xa13 PF: > { %s6514_s1 = sld [smem:[#allocation45_spill]]  ;;  %s6515_s11 = sld [smem:[#allocation50_spill]] }
 0xa14   : > { %p6516_p7 = scmp.ne.s32.totalorder %s6453_s24, 0 }
 0xa19   : > { %s3281_s12 = sand.u32 1, %s6514_s1   ;;  %p6517_p5 = scmp.ge.s32.totalorder %s6515_s11, 2 }
 0xa1a   : > { %s3282_s14 = scalar_lea.sflag [#allocation4], %s3281_s12 }
 0xa1b   : > { %p3907_p2 = pnand %p6517_p5, %p6516_p7 }
 0xa1d   : > { %4788 = dma.done.wait (!%p3907_p2), %s3282_s14, 512  }
 0xa1e   : > { %4790 = vsyncadd (!%p3907_p2), %s3282_s14, 4294966784  ;;  %s46_s22 = sadd.s32 1, %s6515_s11   ;;  %s6518_s0 = sld [smem:[#allocation46_spill]] }
 0xa1f   : > { %p43_p4 = scmp.ge.s32.totalorder %s46_s22, 4   ;;  %s6519_s16 = sld [smem:[#allocation47_spill]] }
 0xa20   : > { %s6520_s21 = sld [smem:[#allocation49_spill]]  ;;  %s6521_s2 = smov %s6526_s30 }
 0xa21   : > { %s6523_s20 = smov %s5362_s4  ;;  %s6524_s1 = smov %s6521_s2 }
 0xa22   :  { %45 = sbr.rel (!%p43_p4) target bundleno = 37 (0x25), region = 222 }
 0xa25   : > { %s6522_s30 = smov %s6519_s16 }
 0xa29   :  { %3287 = vsyncpa [#allocation3], 1 }
 0xa2a   :  { %3289 = vsyncpa [#allocation3 + $0x1], 1 }
 0xa2b   :  { %3290 = vsyncpa [#allocation6], 1 }
 0xa2c   :  { %3292 = vsyncpa [#allocation6 + $0x1], 1 }
 0xa2d   :  { %3293 = vsyncpa [#allocation9], 1 }
 0xa2e   :  { %3294 = vsyncpa [#allocation12], 1 }
 0xa2f   :  { %3295 = vsyncpa [#allocation15], 1 }
 0xa30   :  { %3296 = vsyncpa [#allocation18], 1 }
 0xa31   :  { %3297 = vsyncpa [#allocation21], 1 }
 0xa32   :  { %3298 = vsyncpa [#allocation24], 1 }
 0xa33   :  { %3299 = vsyncpa [#allocation27], 1 }
 0xa34   :  { %3300 = vsyncpa [#allocation30], 1 }
 0xa35   :  { %3301 = vsyncpa [#allocation4], 1 }
 0xa36   :  { %3303 = vsyncpa [#allocation4 + $0x1], 1 }

</bundles_post_ra>
